<compile_context>
chip_gen: v5e
topology: v5e:2x2
jax: 0.10.0
libtpu: 0.0.40
codegen_flags: <defaults>
</compile_context>

<pallas_src>
import jax
import jax.numpy as jnp
from jax import lax
from jax.experimental import pallas as pl
from jax.experimental.pallas import tpu as pltpu


# (layer idx, C_in, C_out, dilation, pool_after)  pool_after in {None, "avg", "sub"}
# dilation == 2**(number of pooling stages applied so far).
_LAYER_CFG = (
    (0, 1, 4, 1, None),
    (1, 4, 8, 1, "avg"),
    (2, 8, 16, 2, "avg"),
    (3, 16, 32, 4, None),
    (4, 32, 16, 4, "avg"),
    (5, 16, 8, 8, "sub"),     # AvgPool1d(kernel_size=1, stride=2)
    (6, 8, 4, 16, "avg"),
    (7, 4, 2, 32, "avg"),
)

# The 0.5 scale of the AvgPool feeding these layers' inputs is folded into
# their packed weights on the host (pack_params); the kernel's corresponding
# pools become a plain 2-tap sum.  The pool AFTER layer 7 keeps its 0.5.
_POOL_SCALE_FOLDED_INTO = (2, 3, 5, 7)

_W_TARGET = 16384          # target lanes per grid step (TB * L)
_TAPS_ROWS = 96            # 3 * max(C_in)


# -------------------- fused forward kernel --------------------

def _make_kernel(tb: int, l_in: int):
    w_lanes = tb * l_in          # lanes per grid step (TB samples, interleaved)
    l_final = l_in // 64         # per-sample length after all 6 pooling stages
    n_rows = 2 * l_final         # flattened logits per sample (2 channels)
    bf16 = jnp.bfloat16

    def kernel(x_ref, p_ref, o_ref, taps_ref):
        # Interleaved layout: lane = t * tb + k  (t = time index, k = sample).
        lane = lax.broadcasted_iota(jnp.int32, (1, w_lanes), 1)
        keep_first = jnp.where(lane < tb, 0.0, 1.0)           # zeroes x[-1] taps (t == 0)
        keep_last = {}
        for d in sorted({cfg[3] for cfg in _LAYER_CFG}):
            lo = (l_in - d) * tb                               # t == last valid position
            keep_last[d] = jnp.where((lane >= lo) & (lane < lo + tb), 0.0, 1.0)

        def conv_relu(a, idx, c_in, c_out, d):
            s = d * tb
            # Tap-stacked MXU operand written straight into the scratch rows
            # (no concatenate temp).  Taps: [x[t-d], x[t], x[t+d]] stacked on
            # the contraction dim, matching the packed weight layout.
            taps_ref[0:c_in, :] = pltpu.roll(a, s, axis=1) * keep_first
            taps_ref[c_in:2 * c_in, :] = a
            taps_ref[2 * c_in:3 * c_in, :] = (
                pltpu.roll(a, w_lanes - s, axis=1) * keep_last[d])
            taps = taps_ref[0:3 * c_in, :].astype(bf16)        # bf16 MXU operand
            pk = p_ref[idx]                                    # (32, 97)
            w = pk[0:c_out, 0:3 * c_in].astype(bf16)
            b = pk[0:c_out, 96:97]                             # f32 bias
            y = jnp.dot(w, taps, preferred_element_type=jnp.float32) + b
            return jnp.maximum(y, 0.0)

        a = x_ref[...].astype(jnp.float32)                     # (1, W)
        for idx, c_in, c_out, d, pool in _LAYER_CFG:
            a = conv_relu(a, idx, c_in, c_out, d)
            if pool == "avg":
                # AvgPool1d(k=2, s=2) on the dilated lattice; 0.5 is folded
                # into the next layer's packed weight where possible.
                s2 = a + pltpu.roll(a, w_lanes - d * tb, axis=1)
                a = s2 if (idx + 1) in _POOL_SCALE_FOLDED_INTO else 0.5 * s2
            # pool == "sub": AvgPool1d(k=1, s=2) only doubles the valid-lane
            # stride -> no compute needed.

        # Final valid logits: channel c, position j live at the contiguous
        # lanes [j*64*tb, j*64*tb + tb).  flatten(1) order: row r = c*l_final + j.
        rows = []
        for c in range(2):
            for j in range(l_final):
                rows.append(a[c:c + 1, j * 64 * tb:j * 64 * tb + tb])
        s = jnp.concatenate(rows, axis=0)                      # (n_rows, tb)

        # Per-sample softmax (each column is one sample's logit vector).
        m = jnp.max(s, axis=0, keepdims=True)
        e = jnp.exp(s - m)
        tot = jnp.sum(e, axis=0, keepdims=True)
        o_ref[...] = (e / tot).astype(o_ref.dtype)

    return kernel


# -------------------- wrapper --------------------

def _pick_tb(n: int, l_in: int, block_b):
    if block_b is not None:
        tb = int(block_b)
    else:
        tb = max(1, _W_TARGET // l_in)         # keep units streaming, bound VMEM
        if n >= 2:
            tb = min(tb, n // 2)               # >= 2 grid steps (v7x megacore)
        tb = max(1, min(tb, n))
    if (tb * l_in) % 128 != 0:                 # keep the input lane block 128-dense
        tb += tb % 2                           # l_in >= 64, so even tb suffices
    return tb


def net_forward(x, params, *, block_b=None):
    """x: (N, 1, L) float32 with L a power of two >= 64.

    Returns (N, 2 * L // 64) softmax probabilities (L=128 -> (N, 4))."""
    n, c_in, l_in = x.shape
    if c_in != 1:
        raise ValueError("this network variant expects a single input channel")
    if l_in < 64 or (l_in & (l_in - 1)) != 0:
        raise ValueError("sequence length must be a power of two >= 64")

    tb = _pick_tb(n, l_in, block_b)
    n_pad = (-n) % tb
    if n_pad:
        x = jnp.concatenate([x, jnp.zeros((n_pad, 1, l_in), x.dtype)], axis=0)
    n_total = n + n_pad
    n_blocks = n_total // tb
    w_lanes = tb * l_in
    n_rows = 2 * (l_in // 64)

    # Interleave TB samples along lanes: within block i, lane = t*tb + k.
    xw = (x.reshape(n_blocks, tb, l_in)
            .transpose(0, 2, 1)
            .reshape(1, n_blocks * w_lanes)
            .astype(jnp.float32))

    out = pl.pallas_call(
        _make_kernel(tb, l_in),
        out_shape=jax.ShapeDtypeStruct((n_blocks, n_rows, tb), jnp.float32),
        grid=(n_blocks,),
        in_specs=[
            pl.BlockSpec((1, w_lanes), lambda i: (0, i)),
            pl.BlockSpec(params.shape, lambda i: (0, 0, 0)),   # resident constants
        ],
        out_specs=pl.BlockSpec((None, n_rows, tb), lambda i: (i, 0, 0)),
        scratch_shapes=[pltpu.VMEM((_TAPS_ROWS, w_lanes), jnp.float32)],
        compiler_params=pltpu.CompilerParams(
            dimension_semantics=("parallel",),
            vmem_limit_bytes=32 * 1024 * 1024,
        ),
    )(xw, params)

    # out[i, r, k] = probability for sample i*tb + k, logit r (r = c*l_final + j).
    return out.transpose(0, 2, 1).reshape(n_total, n_rows)[:n]


# -------------------- parameters --------------------

def fold_conv_bn(w, b, gamma, beta, mean, var, eps=1e-5):
    """Fold an eval-mode BatchNorm1d into Conv1d weight/bias (per out-channel)."""
    scale = gamma / jnp.sqrt(var + eps)
    return w * scale[:, None, None], (b - mean) * scale + beta


def init_params(key):
    """Deterministic synthetic parameters for the 8 ConvX blocks (torch layout)."""
    chans = [(ci, co) for _, ci, co, _, _ in _LAYER_CFG]
    weights, biases = [], []
    for (ci, co) in chans:
        key, kw, kb = jax.random.split(key, 3)
        bound = 1.0 / (ci * 3) ** 0.5
        w = jax.random.uniform(kw, (co, ci, 3), jnp.float32, -bound, bound)
        b = jax.random.uniform(kb, (co,), jnp.float32, -bound, bound)
        # eval-mode BN with default stats (gamma=1, beta=0, mean=0, var=1)
        w, b = fold_conv_bn(w, b, jnp.ones(co), jnp.zeros(co), jnp.zeros(co), jnp.ones(co))
        weights.append(w)
        biases.append(b)
    return weights, biases


def pack_params(weights, biases):
    """Pack all 8 conv layers into one (8, 32, 97) f32 array.

    params[k, :C_out, :3*C_in] = tap-packed weight ([o, t*C_in + c] = w[o, c, t]),
    params[k, :C_out, 96]      = bias.
    The 0.5 scale of the AvgPool feeding layers in _POOL_SCALE_FOLDED_INTO is
    folded into their weights here; the kernel skips it for those pools.
    """
    p = jnp.zeros((8, 32, 97), jnp.float32)
    for k, (w, b) in enumerate(zip(weights, biases)):
        if k in _POOL_SCALE_FOLDED_INTO:
            w = w * 0.5
        co, ci, _ = w.shape
        wp = jnp.transpose(w, (0, 2, 1)).reshape(co, 3 * ci)
        p = p.at[k, :co, :3 * ci].set(wp)
        p = p.at[k, :co, 96].set(b)
    return p


# -------------------- pure-JAX reference --------------------

def reference_forward(x, weights, biases):
    dn = ("NCH", "OIH", "NCH")

    def conv(h, w, b):
        y = lax.conv_general_dilated(h, w, window_strides=(1,), padding=((1, 1),),
                                     dimension_numbers=dn)
        return jnp.maximum(y + b[None, :, None], 0.0)

    def avg2(h):
        return 0.5 * (h[:, :, 0::2] + h[:, :, 1::2])

    h = conv(x, weights[0], biases[0])
    h = conv(h, weights[1], biases[1]); h = avg2(h)
    h = conv(h, weights[2], biases[2]); h = avg2(h)
    h = conv(h, weights[3], biases[3])
    h = conv(h, weights[4], biases[4]); h = avg2(h)
    h = conv(h, weights[5], biases[5]); h = h[:, :, 0::2]   # AvgPool1d(k=1, s=2)
    h = conv(h, weights[6], biases[6]); h = avg2(h)
    h = conv(h, weights[7], biases[7]); h = avg2(h)
    f = h.reshape(h.shape[0], -1)
    return jax.nn.softmax(f, axis=-1)


if __name__ == "__main__":
    key = jax.random.PRNGKey(0)
    kx, kp = jax.random.split(key)

    N, C_IN, L = 16, 1, 128                      # small demo shapes
    x = jax.random.normal(kx, (N, C_IN, L), jnp.float32)

    weights, biases = init_params(kp)
    params = pack_params(weights, biases)

    out = net_forward(x, params)                 # auto tb=8 -> 2 parallel grid steps
    out = jax.block_until_ready(out)

    assert out.shape == (N, 4), out.shape
    assert bool(jnp.all(jnp.isfinite(out)))
    row_sums = jnp.sum(out, axis=-1)
    assert bool(jnp.all(jnp.abs(row_sums - 1.0) < 1e-5)), row_sums

    ref = reference_forward(x, weights, biases)
    max_err = float(jnp.max(jnp.abs(out - ref)))
    assert max_err < 2e-2, f"kernel deviates from reference: {max_err}"

    print("KERNEL_OK")
</pallas_src>

<mosaic_0001>
module attributes {stable_mosaic.version = 11 : i64} {
  func.func @kernel(%arg0: i32, %arg1: memref<1x1024xf32, #tpu.memory_space<vmem>>, %arg2: memref<8x32x97xf32, #tpu.memory_space<vmem>>, %arg3: memref<1x4x8xf32, #tpu.memory_space<vmem>>, %arg4: memref<96x1024xf32, #tpu.memory_space<vmem>>) attributes {dimension_semantics = [#tpu.dimension_semantics<parallel>], iteration_bounds = array<i64: 2>, scalar_prefetch = 0 : i64, scratch_operands = 1 : i64, tpu.core_type = #tpu.core_type<tc>, window_params = [{transform_indices = @transform_0, window_bounds = array<i64: 1, 1024>}, {pipeline_mode = #tpu.pipeline_mode<synchronous>, transform_indices = @transform_1, window_bounds = array<i64: 8, 32, 97>}, {transform_indices = @transform_2, window_bounds = array<i64: 1, 4, 8>}]} {
    %0 = tpu.iota {dimensions = array<i32: 1>} : vector<1x1024xi32>
    %c8_i32 = arith.constant 8 : i32
    %1 = vector.broadcast %c8_i32 : i32 to vector<1x1024xi32>
    %2 = arith.cmpi slt, %0, %1 : vector<1x1024xi32>
    %cst = arith.constant 0.000000e+00 : f32
    %cst_0 = arith.constant 1.000000e+00 : f32
    %3 = vector.broadcast %cst : f32 to vector<1x1024xf32>
    %4 = vector.broadcast %cst_0 : f32 to vector<1x1024xf32>
    %5 = arith.select %2, %3, %4 : vector<1x1024xi1>, vector<1x1024xf32>
    %c1016_i32 = arith.constant 1016 : i32
    %6 = vector.broadcast %c1016_i32 : i32 to vector<1x1024xi32>
    %7 = arith.cmpi sge, %0, %6 : vector<1x1024xi32>
    %c1024_i32 = arith.constant 1024 : i32
    %8 = vector.broadcast %c1024_i32 : i32 to vector<1x1024xi32>
    %9 = arith.cmpi slt, %0, %8 : vector<1x1024xi32>
    %10 = arith.andi %7, %9 : vector<1x1024xi1>
    %cst_1 = arith.constant 0.000000e+00 : f32
    %cst_2 = arith.constant 1.000000e+00 : f32
    %11 = vector.broadcast %cst_1 : f32 to vector<1x1024xf32>
    %12 = vector.broadcast %cst_2 : f32 to vector<1x1024xf32>
    %13 = arith.select %10, %11, %12 : vector<1x1024xi1>, vector<1x1024xf32>
    %c1008_i32 = arith.constant 1008 : i32
    %14 = vector.broadcast %c1008_i32 : i32 to vector<1x1024xi32>
    %15 = arith.cmpi sge, %0, %14 : vector<1x1024xi32>
    %c1016_i32_3 = arith.constant 1016 : i32
    %16 = vector.broadcast %c1016_i32_3 : i32 to vector<1x1024xi32>
    %17 = arith.cmpi slt, %0, %16 : vector<1x1024xi32>
    %18 = arith.andi %15, %17 : vector<1x1024xi1>
    %cst_4 = arith.constant 0.000000e+00 : f32
    %cst_5 = arith.constant 1.000000e+00 : f32
    %19 = vector.broadcast %cst_4 : f32 to vector<1x1024xf32>
    %20 = vector.broadcast %cst_5 : f32 to vector<1x1024xf32>
    %21 = arith.select %18, %19, %20 : vector<1x1024xi1>, vector<1x1024xf32>
    %c992_i32 = arith.constant 992 : i32
    %22 = vector.broadcast %c992_i32 : i32 to vector<1x1024xi32>
    %23 = arith.cmpi sge, %0, %22 : vector<1x1024xi32>
    %c1000_i32 = arith.constant 1000 : i32
    %24 = vector.broadcast %c1000_i32 : i32 to vector<1x1024xi32>
    %25 = arith.cmpi slt, %0, %24 : vector<1x1024xi32>
    %26 = arith.andi %23, %25 : vector<1x1024xi1>
    %cst_6 = arith.constant 0.000000e+00 : f32
    %cst_7 = arith.constant 1.000000e+00 : f32
    %27 = vector.broadcast %cst_6 : f32 to vector<1x1024xf32>
    %28 = vector.broadcast %cst_7 : f32 to vector<1x1024xf32>
    %29 = arith.select %26, %27, %28 : vector<1x1024xi1>, vector<1x1024xf32>
    %c960_i32 = arith.constant 960 : i32
    %30 = vector.broadcast %c960_i32 : i32 to vector<1x1024xi32>
    %31 = arith.cmpi sge, %0, %30 : vector<1x1024xi32>
    %c968_i32 = arith.constant 968 : i32
    %32 = vector.broadcast %c968_i32 : i32 to vector<1x1024xi32>
    %33 = arith.cmpi slt, %0, %32 : vector<1x1024xi32>
    %34 = arith.andi %31, %33 : vector<1x1024xi1>
    %cst_8 = arith.constant 0.000000e+00 : f32
    %cst_9 = arith.constant 1.000000e+00 : f32
    %35 = vector.broadcast %cst_8 : f32 to vector<1x1024xf32>
    %36 = vector.broadcast %cst_9 : f32 to vector<1x1024xf32>
    %37 = arith.select %34, %35, %36 : vector<1x1024xi1>, vector<1x1024xf32>
    %c896_i32 = arith.constant 896 : i32
    %38 = vector.broadcast %c896_i32 : i32 to vector<1x1024xi32>
    %39 = arith.cmpi sge, %0, %38 : vector<1x1024xi32>
    %c904_i32 = arith.constant 904 : i32
    %40 = vector.broadcast %c904_i32 : i32 to vector<1x1024xi32>
    %41 = arith.cmpi slt, %0, %40 : vector<1x1024xi32>
    %42 = arith.andi %39, %41 : vector<1x1024xi1>
    %cst_10 = arith.constant 0.000000e+00 : f32
    %cst_11 = arith.constant 1.000000e+00 : f32
    %43 = vector.broadcast %cst_10 : f32 to vector<1x1024xf32>
    %44 = vector.broadcast %cst_11 : f32 to vector<1x1024xf32>
    %45 = arith.select %42, %43, %44 : vector<1x1024xi1>, vector<1x1024xf32>
    %c768_i32 = arith.constant 768 : i32
    %46 = vector.broadcast %c768_i32 : i32 to vector<1x1024xi32>
    %47 = arith.cmpi sge, %0, %46 : vector<1x1024xi32>
    %c776_i32 = arith.constant 776 : i32
    %48 = vector.broadcast %c776_i32 : i32 to vector<1x1024xi32>
    %49 = arith.cmpi slt, %0, %48 : vector<1x1024xi32>
    %50 = arith.andi %47, %49 : vector<1x1024xi1>
    %cst_12 = arith.constant 0.000000e+00 : f32
    %cst_13 = arith.constant 1.000000e+00 : f32
    %51 = vector.broadcast %cst_12 : f32 to vector<1x1024xf32>
    %52 = vector.broadcast %cst_13 : f32 to vector<1x1024xf32>
    %53 = arith.select %50, %51, %52 : vector<1x1024xi1>, vector<1x1024xf32>
    %c0 = arith.constant 0 : index
    %c0_14 = arith.constant 0 : index
    %54 = vector.load %arg1[%c0, %c0_14] : memref<1x1024xf32, #tpu.memory_space<vmem>>, vector<1x1024xf32>
    %c8_i32_15 = arith.constant 8 : i32
    %55 = tpu.dynamic_rotate %54 by %c8_i32_15 dim 1 : vector<1x1024xf32>, i32 -> vector<1x1024xf32>
    %56 = arith.mulf %55, %5 : vector<1x1024xf32>
    %c0_16 = arith.constant 0 : index
    %c0_17 = arith.constant 0 : index
    %57 = vector.load %arg4[%c0_16, %c0_17] : memref<96x1024xf32, #tpu.memory_space<vmem>>, vector<1x1024xf32>
    tpu.vector_store %arg4[%c0_16, %c0_17], %56 {strides = array<i32>} : memref<96x1024xf32, #tpu.memory_space<vmem>>, vector<1x1024xf32>,
    %c1 = arith.constant 1 : index
    %c0_18 = arith.constant 0 : index
    %58 = vector.load %arg4[%c1, %c0_18] : memref<96x1024xf32, #tpu.memory_space<vmem>>, vector<1x1024xf32>
    tpu.vector_store %arg4[%c1, %c0_18], %54 {strides = array<i32>} : memref<96x1024xf32, #tpu.memory_space<vmem>>, vector<1x1024xf32>,
    %c1016_i32_19 = arith.constant 1016 : i32
    %59 = tpu.dynamic_rotate %54 by %c1016_i32_19 dim 1 : vector<1x1024xf32>, i32 -> vector<1x1024xf32>
    %60 = arith.mulf %59, %13 : vector<1x1024xf32>
    %c2 = arith.constant 2 : index
    %c0_20 = arith.constant 0 : index
    %61 = vector.load %arg4[%c2, %c0_20] : memref<96x1024xf32, #tpu.memory_space<vmem>>, vector<1x1024xf32>
    tpu.vector_store %arg4[%c2, %c0_20], %60 {strides = array<i32>} : memref<96x1024xf32, #tpu.memory_space<vmem>>, vector<1x1024xf32>,
    %c0_21 = arith.constant 0 : index
    %c0_22 = arith.constant 0 : index
    %62 = vector.load %arg4[%c0_21, %c0_22] : memref<96x1024xf32, #tpu.memory_space<vmem>>, vector<3x1024xf32>
    %63 = arith.truncf %62 : vector<3x1024xf32> to vector<3x1024xbf16>
    %c0_23 = arith.constant 0 : index
    %c0_24 = arith.constant 0 : index
    %c0_25 = arith.constant 0 : index
    %64 = vector.load %arg2[%c0_23, %c0_24, %c0_25] : memref<8x32x97xf32, #tpu.memory_space<vmem>>, vector<1x32x97xf32>
    %65 = vector.shape_cast %64 : vector<1x32x97xf32> to vector<32x97xf32>
    %66 = vector.extract_strided_slice %65 {offsets = [0, 0], sizes = [4, 3], strides = [1, 1]} : vector<32x97xf32> to vector<4x3xf32>
    %67 = arith.truncf %66 : vector<4x3xf32> to vector<4x3xbf16>
    %68 = vector.extract_strided_slice %65 {offsets = [0, 96], sizes = [4, 1], strides = [1, 1]} : vector<32x97xf32> to vector<4x1xf32>
    %cst_26 = arith.constant dense<0.000000e+00> : vector<4x1024xf32>
    %69 = tpu.matmul %67, %63, %cst_26 {dimension_numbers = #tpu.dot_dimension_numbers<[1], [0], [0], [1], [0, 0, 1, 1], [], []>} : vector<4x3xbf16>, vector<3x1024xbf16>, vector<4x1024xf32> -> vector<4x1024xf32>
    %70 = vector.broadcast %68 : vector<4x1xf32> to vector<4x1024xf32>
    %71 = arith.addf %69, %70 : vector<4x1024xf32>
    %cst_27 = arith.constant 0.000000e+00 : f32
    %72 = vector.broadcast %cst_27 : f32 to vector<4x1024xf32>
    %73 = arith.maximumf %71, %72 : vector<4x1024xf32>
    %c8_i32_28 = arith.constant 8 : i32
    %74 = tpu.dynamic_rotate %73 by %c8_i32_28 dim 1 : vector<4x1024xf32>, i32 -> vector<4x1024xf32>
    %75 = vector.broadcast %5 : vector<1x1024xf32> to vector<4x1024xf32>
    %76 = arith.mulf %74, %75 : vector<4x1024xf32>
    %c0_29 = arith.constant 0 : index
    %c0_30 = arith.constant 0 : index
    %77 = vector.load %arg4[%c0_29, %c0_30] : memref<96x1024xf32, #tpu.memory_space<vmem>>, vector<4x1024xf32>
    tpu.vector_store %arg4[%c0_29, %c0_30], %76 {strides = array<i32>} : memref<96x1024xf32, #tpu.memory_space<vmem>>, vector<4x1024xf32>,
    %c4 = arith.constant 4 : index
    %c0_31 = arith.constant 0 : index
    %78 = vector.load %arg4[%c4, %c0_31] : memref<96x1024xf32, #tpu.memory_space<vmem>>, vector<4x1024xf32>
    tpu.vector_store %arg4[%c4, %c0_31], %73 {strides = array<i32>} : memref<96x1024xf32, #tpu.memory_space<vmem>>, vector<4x1024xf32>,
    %c1016_i32_32 = arith.constant 1016 : i32
    %79 = tpu.dynamic_rotate %73 by %c1016_i32_32 dim 1 : vector<4x1024xf32>, i32 -> vector<4x1024xf32>
    %80 = vector.broadcast %13 : vector<1x1024xf32> to vector<4x1024xf32>
    %81 = arith.mulf %79, %80 : vector<4x1024xf32>
    %c8 = arith.constant 8 : index
    %c0_33 = arith.constant 0 : index
    %82 = vector.load %arg4[%c8, %c0_33] : memref<96x1024xf32, #tpu.memory_space<vmem>>, vector<4x1024xf32>
    tpu.vector_store %arg4[%c8, %c0_33], %81 {strides = array<i32>} : memref<96x1024xf32, #tpu.memory_space<vmem>>, vector<4x1024xf32>,
    %c0_34 = arith.constant 0 : index
    %c0_35 = arith.constant 0 : index
    %83 = vector.load %arg4[%c0_34, %c0_35] : memref<96x1024xf32, #tpu.memory_space<vmem>>, vector<12x1024xf32>
    %84 = arith.truncf %83 : vector<12x1024xf32> to vector<12x1024xbf16>
    %c1_36 = arith.constant 1 : index
    %c0_37 = arith.constant 0 : index
    %c0_38 = arith.constant 0 : index
    %85 = vector.load %arg2[%c1_36, %c0_37, %c0_38] : memref<8x32x97xf32, #tpu.memory_space<vmem>>, vector<1x32x97xf32>
    %86 = vector.shape_cast %85 : vector<1x32x97xf32> to vector<32x97xf32>
    %87 = vector.extract_strided_slice %86 {offsets = [0, 0], sizes = [8, 12], strides = [1, 1]} : vector<32x97xf32> to vector<8x12xf32>
    %88 = arith.truncf %87 : vector<8x12xf32> to vector<8x12xbf16>
    %89 = vector.extract_strided_slice %86 {offsets = [0, 96], sizes = [8, 1], strides = [1, 1]} : vector<32x97xf32> to vector<8x1xf32>
    %cst_39 = arith.constant dense<0.000000e+00> : vector<8x1024xf32>
    %90 = tpu.matmul %88, %84, %cst_39 {dimension_numbers = #tpu.dot_dimension_numbers<[1], [0], [0], [1], [0, 0, 1, 1], [], []>} : vector<8x12xbf16>, vector<12x1024xbf16>, vector<8x1024xf32> -> vector<8x1024xf32>
    %91 = vector.broadcast %89 : vector<8x1xf32> to vector<8x1024xf32>
    %92 = arith.addf %90, %91 : vector<8x1024xf32>
    %cst_40 = arith.constant 0.000000e+00 : f32
    %93 = vector.broadcast %cst_40 : f32 to vector<8x1024xf32>
    %94 = arith.maximumf %92, %93 : vector<8x1024xf32>
    %c1016_i32_41 = arith.constant 1016 : i32
    %95 = tpu.dynamic_rotate %94 by %c1016_i32_41 dim 1 : vector<8x1024xf32>, i32 -> vector<8x1024xf32>
    %96 = arith.addf %94, %95 : vector<8x1024xf32>
    %c16_i32 = arith.constant 16 : i32
    %97 = tpu.dynamic_rotate %96 by %c16_i32 dim 1 : vector<8x1024xf32>, i32 -> vector<8x1024xf32>
    %98 = vector.broadcast %5 : vector<1x1024xf32> to vector<8x1024xf32>
    %99 = arith.mulf %97, %98 : vector<8x1024xf32>
    %c0_42 = arith.constant 0 : index
    %c0_43 = arith.constant 0 : index
    %100 = vector.load %arg4[%c0_42, %c0_43] : memref<96x1024xf32, #tpu.memory_space<vmem>>, vector<8x1024xf32>
    tpu.vector_store %arg4[%c0_42, %c0_43], %99 {strides = array<i32>} : memref<96x1024xf32, #tpu.memory_space<vmem>>, vector<8x1024xf32>,
    %c8_44 = arith.constant 8 : index
    %c0_45 = arith.constant 0 : index
    %101 = vector.load %arg4[%c8_44, %c0_45] : memref<96x1024xf32, #tpu.memory_space<vmem>>, vector<8x1024xf32>
    tpu.vector_store %arg4[%c8_44, %c0_45], %96 {strides = array<i32>} : memref<96x1024xf32, #tpu.memory_space<vmem>>, vector<8x1024xf32>,
    %c1008_i32_46 = arith.constant 1008 : i32
    %102 = tpu.dynamic_rotate %96 by %c1008_i32_46 dim 1 : vector<8x1024xf32>, i32 -> vector<8x1024xf32>
    %103 = vector.broadcast %21 : vector<1x1024xf32> to vector<8x1024xf32>
    %104 = arith.mulf %102, %103 : vector<8x1024xf32>
    %c16 = arith.constant 16 : index
    %c0_47 = arith.constant 0 : index
    %105 = vector.load %arg4[%c16, %c0_47] : memref<96x1024xf32, #tpu.memory_space<vmem>>, vector<8x1024xf32>
    tpu.vector_store %arg4[%c16, %c0_47], %104 {strides = array<i32>} : memref<96x1024xf32, #tpu.memory_space<vmem>>, vector<8x1024xf32>,
    %c0_48 = arith.constant 0 : index
    %c0_49 = arith.constant 0 : index
    %106 = vector.load %arg4[%c0_48, %c0_49] : memref<96x1024xf32, #tpu.memory_space<vmem>>, vector<24x1024xf32>
    %107 = arith.truncf %106 : vector<24x1024xf32> to vector<24x1024xbf16>
    %c2_50 = arith.constant 2 : index
    %c0_51 = arith.constant 0 : index
    %c0_52 = arith.constant 0 : index
    %108 = vector.load %arg2[%c2_50, %c0_51, %c0_52] : memref<8x32x97xf32, #tpu.memory_space<vmem>>, vector<1x32x97xf32>
    %109 = vector.shape_cast %108 : vector<1x32x97xf32> to vector<32x97xf32>
    %110 = vector.extract_strided_slice %109 {offsets = [0, 0], sizes = [16, 24], strides = [1, 1]} : vector<32x97xf32> to vector<16x24xf32>
    %111 = arith.truncf %110 : vector<16x24xf32> to vector<16x24xbf16>
    %112 = vector.extract_strided_slice %109 {offsets = [0, 96], sizes = [16, 1], strides = [1, 1]} : vector<32x97xf32> to vector<16x1xf32>
    %cst_53 = arith.constant dense<0.000000e+00> : vector<16x1024xf32>
    %113 = tpu.matmul %111, %107, %cst_53 {dimension_numbers = #tpu.dot_dimension_numbers<[1], [0], [0], [1], [0, 0, 1, 1], [], []>} : vector<16x24xbf16>, vector<24x1024xbf16>, vector<16x1024xf32> -> vector<16x1024xf32>
    %114 = vector.broadcast %112 : vector<16x1xf32> to vector<16x1024xf32>
    %115 = arith.addf %113, %114 : vector<16x1024xf32>
    %cst_54 = arith.constant 0.000000e+00 : f32
    %116 = vector.broadcast %cst_54 : f32 to vector<16x1024xf32>
    %117 = arith.maximumf %115, %116 : vector<16x1024xf32>
    %c1008_i32_55 = arith.constant 1008 : i32
    %118 = tpu.dynamic_rotate %117 by %c1008_i32_55 dim 1 : vector<16x1024xf32>, i32 -> vector<16x1024xf32>
    %119 = arith.addf %117, %118 : vector<16x1024xf32>
    %c32_i32 = arith.constant 32 : i32
    %120 = tpu.dynamic_rotate %119 by %c32_i32 dim 1 : vector<16x1024xf32>, i32 -> vector<16x1024xf32>
    %121 = vector.broadcast %5 : vector<1x1024xf32> to vector<16x1024xf32>
    %122 = arith.mulf %120, %121 : vector<16x1024xf32>
    %c0_56 = arith.constant 0 : index
    %c0_57 = arith.constant 0 : index
    %123 = vector.load %arg4[%c0_56, %c0_57] : memref<96x1024xf32, #tpu.memory_space<vmem>>, vector<16x1024xf32>
    tpu.vector_store %arg4[%c0_56, %c0_57], %122 {strides = array<i32>} : memref<96x1024xf32, #tpu.memory_space<vmem>>, vector<16x1024xf32>,
    %c16_58 = arith.constant 16 : index
    %c0_59 = arith.constant 0 : index
    %124 = vector.load %arg4[%c16_58, %c0_59] : memref<96x1024xf32, #tpu.memory_space<vmem>>, vector<16x1024xf32>
    tpu.vector_store %arg4[%c16_58, %c0_59], %119 {strides = array<i32>} : memref<96x1024xf32, #tpu.memory_space<vmem>>, vector<16x1024xf32>,
    %c992_i32_60 = arith.constant 992 : i32
    %125 = tpu.dynamic_rotate %119 by %c992_i32_60 dim 1 : vector<16x1024xf32>, i32 -> vector<16x1024xf32>
    %126 = vector.broadcast %29 : vector<1x1024xf32> to vector<16x1024xf32>
    %127 = arith.mulf %125, %126 : vector<16x1024xf32>
    %c32 = arith.constant 32 : index
    %c0_61 = arith.constant 0 : index
    %128 = vector.load %arg4[%c32, %c0_61] : memref<96x1024xf32, #tpu.memory_space<vmem>>, vector<16x1024xf32>
    tpu.vector_store %arg4[%c32, %c0_61], %127 {strides = array<i32>} : memref<96x1024xf32, #tpu.memory_space<vmem>>, vector<16x1024xf32>,
    %c0_62 = arith.constant 0 : index
    %c0_63 = arith.constant 0 : index
    %129 = vector.load %arg4[%c0_62, %c0_63] : memref<96x1024xf32, #tpu.memory_space<vmem>>, vector<48x1024xf32>
    %130 = arith.truncf %129 : vector<48x1024xf32> to vector<48x1024xbf16>
    %c3 = arith.constant 3 : index
    %c0_64 = arith.constant 0 : index
    %c0_65 = arith.constant 0 : index
    %131 = vector.load %arg2[%c3, %c0_64, %c0_65] : memref<8x32x97xf32, #tpu.memory_space<vmem>>, vector<1x32x97xf32>
    %132 = vector.shape_cast %131 : vector<1x32x97xf32> to vector<32x97xf32>
    %133 = vector.extract_strided_slice %132 {offsets = [0, 0], sizes = [32, 48], strides = [1, 1]} : vector<32x97xf32> to vector<32x48xf32>
    %134 = arith.truncf %133 : vector<32x48xf32> to vector<32x48xbf16>
    %135 = vector.extract_strided_slice %132 {offsets = [0, 96], sizes = [32, 1], strides = [1, 1]} : vector<32x97xf32> to vector<32x1xf32>
    %cst_66 = arith.constant dense<0.000000e+00> : vector<32x1024xf32>
    %136 = tpu.matmul %134, %130, %cst_66 {dimension_numbers = #tpu.dot_dimension_numbers<[1], [0], [0], [1], [0, 0, 1, 1], [], []>} : vector<32x48xbf16>, vector<48x1024xbf16>, vector<32x1024xf32> -> vector<32x1024xf32>
    %137 = vector.broadcast %135 : vector<32x1xf32> to vector<32x1024xf32>
    %138 = arith.addf %136, %137 : vector<32x1024xf32>
    %cst_67 = arith.constant 0.000000e+00 : f32
    %139 = vector.broadcast %cst_67 : f32 to vector<32x1024xf32>
    %140 = arith.maximumf %138, %139 : vector<32x1024xf32>
    %c32_i32_68 = arith.constant 32 : i32
    %141 = tpu.dynamic_rotate %140 by %c32_i32_68 dim 1 : vector<32x1024xf32>, i32 -> vector<32x1024xf32>
    %142 = vector.broadcast %5 : vector<1x1024xf32> to vector<32x1024xf32>
    %143 = arith.mulf %141, %142 : vector<32x1024xf32>
    %c0_69 = arith.constant 0 : index
    %c0_70 = arith.constant 0 : index
    %144 = vector.load %arg4[%c0_69, %c0_70] : memref<96x1024xf32, #tpu.memory_space<vmem>>, vector<32x1024xf32>
    tpu.vector_store %arg4[%c0_69, %c0_70], %143 {strides = array<i32>} : memref<96x1024xf32, #tpu.memory_space<vmem>>, vector<32x1024xf32>,
    %c32_71 = arith.constant 32 : index
    %c0_72 = arith.constant 0 : index
    %145 = vector.load %arg4[%c32_71, %c0_72] : memref<96x1024xf32, #tpu.memory_space<vmem>>, vector<32x1024xf32>
    tpu.vector_store %arg4[%c32_71, %c0_72], %140 {strides = array<i32>} : memref<96x1024xf32, #tpu.memory_space<vmem>>, vector<32x1024xf32>,
    %c992_i32_73 = arith.constant 992 : i32
    %146 = tpu.dynamic_rotate %140 by %c992_i32_73 dim 1 : vector<32x1024xf32>, i32 -> vector<32x1024xf32>
    %147 = vector.broadcast %29 : vector<1x1024xf32> to vector<32x1024xf32>
    %148 = arith.mulf %146, %147 : vector<32x1024xf32>
    %c64 = arith.constant 64 : index
    %c0_74 = arith.constant 0 : index
    %149 = vector.load %arg4[%c64, %c0_74] : memref<96x1024xf32, #tpu.memory_space<vmem>>, vector<32x1024xf32>
    tpu.vector_store %arg4[%c64, %c0_74], %148 {strides = array<i32>} : memref<96x1024xf32, #tpu.memory_space<vmem>>, vector<32x1024xf32>,
    %c0_75 = arith.constant 0 : index
    %c0_76 = arith.constant 0 : index
    %150 = vector.load %arg4[%c0_75, %c0_76] : memref<96x1024xf32, #tpu.memory_space<vmem>>, vector<96x1024xf32>
    %151 = arith.truncf %150 : vector<96x1024xf32> to vector<96x1024xbf16>
    %c4_77 = arith.constant 4 : index
    %c0_78 = arith.constant 0 : index
    %c0_79 = arith.constant 0 : index
    %152 = vector.load %arg2[%c4_77, %c0_78, %c0_79] : memref<8x32x97xf32, #tpu.memory_space<vmem>>, vector<1x32x97xf32>
    %153 = vector.shape_cast %152 : vector<1x32x97xf32> to vector<32x97xf32>
    %154 = vector.extract_strided_slice %153 {offsets = [0, 0], sizes = [16, 96], strides = [1, 1]} : vector<32x97xf32> to vector<16x96xf32>
    %155 = arith.truncf %154 : vector<16x96xf32> to vector<16x96xbf16>
    %156 = vector.extract_strided_slice %153 {offsets = [0, 96], sizes = [16, 1], strides = [1, 1]} : vector<32x97xf32> to vector<16x1xf32>
    %cst_80 = arith.constant dense<0.000000e+00> : vector<16x1024xf32>
    %157 = tpu.matmul %155, %151, %cst_80 {dimension_numbers = #tpu.dot_dimension_numbers<[1], [0], [0], [1], [0, 0, 1, 1], [], []>} : vector<16x96xbf16>, vector<96x1024xbf16>, vector<16x1024xf32> -> vector<16x1024xf32>
    %158 = vector.broadcast %156 : vector<16x1xf32> to vector<16x1024xf32>
    %159 = arith.addf %157, %158 : vector<16x1024xf32>
    %cst_81 = arith.constant 0.000000e+00 : f32
    %160 = vector.broadcast %cst_81 : f32 to vector<16x1024xf32>
    %161 = arith.maximumf %159, %160 : vector<16x1024xf32>
    %c992_i32_82 = arith.constant 992 : i32
    %162 = tpu.dynamic_rotate %161 by %c992_i32_82 dim 1 : vector<16x1024xf32>, i32 -> vector<16x1024xf32>
    %163 = arith.addf %161, %162 : vector<16x1024xf32>
    %c64_i32 = arith.constant 64 : i32
    %164 = tpu.dynamic_rotate %163 by %c64_i32 dim 1 : vector<16x1024xf32>, i32 -> vector<16x1024xf32>
    %165 = vector.broadcast %5 : vector<1x1024xf32> to vector<16x1024xf32>
    %166 = arith.mulf %164, %165 : vector<16x1024xf32>
    %c0_83 = arith.constant 0 : index
    %c0_84 = arith.constant 0 : index
    %167 = vector.load %arg4[%c0_83, %c0_84] : memref<96x1024xf32, #tpu.memory_space<vmem>>, vector<16x1024xf32>
    tpu.vector_store %arg4[%c0_83, %c0_84], %166 {strides = array<i32>} : memref<96x1024xf32, #tpu.memory_space<vmem>>, vector<16x1024xf32>,
    %c16_85 = arith.constant 16 : index
    %c0_86 = arith.constant 0 : index
    %168 = vector.load %arg4[%c16_85, %c0_86] : memref<96x1024xf32, #tpu.memory_space<vmem>>, vector<16x1024xf32>
    tpu.vector_store %arg4[%c16_85, %c0_86], %163 {strides = array<i32>} : memref<96x1024xf32, #tpu.memory_space<vmem>>, vector<16x1024xf32>,
    %c960_i32_87 = arith.constant 960 : i32
    %169 = tpu.dynamic_rotate %163 by %c960_i32_87 dim 1 : vector<16x1024xf32>, i32 -> vector<16x1024xf32>
    %170 = vector.broadcast %37 : vector<1x1024xf32> to vector<16x1024xf32>
    %171 = arith.mulf %169, %170 : vector<16x1024xf32>
    %c32_88 = arith.constant 32 : index
    %c0_89 = arith.constant 0 : index
    %172 = vector.load %arg4[%c32_88, %c0_89] : memref<96x1024xf32, #tpu.memory_space<vmem>>, vector<16x1024xf32>
    tpu.vector_store %arg4[%c32_88, %c0_89], %171 {strides = array<i32>} : memref<96x1024xf32, #tpu.memory_space<vmem>>, vector<16x1024xf32>,
    %c0_90 = arith.constant 0 : index
    %c0_91 = arith.constant 0 : index
    %173 = vector.load %arg4[%c0_90, %c0_91] : memref<96x1024xf32, #tpu.memory_space<vmem>>, vector<48x1024xf32>
    %174 = arith.truncf %173 : vector<48x1024xf32> to vector<48x1024xbf16>
    %c5 = arith.constant 5 : index
    %c0_92 = arith.constant 0 : index
    %c0_93 = arith.constant 0 : index
    %175 = vector.load %arg2[%c5, %c0_92, %c0_93] : memref<8x32x97xf32, #tpu.memory_space<vmem>>, vector<1x32x97xf32>
    %176 = vector.shape_cast %175 : vector<1x32x97xf32> to vector<32x97xf32>
    %177 = vector.extract_strided_slice %176 {offsets = [0, 0], sizes = [8, 48], strides = [1, 1]} : vector<32x97xf32> to vector<8x48xf32>
    %178 = arith.truncf %177 : vector<8x48xf32> to vector<8x48xbf16>
    %179 = vector.extract_strided_slice %176 {offsets = [0, 96], sizes = [8, 1], strides = [1, 1]} : vector<32x97xf32> to vector<8x1xf32>
    %cst_94 = arith.constant dense<0.000000e+00> : vector<8x1024xf32>
    %180 = tpu.matmul %178, %174, %cst_94 {dimension_numbers = #tpu.dot_dimension_numbers<[1], [0], [0], [1], [0, 0, 1, 1], [], []>} : vector<8x48xbf16>, vector<48x1024xbf16>, vector<8x1024xf32> -> vector<8x1024xf32>
    %181 = vector.broadcast %179 : vector<8x1xf32> to vector<8x1024xf32>
    %182 = arith.addf %180, %181 : vector<8x1024xf32>
    %cst_95 = arith.constant 0.000000e+00 : f32
    %183 = vector.broadcast %cst_95 : f32 to vector<8x1024xf32>
    %184 = arith.maximumf %182, %183 : vector<8x1024xf32>
    %c128_i32 = arith.constant 128 : i32
    %185 = tpu.dynamic_rotate %184 by %c128_i32 dim 1 : vector<8x1024xf32>, i32 -> vector<8x1024xf32>
    %186 = vector.broadcast %5 : vector<1x1024xf32> to vector<8x1024xf32>
    %187 = arith.mulf %185, %186 : vector<8x1024xf32>
    %c0_96 = arith.constant 0 : index
    %c0_97 = arith.constant 0 : index
    %188 = vector.load %arg4[%c0_96, %c0_97] : memref<96x1024xf32, #tpu.memory_space<vmem>>, vector<8x1024xf32>
    tpu.vector_store %arg4[%c0_96, %c0_97], %187 {strides = array<i32>} : memref<96x1024xf32, #tpu.memory_space<vmem>>, vector<8x1024xf32>,
    %c8_98 = arith.constant 8 : index
    %c0_99 = arith.constant 0 : index
    %189 = vector.load %arg4[%c8_98, %c0_99] : memref<96x1024xf32, #tpu.memory_space<vmem>>, vector<8x1024xf32>
    tpu.vector_store %arg4[%c8_98, %c0_99], %184 {strides = array<i32>} : memref<96x1024xf32, #tpu.memory_space<vmem>>, vector<8x1024xf32>,
    %c896_i32_100 = arith.constant 896 : i32
    %190 = tpu.dynamic_rotate %184 by %c896_i32_100 dim 1 : vector<8x1024xf32>, i32 -> vector<8x1024xf32>
    %191 = vector.broadcast %45 : vector<1x1024xf32> to vector<8x1024xf32>
    %192 = arith.mulf %190, %191 : vector<8x1024xf32>
    %c16_101 = arith.constant 16 : index
    %c0_102 = arith.constant 0 : index
    %193 = vector.load %arg4[%c16_101, %c0_102] : memref<96x1024xf32, #tpu.memory_space<vmem>>, vector<8x1024xf32>
    tpu.vector_store %arg4[%c16_101, %c0_102], %192 {strides = array<i32>} : memref<96x1024xf32, #tpu.memory_space<vmem>>, vector<8x1024xf32>,
    %c0_103 = arith.constant 0 : index
    %c0_104 = arith.constant 0 : index
    %194 = vector.load %arg4[%c0_103, %c0_104] : memref<96x1024xf32, #tpu.memory_space<vmem>>, vector<24x1024xf32>
    %195 = arith.truncf %194 : vector<24x1024xf32> to vector<24x1024xbf16>
    %c6 = arith.constant 6 : index
    %c0_105 = arith.constant 0 : index
    %c0_106 = arith.constant 0 : index
    %196 = vector.load %arg2[%c6, %c0_105, %c0_106] : memref<8x32x97xf32, #tpu.memory_space<vmem>>, vector<1x32x97xf32>
    %197 = vector.shape_cast %196 : vector<1x32x97xf32> to vector<32x97xf32>
    %198 = vector.extract_strided_slice %197 {offsets = [0, 0], sizes = [4, 24], strides = [1, 1]} : vector<32x97xf32> to vector<4x24xf32>
    %199 = arith.truncf %198 : vector<4x24xf32> to vector<4x24xbf16>
    %200 = vector.extract_strided_slice %197 {offsets = [0, 96], sizes = [4, 1], strides = [1, 1]} : vector<32x97xf32> to vector<4x1xf32>
    %cst_107 = arith.constant dense<0.000000e+00> : vector<4x1024xf32>
    %201 = tpu.matmul %199, %195, %cst_107 {dimension_numbers = #tpu.dot_dimension_numbers<[1], [0], [0], [1], [0, 0, 1, 1], [], []>} : vector<4x24xbf16>, vector<24x1024xbf16>, vector<4x1024xf32> -> vector<4x1024xf32>
    %202 = vector.broadcast %200 : vector<4x1xf32> to vector<4x1024xf32>
    %203 = arith.addf %201, %202 : vector<4x1024xf32>
    %cst_108 = arith.constant 0.000000e+00 : f32
    %204 = vector.broadcast %cst_108 : f32 to vector<4x1024xf32>
    %205 = arith.maximumf %203, %204 : vector<4x1024xf32>
    %c896_i32_109 = arith.constant 896 : i32
    %206 = tpu.dynamic_rotate %205 by %c896_i32_109 dim 1 : vector<4x1024xf32>, i32 -> vector<4x1024xf32>
    %207 = arith.addf %205, %206 : vector<4x1024xf32>
    %c256_i32 = arith.constant 256 : i32
    %208 = tpu.dynamic_rotate %207 by %c256_i32 dim 1 : vector<4x1024xf32>, i32 -> vector<4x1024xf32>
    %209 = vector.broadcast %5 : vector<1x1024xf32> to vector<4x1024xf32>
    %210 = arith.mulf %208, %209 : vector<4x1024xf32>
    %c0_110 = arith.constant 0 : index
    %c0_111 = arith.constant 0 : index
    %211 = vector.load %arg4[%c0_110, %c0_111] : memref<96x1024xf32, #tpu.memory_space<vmem>>, vector<4x1024xf32>
    tpu.vector_store %arg4[%c0_110, %c0_111], %210 {strides = array<i32>} : memref<96x1024xf32, #tpu.memory_space<vmem>>, vector<4x1024xf32>,
    %c4_112 = arith.constant 4 : index
    %c0_113 = arith.constant 0 : index
    %212 = vector.load %arg4[%c4_112, %c0_113] : memref<96x1024xf32, #tpu.memory_space<vmem>>, vector<4x1024xf32>
    tpu.vector_store %arg4[%c4_112, %c0_113], %207 {strides = array<i32>} : memref<96x1024xf32, #tpu.memory_space<vmem>>, vector<4x1024xf32>,
    %c768_i32_114 = arith.constant 768 : i32
    %213 = tpu.dynamic_rotate %207 by %c768_i32_114 dim 1 : vector<4x1024xf32>, i32 -> vector<4x1024xf32>
    %214 = vector.broadcast %53 : vector<1x1024xf32> to vector<4x1024xf32>
    %215 = arith.mulf %213, %214 : vector<4x1024xf32>
    %c8_115 = arith.constant 8 : index
    %c0_116 = arith.constant 0 : index
    %216 = vector.load %arg4[%c8_115, %c0_116] : memref<96x1024xf32, #tpu.memory_space<vmem>>, vector<4x1024xf32>
    tpu.vector_store %arg4[%c8_115, %c0_116], %215 {strides = array<i32>} : memref<96x1024xf32, #tpu.memory_space<vmem>>, vector<4x1024xf32>,
    %c0_117 = arith.constant 0 : index
    %c0_118 = arith.constant 0 : index
    %217 = vector.load %arg4[%c0_117, %c0_118] : memref<96x1024xf32, #tpu.memory_space<vmem>>, vector<12x1024xf32>
    %218 = arith.truncf %217 : vector<12x1024xf32> to vector<12x1024xbf16>
    %c7 = arith.constant 7 : index
    %c0_119 = arith.constant 0 : index
    %c0_120 = arith.constant 0 : index
    %219 = vector.load %arg2[%c7, %c0_119, %c0_120] : memref<8x32x97xf32, #tpu.memory_space<vmem>>, vector<1x32x97xf32>
    %220 = vector.shape_cast %219 : vector<1x32x97xf32> to vector<32x97xf32>
    %221 = vector.extract_strided_slice %220 {offsets = [0, 0], sizes = [2, 12], strides = [1, 1]} : vector<32x97xf32> to vector<2x12xf32>
    %222 = arith.truncf %221 : vector<2x12xf32> to vector<2x12xbf16>
    %223 = vector.extract_strided_slice %220 {offsets = [0, 96], sizes = [2, 1], strides = [1, 1]} : vector<32x97xf32> to vector<2x1xf32>
    %cst_121 = arith.constant dense<0.000000e+00> : vector<2x1024xf32>
    %224 = tpu.matmul %222, %218, %cst_121 {dimension_numbers = #tpu.dot_dimension_numbers<[1], [0], [0], [1], [0, 0, 1, 1], [], []>} : vector<2x12xbf16>, vector<12x1024xbf16>, vector<2x1024xf32> -> vector<2x1024xf32>
    %225 = vector.broadcast %223 : vector<2x1xf32> to vector<2x1024xf32>
    %226 = arith.addf %224, %225 : vector<2x1024xf32>
    %cst_122 = arith.constant 0.000000e+00 : f32
    %227 = vector.broadcast %cst_122 : f32 to vector<2x1024xf32>
    %228 = arith.maximumf %226, %227 : vector<2x1024xf32>
    %c768_i32_123 = arith.constant 768 : i32
    %229 = tpu.dynamic_rotate %228 by %c768_i32_123 dim 1 : vector<2x1024xf32>, i32 -> vector<2x1024xf32>
    %230 = arith.addf %228, %229 : vector<2x1024xf32>
    %cst_124 = arith.constant 5.000000e-01 : f32
    %231 = vector.broadcast %cst_124 : f32 to vector<2x1024xf32>
    %232 = arith.mulf %231, %230 : vector<2x1024xf32>
    %233 = vector.extract_strided_slice %232 {offsets = [0, 0], sizes = [1, 8], strides = [1, 1]} : vector<2x1024xf32> to vector<1x8xf32>
    %234 = vector.extract_strided_slice %232 {offsets = [0, 512], sizes = [1, 8], strides = [1, 1]} : vector<2x1024xf32> to vector<1x8xf32>
    %235 = vector.extract_strided_slice %232 {offsets = [1, 0], sizes = [1, 8], strides = [1, 1]} : vector<2x1024xf32> to vector<1x8xf32>
    %236 = vector.extract_strided_slice %232 {offsets = [1, 512], sizes = [1, 8], strides = [1, 1]} : vector<2x1024xf32> to vector<1x8xf32>
    %237 = tpu.concatenate %233, %234, %235, %236 in 0 : vector<1x8xf32>, vector<1x8xf32>, vector<1x8xf32>, vector<1x8xf32> -> vector<4x8xf32>
    %cst_125 = arith.constant dense<0xFF800000> : vector<8xf32>
    %238 = vector.multi_reduction <maximumf>, %237, %cst_125 [0] : vector<4x8xf32> to vector<8xf32>
    %239 = vector.shape_cast %238 : vector<8xf32> to vector<1x8xf32>
    %240 = vector.broadcast %239 : vector<1x8xf32> to vector<4x8xf32>
    %241 = arith.subf %237, %240 : vector<4x8xf32>
    %242 = math.exp %241 : vector<4x8xf32>
    %cst_126 = arith.constant dense<0.000000e+00> : vector<8xf32>
    %243 = vector.multi_reduction <add>, %242, %cst_126 [0] : vector<4x8xf32> to vector<8xf32>
    %244 = vector.shape_cast %243 : vector<8xf32> to vector<1x8xf32>
    %245 = vector.broadcast %244 : vector<1x8xf32> to vector<4x8xf32>
    %246 = arith.divf %242, %245 : vector<4x8xf32>
    %c0_127 = arith.constant 0 : index
    %c0_128 = arith.constant 0 : index
    %c0_129 = arith.constant 0 : index
    %247 = vector.load %arg3[%c0_127, %c0_128, %c0_129] : memref<1x4x8xf32, #tpu.memory_space<vmem>>, vector<1x4x8xf32>
    %248 = vector.shape_cast %247 : vector<1x4x8xf32> to vector<4x8xf32>
    %249 = vector.shape_cast %246 : vector<4x8xf32> to vector<1x4x8xf32>
    tpu.vector_store %arg3[%c0_127, %c0_128, %c0_129], %249 {strides = array<i32>} : memref<1x4x8xf32, #tpu.memory_space<vmem>>, vector<1x4x8xf32>,
    return
  }
  func.func @transform_0(%arg0: i32) -> (i32, i32) {
    %c0_i32 = arith.constant 0 : i32
    %c0_i32_0 = arith.constant 0 : i32
    return %c0_i32, %arg0 : i32, i32
  }
  func.func @transform_1(%arg0: i32) -> (i32, i32, i32) {
    %c0_i32 = arith.constant 0 : i32
    %c0_i32_0 = arith.constant 0 : i32
    %c0_i32_1 = arith.constant 0 : i32
    %c0_i32_2 = arith.constant 0 : i32
    return %c0_i32, %c0_i32_0, %c0_i32_1 : i32, i32, i32
  }
  func.func @transform_2(%arg0: i32) -> (i32, i32, i32) {
    %c0_i32 = arith.constant 0 : i32
    %c0_i32_0 = arith.constant 0 : i32
    %c0_i32_1 = arith.constant 0 : i32
    return %arg0, %c0_i32, %c0_i32_0 : i32, i32, i32
  }
}

</mosaic_0001>

<bundles_post_ra>
// kernel: tpu_custom_call.1
= control target key start
LH: loop header
LB: loop body
LE: loop exit
PB: predicated region body
PF: predicated region fallthrough
CT: control target
= control target key end

     0   :  { %7 = vsyncpa [#allocation4], 0  ;;  %s5549_s0 = inlined_call_operand.hbm [shape: f32[1,2048], index: 0, kind: input, shape index: {}]   ;;  %s5550_s1 = inlined_call_operand.hbm [shape: f32[8,32,97], index: 1, kind: input, shape index: {}]   ;;  %s5551_s2 = inlined_call_operand.hbm [shape: f32[2,4,8], index: 2, kind: output, shape index: {}]  }
   0x1   :  { %9 = vsyncpa [#allocation4 + $0x1], 0 }
   0x2   :  { %10 = vsyncpa [#allocation7], 0 }
   0x3   :  { %11 = vsyncpa [#allocation5], 0 }
   0x4   :  { %13 = vsyncpa [#allocation5 + $0x1], 0  ;;  %s3739_s9 = smov 0   ;;  %s3741_s10 = smov 0  }
   0x5   :  { %s3743_s11 = smov 0   ;;  %s3745_s12 = smov 0  }
   0x6 LB: > { %s108_s15 = sshll.u32 %s5550_s1, 4  ;;  %s3763_s16 = sadd.s32 4294967295, %s3709_s12   ;;  %s3709_s12 = sphi %s3745_s12, %s5640_s12   ;;  %s3705_s11 = sphi %s3743_s11, %s5639_s11   ;;  %s3701_s10 = sphi %s3741_s10, %s5638_s10   ;;  %s3697_s9 = sphi %s3739_s9, %s5637_s9   ;;  %s109_s15 = int_to_ptr.hbm [resolvable:$true] %s108_s15 }
   0x7   : > { %p3422_p0 = scmp.ge.s32.totalorder %s3709_s12, 1  ;;  %p40_p1 = scmp.eq.s32.totalorder %s3763_s16, 0 }
   0x8   : > { %p97_p2 = scmp.lt.s32.totalorder %s3709_s12, 3  ;;  %s3711_s18 = smov [#allocation6]  }
   0x9   : > { %s110_s19 = sshll.u32 %s3711_s18, 4  ;;  %s3712_s20 = smov 128   ;;  %s111_s19 = int_to_ptr.vmem [resolvable:$true] %s110_s19 }
   0xa   : > { %p3768_p3 = pnand %p3422_p0, %p97_p2  ;;  %s3713_s21 = smov 8  }
   0xb   : > { %s3421_s22 = sadd.s32 4294967294, %s3709_s12   ;;  %s3779_s23 = sadd.s32 1, %s3709_s12  }
   0xc   : > { %p3511_p4 = pneg %p3768_p3  ;;  %s26_s24 = sadd.s32 1, %s3705_s11 }
   0xd   : > { %s23_s25 = ssub.s32 %s3709_s12, %s3779_s23  ;;  %p33_p7 = scmp.ne.s32.totalorder %s3705_s11, %s3701_s10 }
   0xe   : > { %p3512_p6 = pnand %p3511_p4, %p40_p1  ;;  %p24_p8 = scmp.eq.s32.totalorder %s23_s25, 0 }
   0xf   : > { %p34_p9 = scmp.eq.s32.totalorder %s3709_s12, 0  ;;  %p39_p10 = scmp.ne.s32.totalorder %s3701_s10, %s3697_s9 }
  0x10   : > { %3514 = dma.hbm_to_vmem [thread:$0]  (!%p3512_p6), %s109_s15, 4096, %s111_s19, [#allocation7], %s3712_s20, %s3712_s20, %s3713_s21  }
  0x11   : > { %p84_p11 = scmp.eq.s32.totalorder %s3763_s16, 1  ;;  %p3795_p12 = por %p40_p1, %p39_p10 }
  0x12   : > { %s3791_s26 = scalar_select %p24_p8, %s3705_s11, %s26_s24  }
  0x13   : > { %p3799_p13 = por %p84_p11, %p33_p7  ;;  %p90_p0 = scmp.eq.s32.totalorder %s3421_s22, 1 }
  0x14   : > { %p35_p2 = por %p34_p9, %p33_p7  ;;  %s124_s29 = sand.u32 1, %s3705_s11  }
  0x15   : > { %p3804_p4 = por %p90_p0, %p39_p10  ;;  %p3524_p6 = scmp.lt.s32.totalorder %s3709_s12, 2 }
  0x16   : > { %s3425_s3 = sshll.u32 %s124_s29, 3  ;;  %s3426_s4 = sshll.u32 %s3709_s12, 3 }
  0x17   : > { %s132_s7 = scalar_lea.hbm %s5549_s0, %s3426_s4  ;;  %s128_s13 = scalar_lea.vmem [#allocation3], %s3425_s3 }
  0x18   : > { %s134_s8 = sshll.u32 %s132_s7, 4  ;;  %s136_s14 = sshll.u32 %s128_s13, 4  ;;  %s135_s8 = int_to_ptr.hbm [resolvable:$true] %s134_s8  ;;  %s137_s14 = int_to_ptr.vmem [resolvable:$true] %s136_s14 }
  0x19   : > { %p3813_p8 = pnand %p3524_p6, %p35_p2  ;;  %s125_s18 = scalar_lea.sflag [#allocation4], %s124_s29 }
  0x1a   : > { %s3609_s19 = sshra.s32 %s135_s8, 4  ;;  %s3616_s24 = scalar_lea.hbm %s5549_s0, 16  ;;  %s3610_s19 = int_to_ptr.hbm [resolvable:$true] %s3609_s19 }
  0x1b   : > { %s3611_s20 = scalar_lea.hbm %s3610_s19, 8  ;;  %p3613_p9 = pneg %p3813_p8 }
  0x1c   : > { %p3612_p7 = scmp.ne.s32.totalorder %s3610_s19, %s3611_s20  ;;  %p3617_p0 = scmp.lt.s32.totalorder %s3610_s19, %s5549_s0 }
  0x1d   : > { %p3618_p2 = scmp.lt.s32.totalorder %s3616_s24, %s3611_s20 }
  0x1e   : > { %p3614_p10 = pnand %p3613_p9, %p3612_p7 }
  0x1f   : > { %p3619_p6 = por %p3618_p2, %p3617_p0 }
  0x20   : > { %p3615_p11 = pneg %p3614_p10 }
  0x22   : > { %p3620_p5 = pnand %p3619_p6, %p3615_p11 }
  0x24   : > { %3623 = shalt.err (!%p3620_p5)
}
  0x25   : > { %3518 = dma.hbm_to_vmem [thread:$0]  (!%p3813_p8), %s135_s8, 128, %s137_s14, %s125_s18  }
  0x26   : > { %145 = sbr.rel (%p3768_p3) target bundleno = 2693 (0xa85), region = 28 }
  0x2b   : > { %s3830_s29 = sand.u32 1, %s3701_s10  }
  0x2c   : > { %s3428_s4 = sshll.u32 %s3830_s29, 3  ;;  %s148_s5 = scalar_lea.sflag [#allocation4], %s3830_s29 }
  0x2d   : > { %s151_s6 = scalar_lea.vmem [#allocation3], %s3428_s4 }
  0x2e   : > { %3684 = dma.done.wait (%p3795_p12), %s148_s5, 128  }
  0x2f   : > { %3686 = vsyncadd (%p3795_p12), %s148_s5, 4294967168 }
  0x30   : > { %3688 = dma.done.wait (%p40_p1), [#allocation7], 4096  }
  0x31   : > { %3690 = vsyncadd (%p40_p1), [#allocation7], 4294963200  ;;  %v397_v0 = vld [vmem:[%s151_s6] sm:$0xff]  ;;  %s3714_s17 = smov 8   ;;  %s3715_s7 = smov 120   ;;  %v180_v15 = vlaneseq  ;;  %vm464_vm1 = vcmask 1042434  }
  0x32   : > { %v399_v1 = vperm.slane %v397_v0, 0  ;;  %480 = vst [vmem:[#allocation2 + $0x1] ss:$8 sm:$0xf] %v397_v0  ;;  %v401_v2 = vperm.slane %v397_v0, 2  ;;  %v400_v3 = vperm.slane %v397_v0, 1 }
  0x33   : > { %481 = vst [vmem:[#allocation2 + $0x1] ss:$8 sm:$0xf0] %v397_v0  ;;  %v406_v4 = vperm.slane %v397_v0, 7  ;;  %v402_v5 = vperm.slane %v397_v0, 3  ;;  %v404_v6 = vperm.slane %v397_v0, 5 }
  0x34   : > { %415 = vrot.lane.b32.xlu1 %v399_v1, %s3714_s17  ;;  %482 = vrot.lane.b32.xlu0 %v399_v1, %s3715_s7  ;;  %v403_v7 = vperm.slane %v397_v0, 4  ;;  %v405_v8 = vperm.slane %v397_v0, 6  ;;  %v3862_v16 = vand.u32 127, %v180_v15  ;;  %v5552_v25 = vmov 1.0   ;;  %v557_v51 = vld [vmem:[#allocation6] sm:$0xff]  ;;  %s3719_s27 = smov 112  }
  0x35   : > { %419 = vrot.lane.b32.xlu2 %v401_v2, %s3714_s17  ;;  %vm468_vm2 = vcmask 1044484   ;;  %vm462_vm3 = vcmask 1040384   ;;  %vm466_vm4 = vcmask 1041408   ;;  %vm470_vm5 = vcmask 1046534   ;;  %s3720_s8 = smov 16   ;;  %s3721_s13 = smov 32  }
  0x36   : > { %vm189_vm0 = vcmp.lt.s32.totalorder %v3862_v16, 8  ;;  %vm472_vm6 = vcmask 1045508   ;;  %v3888_v41 = vadd.s32 896, %v3862_v16  ;;  %vm474_vm7 = vcmask 1043456   ;;  %s3722_s14 = smov 96   ;;  %s3723_s15 = smov 64  }
  0x37   : > { %v3878_v26 = vsel %vm189_vm0, 0.0, %v5552_v25  ;;  %vm498_vm9 = vcmp.lt.s32.totalorder %v3862_v16, 120  ;;  %v3717_v52 = vmov 96   ;;  %vm564_vm10 = vcmask 23552   ;;  %s3430_s18 = sshll.u32 %s3830_s29, 2  ;;  %s3500_s19 = sshll.u32 %s3763_s16, 2 }
  0x38   : > { %5581 = vst [vmem:[#allocation12_spill] sm:$0xff] %v3888_v41  ;;  %vm212_vm8 = vcmp.ge.s32.totalorder %v3888_v41, 1016  ;;  %3572 = vset.pattern.permute.xlu1 %v3717_v52  ;;  %3573 = vset.pattern.permute.xlu0 %v3717_v52  ;;  %vm854_vm11 = vcmask 1045504   ;;  %vm850_vm12 = vcmask 97280   ;;  %vm1088_vm13 = vcmp.lt.s32.totalorder %v3862_v16, 112  ;;  %s3336_s22 = scalar_lea.hbm %s5551_s2, %s3500_s19  ;;  %s177_s24 = scalar_lea.vmem [#allocation8], %s3430_s18 }
  0x39   : > { %3574 = vset.pattern.permute.xlu2 %v3717_v52  ;;  %v3900_v54 = vsel %vm212_vm8, 0.0, %v5552_v25  ;;  %vm244_vm14 = vcmp.ge.s32.totalorder %v3888_v41, 1008  ;;  %vm252_vm15 = vcmp.lt.s32.totalorder %v3888_v41, 1016  ;;  %vm1664_vm8 = vcmask 392192   ;;  %s3338_s25 = sshll.u32 %s177_s24, 4  ;;  %s3340_s3 = sshll.u32 %s3336_s22, 4  ;;  %s3339_s25 = int_to_ptr.vmem [resolvable:$true] %s3338_s25  ;;  %s3341_s3 = int_to_ptr.hbm [resolvable:$true] %s3340_s3 }
  0x3a   : > { %s3326_s16 = scalar_lea.sflag [#allocation5], %s3830_s29  ;;  %s3653_s4 = sshra.s32 %s3341_s3, 4  ;;  %s3654_s4 = int_to_ptr.hbm [resolvable:$true] %s3653_s4 }
  0x3b   : > { %s3655_s5 = scalar_lea.hbm %s3654_s4, 4  ;;  %p3660_p12 = scmp.lt.s32.totalorder %s3654_s4, %s5551_s2 }
  0x3c   : > { %417 = vrot.lane.b32.xlu1 %v400_v3, %s3714_s17  ;;  %496 = vrot.lane.b32.xlu0 %v406_v4, %s3715_s7  ;;  %p3656_p1 = scmp.ne.s32.totalorder %s3654_s4, %s3655_s5 }
  0x3d   : > { %421 = vrot.lane.b32.xlu2 %v402_v5, %s3714_s17 }
  0x3e   : > { %p3657_p3 = pnand %p3656_p1, %p3799_p13 }
  0x40   : > { %p3658_p5 = pneg %p3657_p3 }
  0x44   : > { %425 = vrot.lane.b32.xlu1 %v404_v6, %s3714_s17  ;;  %423 = vrot.lane.b32.xlu0 %v403_v7, %s3714_s17 }
  0x45   : > { %427 = vrot.lane.b32.xlu2 %v405_v8, %s3714_s17 }
  0x4c   : > { %484 = vrot.lane.b32.xlu1 %v400_v3, %s3715_s7  ;;  %429 = vrot.lane.b32.xlu0 %v406_v4, %s3714_s17 }
  0x4d   : > { %486 = vrot.lane.b32.xlu2 %v401_v2, %s3715_s7 }
  0x54   : > { %490 = vrot.lane.b32.xlu1 %v403_v7, %s3715_s7  ;;  %488 = vrot.lane.b32.xlu0 %v402_v5, %s3715_s7 }
  0x55   : > { %492 = vrot.lane.b32.xlu2 %v404_v6, %s3715_s7 }
  0x5c   : > { %494 = vrot.lane.b32.xlu0 %v405_v8, %s3715_s7  ;;  %561 = vperm.xlu1 %3572, %v557_v51  }
  0x8f   : > { %v420_v9 = vpop.permute.xlu2 %419 }
  0x97   : > { %v422_v12 = vpop.permute.xlu2 %421 }
  0x98   : > { %v435_v20 = vsel %vm189_vm0, %v420_v9, %v422_v12 }
  0x99   : > { %v457_v27 = vrot.slane %v435_v20, 5 }
  0x9f   : > { %v428_v17 = vpop.permute.xlu2 %427 }
  0xa6   : > { %v416_v10 = vpop.permute.xlu1 %415  ;;  %v3858_v11 = vpop.permute.xlu0 %482 }
  0xa7   : > { %v487_v38 = vpop.permute.xlu2 %486 }
  0xae   : > { %v418_v13 = vpop.permute.xlu1 %417  ;;  %v3860_v14 = vpop.permute.xlu0 %496 }
  0xaf   : > { %v436_v21 = vsel %vm189_vm0, %v418_v13, %v420_v9  ;;  %v437_v28 = vsel %vm189_vm0, %v416_v10, %v418_v13  ;;  %v493_v53 = vpop.permute.xlu2 %492  ;;  %v506_v55 = vsel %vm498_vm9, %v3860_v14, %v3858_v11 }
  0xb0   : > { %v456_v29 = vrot.slane %v436_v21, 6  ;;  %v455_v37 = vrot.slane %v437_v28, 7  ;;  %v514_v60 = vmul.f32 %v506_v55, %v3900_v54 }
  0xb2   : > { %v465_v42 = vsel %vm464_vm1, %v456_v29, %v457_v27  ;;  %v529_v4 = vrot.slane %v514_v60, 1 }
  0xb6   : > { %v426_v18 = vpop.permute.xlu1 %425  ;;  %v424_v19 = vpop.permute.xlu0 %423 }
  0xb7   : > { %v432_v22 = vsel %vm189_vm0, %v426_v18, %v428_v17  ;;  %v433_v23 = vsel %vm189_vm0, %v424_v19, %v426_v18  ;;  %v434_v24 = vsel %vm189_vm0, %v422_v12, %v424_v19 }
  0xb8   : > { %v460_v30 = vrot.slane %v432_v22, 2  ;;  %v458_v31 = vrot.slane %v434_v24, 4  ;;  %v459_v32 = vrot.slane %v433_v23, 3 }
  0xba   : > { %v469_v43 = vsel %vm468_vm2, %v458_v31, %v459_v32 }
  0xbe   : > { %v485_v33 = vpop.permute.xlu1 %484  ;;  %v430_v34 = vpop.permute.xlu0 %429 }
  0xbf   : > { %v431_v35 = vsel %vm189_vm0, %v428_v17, %v430_v34  ;;  %v438_v36 = vsel %vm189_vm0, %v430_v34, %v416_v10  ;;  %v504_v58 = vsel %vm498_vm9, %v485_v33, %v487_v38  ;;  %v505_v8 = vsel %vm498_vm9, %v3858_v11, %v485_v33 }
  0xc0   : > { %v439_v39 = vmul.f32 %v438_v36, %v3878_v26  ;;  %v461_v40 = vrot.slane %v431_v35, 1  ;;  %v523_v63 = vrot.slane %v504_v58, 7  ;;  %v3718_v17 = vmov 65535  }
  0xc1   : > { %v568_v18 = vsel %vm462_vm3, 4294967295, %v3718_v17 }
  0xc2   : > { %v463_v44 = vsel %vm462_vm3, %v439_v39, %v455_v37  ;;  %v471_v45 = vsel %vm470_vm5, %v460_v30, %v461_v40  ;;  %v530_v9 = vsel %vm462_vm3, %v505_v8, %v523_v63  ;;  %v569_v19 = vsel %vm466_vm4, %v568_v18, 0 }
  0xc3   : > { %v467_v46 = vsel %vm466_vm4, %v463_v44, %v465_v42  ;;  %v473_v47 = vsel %vm472_vm6, %v469_v43, %v471_v45  ;;  %v558_v45 = vpack.c.bf16 %v557_v51, %v557_v51 }
  0xc4   : > { %v475_v48 = vsel %vm474_vm7, %v467_v46, %v473_v47 }
  0xc5   : > { %477 = vst [vmem:[#allocation2] ss:$8 sm:$0xf] %v475_v48 }
  0xc6   : > { %478 = vst [vmem:[#allocation2] ss:$8 sm:$0xf0] %v475_v48  ;;  %v491_v49 = vpop.permute.xlu1 %490  ;;  %v489_v50 = vpop.permute.xlu0 %488 }
  0xc7   : > { %v502_v56 = vsel %vm498_vm9, %v489_v50, %v491_v49  ;;  %v503_v57 = vsel %vm498_vm9, %v487_v38, %v489_v50  ;;  %v501_v59 = vsel %vm498_vm9, %v491_v49, %v493_v53 }
  0xc8   : > { %v524_v61 = vrot.slane %v503_v57, 6  ;;  %v525_v62 = vrot.slane %v502_v56, 5  ;;  %v526_v0 = vrot.slane %v501_v59, 4 }
  0xca   : > { %v531_v5 = vsel %vm464_vm1, %v524_v61, %v525_v62  ;;  %vm1039_vm1 = vcmp.lt.s32.totalorder %v3862_v16, 16 }
  0xcb   : > { %v532_v13 = vsel %vm466_vm4, %v530_v9, %v531_v5 }
  0xce   : > { %v495_v1 = vpop.permute.xlu0 %494  ;;  %v562_v47 = vpop.permute.xlu1 %561 }
  0xcf   : > { %v499_v2 = vsel %vm498_vm9, %v495_v1, %v3860_v14  ;;  %v500_v3 = vsel %vm498_vm9, %v493_v53, %v495_v1 }
  0xd0   : > { %v527_v6 = vrot.slane %v500_v3, 3  ;;  %v528_v7 = vrot.slane %v499_v2, 2 }
  0xd2   : > { %v533_v10 = vsel %vm468_vm2, %v526_v0, %v527_v6  ;;  %v534_v12 = vsel %vm470_vm5, %v528_v7, %v529_v4  ;;  %vm1167_vm2 = vcmask 195584   ;;  %vm1516_vm5 = vcmp.lt.s32.totalorder %v3862_v16, 96 }
  0xd3   : > { %v535_v14 = vsel %vm472_vm6, %v533_v10, %v534_v12  ;;  %vm1419_vm6 = vcmp.lt.s32.totalorder %v3862_v16, 32 }
  0xd4   : > { %v536_v15 = vsel %vm474_vm7, %v532_v13, %v535_v14 }
  0xd5   : > { %539 = vst [vmem:[#allocation2 + $0x2] ss:$8 sm:$0xf] %v536_v15 }
  0xd6   : > { %540 = vst [vmem:[#allocation2 + $0x2] ss:$8 sm:$0xf0] %v536_v15 }
  0xdc   : > { %v541_v11 = vld [vmem:[#allocation2] sm:$0x7]  ;;  %v542_v20 = vld [vmem:[#allocation2 + $0x8] sm:$0x7]  ;;  %v543_v21 = vld [vmem:[#allocation2 + $0x10] sm:$0x7] }
  0xdd   : > { %v549_v22 = vpack.c.bf16 %v541_v11, %v541_v11  ;;  %v550_v23 = vpack.c.bf16 %v542_v20, %v542_v20  ;;  %v551_v24 = vpack.c.bf16 %v543_v21, %v543_v21  ;;  %v544_v27 = vld [vmem:[#allocation2 + $0x18] sm:$0x7]  ;;  %v545_v28 = vld [vmem:[#allocation2 + $0x20] sm:$0x7]  ;;  %v546_v29 = vld [vmem:[#allocation2 + $0x28] sm:$0x7] }
  0xde   : > { %v552_v30 = vpack.c.bf16 %v544_v27, %v544_v27  ;;  %v553_v31 = vpack.c.bf16 %v545_v28, %v545_v28  ;;  %v554_v32 = vpack.c.bf16 %v546_v29, %v546_v29  ;;  %v547_v33 = vld [vmem:[#allocation2 + $0x30] sm:$0x7]  ;;  %v548_v34 = vld [vmem:[#allocation2 + $0x38] sm:$0x7] }
  0xdf   : > { %v571_v35 = vand.u32 %v569_v19, %v549_v22  ;;  %v574_v36 = vand.u32 %v569_v19, %v550_v23  ;;  %v577_v37 = vand.u32 %v569_v19, %v551_v24  ;;  %v555_v38 = vpack.c.bf16 %v547_v33, %v547_v33 }
  0xe0   : > { %v580_v39 = vand.u32 %v569_v19, %v552_v30  ;;  %v583_v40 = vand.u32 %v569_v19, %v553_v31  ;;  %v586_v42 = vand.u32 %v569_v19, %v554_v32  ;;  %v556_v43 = vpack.c.bf16 %v548_v34, %v548_v34 }
  0xe1   : > { %601 = vmatpush.bf16.msra.mxu0 %v571_v35  ;;  %614 = vmatpush.bf16.msra.mxu1 %v574_v36  ;;  %v589_v44 = vand.u32 %v569_v19, %v555_v38 }
  0xe2   : > { %627 = vmatpush.bf16.msra.mxu2 %v577_v37  ;;  %640 = vmatpush.bf16.msra.mxu3 %v580_v39  ;;  %v592_v46 = vand.u32 %v569_v19, %v556_v43  ;;  %v843_v37 = vld [vmem:[#allocation6 + $0x20] sm:$0xff] }
  0xe4   : > { %3431 = vmatmul.msk.bf16.vlgmr.msra.gmra.mxu0 %vm564_vm10, %v558_v45  ;;  %3432 = vmatmul.msk.bf16.vlgmr.msra.gmra.mxu1 %vm564_vm10, %v558_v45 }
  0xe5   : > { %653 = vmatpush.bf16.msrb.mxu0 %v583_v40  ;;  %666 = vmatpush.bf16.msrb.mxu1 %v586_v42 }
  0xe6   : > { %679 = vmatpush.bf16.msrb.mxu2 %v589_v44  ;;  %692 = vmatpush.bf16.msrb.mxu3 %v592_v46 }
  0xe7   : > { %3433 = vmatmul.msk.bf16.vlgmr.msra.gmra.mxu2 %vm564_vm10, %v558_v45  ;;  %3434 = vmatmul.msk.bf16.vlgmr.msra.gmra.mxu3 %vm564_vm10, %v558_v45 }
  0xf4   : > { %3435 = vmatmul.msk.bf16.vlgmr.msrb.gmra.mxu0 %vm564_vm10, %v558_v45  ;;  %3436 = vmatmul.msk.bf16.vlgmr.msrb.gmra.mxu1 %vm564_vm10, %v558_v45 }
  0xf7   : > { %3437 = vmatmul.msk.bf16.vlgmr.msrb.gmra.mxu2 %vm564_vm10, %v558_v45  ;;  %3438 = vmatmul.msk.bf16.vlgmr.msrb.gmra.mxu3 %vm564_vm10, %v558_v45  ;;  %vm284_vm10 = vcmp.lt.s32.totalorder %v3888_v41, 1000 }
 0x161   : > { %v603_v48 = vpop.f32.mrf.mxu0  ;;  %v616_v49 = vpop.f32.mrf.mxu1 }
 0x162   : > { %v604_v50 = vadd.f32 %v603_v48, %v562_v47  ;;  %v617_v51 = vadd.f32 %v616_v49, %v562_v47 }
 0x164   : > { %v698_v52 = vmax.f32 %v604_v50, 0.0  ;;  %v699_v53 = vmax.f32 %v617_v51, 0.0  ;;  %v3966_v50 = vpack.c.bf16 %v843_v37, %v843_v37 }
 0x166   : > { %v754_v55 = vrot.slane %v698_v52, 4  ;;  %v755_v56 = vrot.slane %v699_v53, 4  ;;  %780 = vrot.lane.b32.xlu0 %v699_v53, %s3715_s7  ;;  %708 = vrot.lane.b32.xlu1 %v699_v53, %s3714_s17 }
 0x167   : > { %706 = vrot.lane.b32.xlu2 %v698_v52, %s3714_s17 }
 0x168   : > { %770 = vst [vmem:[#allocation2] sm:$0xf0] %v754_v55 }
 0x169   : > { %771 = vst [vmem:[#allocation2 + $0x8] sm:$0xf0] %v755_v56  ;;  %v605_v61 = vpop.f32.mrf.mxu0  ;;  %v618_v62 = vpop.f32.mrf.mxu1 }
 0x16a   : > { %v629_v57 = vpop.f32.mrf.mxu2  ;;  %v642_v58 = vpop.f32.mrf.mxu3 }
 0x16b   : > { %v630_v59 = vadd.f32 %v629_v57, %v562_v47  ;;  %v643_v60 = vadd.f32 %v642_v58, %v562_v47 }
 0x16d   : > { %v700_v63 = vmax.f32 %v630_v59, 0.0  ;;  %v701_v0 = vmax.f32 %v643_v60, 0.0 }
 0x16f   : > { %v756_v1 = vrot.slane %v700_v63, 4  ;;  %v757_v2 = vrot.slane %v701_v0, 4  ;;  %782 = vrot.lane.b32.xlu1 %v700_v63, %s3715_s7  ;;  %778 = vrot.lane.b32.xlu2 %v698_v52, %s3715_s7 }
 0x171   : > { %772 = vst [vmem:[#allocation2 + $0x10] sm:$0xf0] %v756_v1  ;;  %v655_v5 = vpop.f32.mrf.mxu0  ;;  %v668_v6 = vpop.f32.mrf.mxu1 }
 0x172   : > { %773 = vst [vmem:[#allocation2 + $0x18] sm:$0xf0] %v757_v2  ;;  %v631_v3 = vpop.f32.mrf.mxu2  ;;  %v644_v4 = vpop.f32.mrf.mxu3  ;;  %v656_v7 = vadd.f32 %v655_v5, %v562_v47  ;;  %v669_v8 = vadd.f32 %v668_v6, %v562_v47 }
 0x174   : > { %v702_v9 = vmax.f32 %v656_v7, 0.0  ;;  %v703_v10 = vmax.f32 %v669_v8, 0.0 }
 0x176   : > { %v758_v12 = vrot.slane %v702_v9, 4  ;;  %v759_v13 = vrot.slane %v703_v10, 4 }
 0x177   : > { %784 = vrot.lane.b32.xlu1 %v701_v0, %s3715_s7  ;;  %710 = vrot.lane.b32.xlu2 %v700_v63, %s3714_s17 }
 0x178   : > { %774 = vst [vmem:[#allocation2 + $0x20] sm:$0xf0] %v758_v12 }
 0x179   : > { %775 = vst [vmem:[#allocation2 + $0x28] sm:$0xf0] %v759_v13  ;;  %v657_v19 = vpop.f32.mrf.mxu0  ;;  %v670_v11 = vpop.f32.mrf.mxu1 }
 0x17a   : > { %v681_v14 = vpop.f32.mrf.mxu2  ;;  %v694_v15 = vpop.f32.mrf.mxu3 }
 0x17b   : > { %v682_v17 = vadd.f32 %v681_v14, %v562_v47  ;;  %v695_v18 = vadd.f32 %v694_v15, %v562_v47 }
 0x17d   : > { %v704_v20 = vmax.f32 %v682_v17, 0.0  ;;  %v705_v21 = vmax.f32 %v695_v18, 0.0 }
 0x17f   : > { %v760_v22 = vrot.slane %v704_v20, 4  ;;  %v761_v23 = vrot.slane %v705_v21, 4  ;;  %720 = vrot.lane.b32.xlu0 %v705_v21, %s3714_s17  ;;  %716 = vrot.lane.b32.xlu1 %v703_v10, %s3714_s17 }
 0x180   : > { %786 = vrot.lane.b32.xlu2 %v702_v9, %s3715_s7 }
 0x181   : > { %776 = vst [vmem:[#allocation2 + $0x30] sm:$0xf0] %v760_v22 }
 0x182   : > { %777 = vst [vmem:[#allocation2 + $0x38] sm:$0xf0] %v761_v23  ;;  %v696_v24 = vpop.f32.mrf.mxu3  ;;  %v683_v27 = vpop.f32.mrf.mxu2 }
 0x187   : > { %712 = vrot.lane.b32.xlu0 %v701_v0, %s3714_s17  ;;  %792 = vrot.lane.b32.xlu1 %v705_v21, %s3715_s7 }
 0x188   : > { %788 = vrot.lane.b32.xlu2 %v703_v10, %s3715_s7 }
 0x18f   : > { %714 = vrot.lane.b32.xlu0 %v702_v9, %s3714_s17 }
 0x190   : > { %718 = vrot.lane.b32.xlu2 %v704_v20, %s3714_s17 }
 0x197   : > { %790 = vrot.lane.b32.xlu0 %v704_v20, %s3715_s7 }
 0x19f   : > { %847 = vperm.xlu0 %3573, %v843_v37  }
 0x1c1   : > { %v707_v28 = vpop.permute.xlu2 %706 }
 0x1c9   : > { %v779_v29 = vpop.permute.xlu2 %778 }
 0x1d1   : > { %v711_v30 = vpop.permute.xlu2 %710 }
 0x1d8   : > { %v781_v31 = vpop.permute.xlu0 %780  ;;  %v709_v32 = vpop.permute.xlu1 %708 }
 0x1d9   : > { %v800_v33 = vsel %vm498_vm9, %v779_v29, %v781_v31  ;;  %v727_v34 = vsel %vm189_vm0, %v709_v32, %v711_v30  ;;  %v728_v35 = vsel %vm189_vm0, %v707_v28, %v709_v32 }
 0x1da   : > { %v787_v36 = vpop.permute.xlu2 %786  ;;  %810 = vst [vmem:[#allocation2 + $0x40] sm:$0xf] %v800_v33 }
 0x1db   : > { %739 = vst [vmem:[#allocation2 + $0x8] sm:$0xf] %v728_v35 }
 0x1dc   : > { %740 = vst [vmem:[#allocation2 + $0x10] sm:$0xf] %v727_v34 }
 0x1e1   : > { %v783_v38 = vpop.permute.xlu1 %782  ;;  %v826_v5 = vld [vmem:[#allocation2 + $0x40] sm:$0xf] }
 0x1e2   : > { %v799_v39 = vsel %vm498_vm9, %v781_v31, %v783_v38  ;;  %v3956_v40 = vpop.permute.xlu2 %788  ;;  %v819_v46 = vld [vmem:[#allocation2 + $0x8] sm:$0xff] }
 0x1e3   : > { %811 = vst [vmem:[#allocation2 + $0x48] sm:$0xf] %v799_v39  ;;  %v796_v42 = vsel %vm498_vm9, %v787_v36, %v3956_v40  ;;  %v820_v59 = vld [vmem:[#allocation2 + $0x10] sm:$0xff] }
 0x1e4   : > { %814 = vst [vmem:[#allocation2 + $0x60] sm:$0xf] %v796_v42 }
 0x1e9   : > { %v785_v43 = vpop.permute.xlu1 %784 }
 0x1ea   : > { %v797_v44 = vsel %vm498_vm9, %v785_v43, %v787_v36  ;;  %v798_v45 = vsel %vm498_vm9, %v783_v38, %v785_v43  ;;  %v827_v47 = vld [vmem:[#allocation2 + $0x48] sm:$0xf]  ;;  %v719_v51 = vpop.permute.xlu2 %718 }
 0x1eb   : > { %812 = vst [vmem:[#allocation2 + $0x50] sm:$0xf] %v798_v45  ;;  %v835_v48 = vpack.c.bf16 %v827_v47, %v819_v46  ;;  %v830_v23 = vld [vmem:[#allocation2 + $0x60] sm:$0xf] }
 0x1ec   : > { %813 = vst [vmem:[#allocation2 + $0x58] sm:$0xf] %v797_v44 }
 0x1ed   : > { %v859_v49 = vsel %vm854_vm11, %v835_v48, 0 }
 0x1ee   : > { %899 = vmatpush.bf16.msra.mxu1 %v859_v49 }
 0x1f1   : > { %v721_v52 = vpop.permute.xlu0 %720  ;;  %v717_v56 = vpop.permute.xlu1 %716  ;;  %3440 = vmatmul.msk.bf16.vlgmr.msra.gmra.mxu1 %vm850_vm12, %v3966_v50 }
 0x1f2   : > { %v722_v53 = vsel %vm189_vm0, %v719_v51, %v721_v52  ;;  %v729_v55 = vsel %vm189_vm0, %v721_v52, %v707_v28  ;;  %v723_v58 = vsel %vm189_vm0, %v717_v56, %v719_v51  ;;  %v828_v60 = vld [vmem:[#allocation2 + $0x50] sm:$0xf] }
 0x1f3   : > { %v730_v57 = vmul.f32 %v729_v55, %v3878_v26  ;;  %745 = vst [vmem:[#allocation2 + $0x38] sm:$0xf] %v722_v53  ;;  %v836_v61 = vpack.c.bf16 %v828_v60, %v820_v59  ;;  %v829_v13 = vld [vmem:[#allocation2 + $0x58] sm:$0xf] }
 0x1f4   : > { %744 = vst [vmem:[#allocation2 + $0x30] sm:$0xf] %v723_v58 }
 0x1f5   : > { %738 = vst [vmem:[#allocation2] sm:$0xf] %v730_v57  ;;  %v862_v62 = vsel %vm854_vm11, %v836_v61, 0 }
 0x1f6   : > { %912 = vmatpush.bf16.msra.mxu2 %v862_v62 }
 0x1f9   : > { %v713_v63 = vpop.permute.xlu0 %712  ;;  %v793_v1 = vpop.permute.xlu1 %792  ;;  %3441 = vmatmul.msk.bf16.vlgmr.msra.gmra.mxu2 %vm850_vm12, %v3966_v50 }
 0x1fa   : > { %v726_v0 = vsel %vm189_vm0, %v711_v30, %v713_v63  ;;  %v801_v2 = vsel %vm498_vm9, %v793_v1, %v779_v29  ;;  %v825_v15 = vld [vmem:[#allocation2 + $0x38] sm:$0xff] }
 0x1fb   : > { %741 = vst [vmem:[#allocation2 + $0x18] sm:$0xf] %v726_v0  ;;  %v809_v3 = vmul.f32 %v801_v2, %v3900_v54  ;;  %v824_v31 = vld [vmem:[#allocation2 + $0x30] sm:$0xff] }
 0x1fc   : > { %v818_v4 = vld [vmem:[#allocation2] sm:$0xff] }
 0x1fd   : > { %v834_v6 = vpack.c.bf16 %v826_v5, %v818_v4  ;;  %817 = vst [vmem:[#allocation2 + $0x78] sm:$0xf] %v809_v3 }
 0x1ff   : > { %v856_v7 = vsel %vm854_vm11, %v834_v6, 0 }
 0x200   : > { %886 = vmatpush.bf16.msra.mxu0 %v856_v7 }
 0x201   : > { %v715_v8 = vpop.permute.xlu0 %714 }
 0x202   : > { %v724_v9 = vsel %vm189_vm0, %v715_v8, %v717_v56  ;;  %v725_v10 = vsel %vm189_vm0, %v713_v63, %v715_v8  ;;  %v821_v12 = vld [vmem:[#allocation2 + $0x18] sm:$0xff]  ;;  %vm260_vm0 = vmand %vm244_vm14, %vm252_vm15  ;;  %vm2365_vm14 = vcmask 785408   ;;  %vm2593_vm15 = vcmp.lt.s32.totalorder %v3862_v16, 64 }
 0x203   : > { %742 = vst [vmem:[#allocation2 + $0x20] sm:$0xf] %v725_v10  ;;  %3439 = vmatmul.msk.bf16.vlgmr.msra.gmra.mxu0 %vm850_vm12, %v3966_v50  ;;  %v837_v54 = vpack.c.bf16 %v829_v13, %v821_v12 }
 0x204   : > { %743 = vst [vmem:[#allocation2 + $0x28] sm:$0xf] %v724_v9  ;;  %v833_v17 = vld [vmem:[#allocation2 + $0x78] sm:$0xf] }
 0x205   : > { %v865_v14 = vsel %vm854_vm11, %v837_v54, 0  ;;  %v841_v18 = vpack.c.bf16 %v833_v17, %v825_v15 }
 0x206   : > { %925 = vmatpush.bf16.msra.mxu3 %v865_v14 }
 0x207   : > { %v877_v19 = vsel %vm854_vm11, %v841_v18, 0 }
 0x209   : > { %v791_v11 = vpop.permute.xlu0 %790  ;;  %3442 = vmatmul.msk.bf16.vlgmr.msra.gmra.mxu3 %vm850_vm12, %v3966_v50 }
 0x20a   : > { %v794_v20 = vsel %vm498_vm9, %v791_v11, %v793_v1  ;;  %v795_v21 = vsel %vm498_vm9, %v3956_v40, %v791_v11  ;;  %977 = vmatpush.bf16.msrb.mxu3 %v877_v19  ;;  %v822_v22 = vld [vmem:[#allocation2 + $0x20] sm:$0xff] }
 0x20b   : > { %815 = vst [vmem:[#allocation2 + $0x68] sm:$0xf] %v795_v21  ;;  %v838_v24 = vpack.c.bf16 %v830_v23, %v822_v22  ;;  %v823_v28 = vld [vmem:[#allocation2 + $0x28] sm:$0xff]  ;;  %v1154_v21 = vld [vmem:[#allocation6 + $0x40] sm:$0xff]  ;;  %v1155_v22 = vld [vmem:[#allocation6 + $0x48] sm:$0xff] }
 0x20c   : > { %816 = vst [vmem:[#allocation2 + $0x70] sm:$0xf] %v794_v20  ;;  %v4045_v23 = vpack.c.bf16 %v1155_v22, %v1154_v21 }
 0x20d   : > { %v868_v27 = vsel %vm854_vm11, %v838_v24, 0 }
 0x20e   : > { %938 = vmatpush.bf16.msrb.mxu0 %v868_v27 }
 0x211   : > { %v848_v39 = vpop.permute.xlu0 %847 }
 0x212   : > { %v831_v29 = vld [vmem:[#allocation2 + $0x68] sm:$0xf] }
 0x213   : > { %3443 = vmatmul.msk.bf16.vlgmr.msrb.gmra.mxu0 %vm850_vm12, %v3966_v50  ;;  %v839_v30 = vpack.c.bf16 %v831_v29, %v823_v28  ;;  %v832_v32 = vld [vmem:[#allocation2 + $0x70] sm:$0xf] }
 0x214   : > { %v840_v33 = vpack.c.bf16 %v832_v32, %v824_v31 }
 0x215   : > { %v871_v34 = vsel %vm854_vm11, %v839_v30, 0 }
 0x216   : > { %951 = vmatpush.bf16.msrb.mxu1 %v871_v34  ;;  %v874_v35 = vsel %vm854_vm11, %v840_v33, 0 }
 0x217   : > { %964 = vmatpush.bf16.msrb.mxu2 %v874_v35 }
 0x219   : > { %3444 = vmatmul.msk.bf16.vlgmr.msrb.gmra.mxu1 %vm850_vm12, %v3966_v50  ;;  %3446 = vmatmul.msk.bf16.vlgmr.msrb.gmra.mxu3 %vm850_vm12, %v3966_v50 }
 0x21a   : > { %3445 = vmatmul.msk.bf16.vlgmr.msrb.gmra.mxu2 %vm850_vm12, %v3966_v50 }
 0x26e   : > { %v901_v36 = vpop.f32.mrf.mxu1 }
 0x26f   : > { %v902_v62 = vadd.f32 %v901_v36, %v848_v39 }
 0x271   : > { %v984_v3 = vmax.f32 %v902_v62, 0.0 }
 0x276   : > { %v903_v37 = vpop.f32.mrf.mxu1 }
 0x27c   : > { %v914_v38 = vpop.f32.mrf.mxu2 }
 0x27d   : > { %v915_v55 = vadd.f32 %v914_v38, %v848_v39 }
 0x27f   : > { %v985_v59 = vmax.f32 %v915_v55, 0.0 }
 0x280   : > { %v888_v40 = vpop.f32.mrf.mxu0 }
 0x281   : > { %v889_v42 = vadd.f32 %v888_v40, %v848_v39 }
 0x283   : > { %v983_v43 = vmax.f32 %v889_v42, 0.0 }
 0x284   : > { %v916_v44 = vpop.f32.mrf.mxu2 }
 0x285   : > { %991 = vrot.lane.b32.xlu0 %v983_v43, %s3715_s7 }
 0x288   : > { %v890_v45 = vpop.f32.mrf.mxu0 }
 0x28c   : > { %v927_v46 = vpop.f32.mrf.mxu3 }
 0x28d   : > { %v928_v47 = vadd.f32 %v927_v46, %v848_v39 }
 0x28f   : > { %v986_v48 = vmax.f32 %v928_v47, 0.0 }
 0x290   : > { %v940_v49 = vpop.f32.mrf.mxu0 }
 0x291   : > { %v941_v51 = vadd.f32 %v940_v49, %v848_v39  ;;  %997 = vrot.lane.b32.xlu1 %v986_v48, %s3715_s7 }
 0x293   : > { %v987_v52 = vmax.f32 %v941_v51, 0.0 }
 0x294   : > { %v929_v50 = vpop.f32.mrf.mxu3 }
 0x295   : > { %999 = vrot.lane.b32.xlu2 %v987_v52, %s3715_s7 }
 0x296   : > { %v953_v53 = vpop.f32.mrf.mxu1 }
 0x297   : > { %v954_v56 = vadd.f32 %v953_v53, %v848_v39  ;;  %v268_v53 = vsel %vm260_vm0, 0.0, %v5552_v25 }
 0x298   : > { %v942_v57 = vpop.f32.mrf.mxu0 }
 0x299   : > { %v988_v58 = vmax.f32 %v954_v56, 0.0 }
 0x29b   : > { %1001 = vrot.lane.b32.xlu1 %v988_v58, %s3715_s7 }
 0x29c   : > { %v979_v60 = vpop.f32.mrf.mxu3 }
 0x29d   : > { %v966_v61 = vpop.f32.mrf.mxu2  ;;  %995 = vrot.lane.b32.xlu2 %v985_v59, %s3715_s7  ;;  %v980_v1 = vadd.f32 %v979_v60, %v848_v39 }
 0x29e   : > { %v967_v63 = vadd.f32 %v966_v61, %v848_v39  ;;  %v955_v0 = vpop.f32.mrf.mxu1 }
 0x29f   : > { %v990_v4 = vmax.f32 %v980_v1, 0.0 }
 0x2a0   : > { %v989_v2 = vmax.f32 %v967_v63, 0.0 }
 0x2a2   : > { %1003 = vrot.lane.b32.xlu0 %v989_v2, %s3715_s7 }
 0x2a3   : > { %993 = vrot.lane.b32.xlu1 %v984_v3, %s3715_s7 }
 0x2a4   : > { %v981_v5 = vpop.f32.mrf.mxu3 }
 0x2a5   : > { %1005 = vrot.lane.b32.xlu2 %v990_v4, %s3715_s7  ;;  %v968_v6 = vpop.f32.mrf.mxu2  ;;  %s3659_s7 = scalar_lea.hbm %s5551_s2, 8 }
 0x2a6   : > { %p3661_p8 = scmp.lt.s32.totalorder %s3659_s7, %s3655_s5 }
 0x2a8   : > { %p3662_p7 = por %p3661_p8, %p3660_p12 }
 0x2aa   : > { %p3663_p9 = pnand %p3662_p7, %p3658_p5 }
 0x2ef   : > { %v1000_v7 = vpop.permute.xlu2 %999 }
 0x2f7   : > { %v996_v8 = vpop.permute.xlu2 %995  ;;  %v992_v15 = vpop.permute.xlu0 %991 }
 0x2ff   : > { %v1006_v29 = vpop.permute.xlu2 %1005 }
 0x300   : > { %v1014_v31 = vsel %vm498_vm9, %v1006_v29, %v992_v15 }
 0x301   : > { %v4063_v33 = vadd.f32 %v1014_v31, %v990_v4 }
 0x303   : > { %v998_v9 = vpop.permute.xlu1 %997 }
 0x304   : > { %v1011_v10 = vsel %vm498_vm9, %v996_v8, %v998_v9  ;;  %v1010_v13 = vsel %vm498_vm9, %v998_v9, %v1000_v7 }
 0x305   : > { %v4022_v12 = vadd.f32 %v1011_v10, %v985_v59  ;;  %v4028_v14 = vadd.f32 %v1010_v13, %v986_v48 }
 0x307   : > { %1076 = vrot.lane.b32.xlu1 %v4022_v12, %s3719_s27 }
 0x30d   : > { %v1002_v54 = vpop.permute.xlu1 %1001 }
 0x30e   : > { %v1009_v24 = vsel %vm498_vm9, %v1000_v7, %v1002_v54 }
 0x30f   : > { %1078 = vrot.lane.b32.xlu1 %v4028_v14, %s3719_s27  ;;  %v4050_v28 = vadd.f32 %v1009_v24, %v987_v52 }
 0x314   : > { %v1004_v27 = vpop.permute.xlu0 %1003 }
 0x315   : > { %v994_v17 = vpop.permute.xlu1 %993  ;;  %v1008_v30 = vsel %vm498_vm9, %v1002_v54, %v1004_v27  ;;  %v1007_v34 = vsel %vm498_vm9, %v1004_v27, %v1006_v29 }
 0x316   : > { %v1012_v18 = vsel %vm498_vm9, %v994_v17, %v996_v8  ;;  %v1013_v19 = vsel %vm498_vm9, %v992_v15, %v994_v17  ;;  %v4059_v32 = vadd.f32 %v1008_v30, %v988_v58  ;;  %v4070_v35 = vadd.f32 %v1007_v34, %v989_v2 }
 0x317   : > { %1029 = vrot.lane.b32.xlu1 %v4028_v14, %s3720_s8  ;;  %v4037_v11 = vadd.f32 %v1012_v18, %v984_v3  ;;  %v4039_v20 = vadd.f32 %v1013_v19, %v983_v43  ;;  %vm276_vm9 = vcmp.ge.s32.totalorder %v3888_v41, 992  ;;  %v2352_v41 = vld [vmem:[#allocation6 + $0x80] sm:$0xff] }
 0x319   : > { %1074 = vrot.lane.b32.xlu0 %v4037_v11, %s3719_s27  ;;  %1072 = vrot.lane.b32.xlu2 %v4039_v20, %s3719_s27 }
 0x31f   : > { %1025 = vrot.lane.b32.xlu1 %v4037_v11, %s3720_s8 }
 0x321   : > { %1027 = vrot.lane.b32.xlu0 %v4022_v12, %s3720_s8  ;;  %1080 = vrot.lane.b32.xlu2 %v4050_v28, %s3719_s27 }
 0x327   : > { %1082 = vrot.lane.b32.xlu1 %v4059_v32, %s3719_s27 }
 0x329   : > { %1037 = vrot.lane.b32.xlu0 %v4063_v33, %s3720_s8  ;;  %1023 = vrot.lane.b32.xlu2 %v4039_v20, %s3720_s8 }
 0x32f   : > { %1033 = vrot.lane.b32.xlu1 %v4059_v32, %s3720_s8 }
 0x331   : > { %1086 = vrot.lane.b32.xlu2 %v4063_v33, %s3719_s27  ;;  %1035 = vrot.lane.b32.xlu0 %v4070_v35, %s3720_s8 }
 0x339   : > { %1084 = vrot.lane.b32.xlu2 %v4070_v35, %s3719_s27  ;;  %1031 = vrot.lane.b32.xlu0 %v4050_v28, %s3720_s8 }
 0x341   : > { %1164 = vperm.xlu0 %3573, %v1155_v22   ;;  %1159 = vperm.xlu2 %3574, %v1154_v21  }
 0x373   : > { %v1073_v36 = vpop.permute.xlu2 %1072 }
 0x379   : > { %v1077_v37 = vpop.permute.xlu1 %1076 }
 0x37b   : > { %v1081_v38 = vpop.permute.xlu2 %1080 }
 0x381   : > { %v1079_v39 = vpop.permute.xlu1 %1078 }
 0x382   : > { %v1092_v40 = vsel %vm1088_vm13, %v1079_v39, %v1081_v38  ;;  %v1093_v42 = vsel %vm1088_vm13, %v1077_v37, %v1079_v39 }
 0x383   : > { %v1024_v43 = vpop.permute.xlu2 %1023  ;;  %v1147_v44 = vpack.c.bf16 %v1093_v42, %v1093_v42  ;;  %v1148_v45 = vpack.c.bf16 %v1092_v40, %v1092_v40 }
 0x385   : > { %v1178_v46 = vsel %vm474_vm7, %v1147_v44, 0  ;;  %v1181_v47 = vsel %vm474_vm7, %v1148_v45, 0 }
 0x386   : > { %1229 = vmatpush.bf16.msra.mxu2 %v1178_v46  ;;  %1243 = vmatpush.bf16.msra.mxu3 %v1181_v47 }
 0x389   : > { %v4087_v48 = vpop.permute.xlu1 %1029 }
 0x38b   : > { %v1087_v49 = vpop.permute.xlu2 %1086  ;;  %v1075_v51 = vpop.permute.xlu0 %1074 }
 0x38c   : > { %v1094_v52 = vsel %vm1088_vm13, %v1075_v51, %v1077_v37  ;;  %v1095_v50 = vsel %vm1088_vm13, %v1073_v36, %v1075_v51  ;;  %v1096_v55 = vsel %vm1088_vm13, %v1087_v49, %v1073_v36 }
 0x38d   : > { %v1145_v56 = vpack.c.bf16 %v1095_v50, %v1095_v50  ;;  %v1146_v57 = vpack.c.bf16 %v1094_v52, %v1094_v52  ;;  %v1104_v60 = vmul.f32 %v1096_v55, %v268_v53 }
 0x38f   : > { %v1172_v58 = vsel %vm474_vm7, %v1145_v56, 0  ;;  %v1175_v59 = vsel %vm474_vm7, %v1146_v57, 0  ;;  %v1152_v5 = vpack.c.bf16 %v1104_v60, %v1104_v60 }
 0x390   : > { %1201 = vmatpush.bf16.msra.mxu0 %v1172_v58  ;;  %1215 = vmatpush.bf16.msra.mxu1 %v1175_v59 }
 0x391   : > { %v1026_v61 = vpop.permute.xlu1 %1025  ;;  %v1193_v10 = vsel %vm474_vm7, %v1152_v5, 0 }
 0x392   : > { %v1046_v62 = vsel %vm1039_vm1, %v1024_v43, %v1026_v61 }
 0x393   : > { %v1085_v63 = vpop.permute.xlu2 %1084  ;;  %v1028_v0 = vpop.permute.xlu0 %1027  ;;  %v1138_v1 = vpack.c.bf16 %v4037_v11, %v1046_v62 }
 0x394   : > { %v1089_v2 = vsel %vm1088_vm13, %v1085_v63, %v1087_v49  ;;  %v1044_v3 = vsel %vm1039_vm1, %v1028_v0, %v4087_v48  ;;  %v1045_v4 = vsel %vm1039_vm1, %v1026_v61, %v1028_v0 }
 0x395   : > { %1216 = vmatpush.bf16.msra.mxu1 %v1138_v1  ;;  %v1139_v6 = vpack.c.bf16 %v4022_v12, %v1045_v4  ;;  %v1140_v7 = vpack.c.bf16 %v4028_v14, %v1044_v3  ;;  %v1151_v8 = vpack.c.bf16 %v1089_v2, %v1089_v2 }
 0x397   : > { %1230 = vmatpush.bf16.msra.mxu2 %v1139_v6  ;;  %1244 = vmatpush.bf16.msra.mxu3 %v1140_v7  ;;  %v1190_v9 = vsel %vm474_vm7, %v1151_v8, 0 }
 0x398   : > { %3448 = vmatmul.msk.bf16.vlgmr.msra.gmra.mxu1 %vm1167_vm2, %v4045_v23 }
 0x399   : > { %v1083_v13 = vpop.permute.xlu1 %1082 }
 0x39a   : > { %v1090_v54 = vsel %vm1088_vm13, %v1083_v13, %v1085_v63  ;;  %v1091_v12 = vsel %vm1088_vm13, %v1081_v38, %v1083_v13  ;;  %3449 = vmatmul.msk.bf16.vlgmr.msra.gmra.mxu2 %vm1167_vm2, %v4045_v23  ;;  %3450 = vmatmul.msk.bf16.vlgmr.msra.gmra.mxu3 %vm1167_vm2, %v4045_v23 }
 0x39b   : > { %1285 = vmatpush.bf16.msrb.mxu2 %v1190_v9  ;;  %1299 = vmatpush.bf16.msrb.mxu3 %v1193_v10  ;;  %v1038_v14 = vpop.permute.xlu0 %1037  ;;  %v1150_v15 = vpack.c.bf16 %v1090_v54, %v1090_v54  ;;  %v1149_v11 = vpack.c.bf16 %v1091_v12, %v1091_v12  ;;  %v1160_v38 = vpop.permute.xlu2 %1159 }
 0x39c   : > { %v1047_v17 = vsel %vm1039_vm1, %v1038_v14, %v1024_v43 }
 0x39d   : > { %v1048_v18 = vmul.f32 %v1047_v17, %v3878_v26  ;;  %v1187_v19 = vsel %vm474_vm7, %v1150_v15, 0  ;;  %v1184_v22 = vsel %vm474_vm7, %v1149_v11, 0 }
 0x39e   : > { %1271 = vmatpush.bf16.msrb.mxu1 %v1187_v19 }
 0x39f   : > { %v1137_v21 = vpack.c.bf16 %v4039_v20, %v1048_v18 }
 0x3a1   : > { %1202 = vmatpush.bf16.msra.mxu0 %v1137_v21  ;;  %v1034_v24 = vpop.permute.xlu1 %1033 }
 0x3a3   : > { %v1036_v27 = vpop.permute.xlu0 %1035 }
 0x3a4   : > { %v1040_v29 = vsel %vm1039_vm1, %v1036_v27, %v1038_v14  ;;  %v1041_v30 = vsel %vm1039_vm1, %v1034_v24, %v1036_v27  ;;  %3447 = vmatmul.msk.bf16.vlgmr.msra.gmra.mxu0 %vm1167_vm2, %v4045_v23 }
 0x3a5   : > { %1257 = vmatpush.bf16.msrb.mxu0 %v1184_v22  ;;  %v1143_v31 = vpack.c.bf16 %v4070_v35, %v1041_v30  ;;  %v1144_v34 = vpack.c.bf16 %v4063_v33, %v1040_v29 }
 0x3a7   : > { %1286 = vmatpush.bf16.msrb.mxu2 %v1143_v31  ;;  %1300 = vmatpush.bf16.msrb.mxu3 %v1144_v34 }
 0x3aa   : > { %3453 = vmatmul.msk.bf16.vlgmr.msrb.gmra.mxu2 %vm1167_vm2, %v4045_v23  ;;  %3454 = vmatmul.msk.bf16.vlgmr.msrb.gmra.mxu3 %vm1167_vm2, %v4045_v23 }
 0x3ab   : > { %v1032_v20 = vpop.permute.xlu0 %1031 }
 0x3ac   : > { %v1042_v36 = vsel %vm1039_vm1, %v1032_v20, %v1034_v24  ;;  %v1043_v37 = vsel %vm1039_vm1, %v4087_v48, %v1032_v20 }
 0x3ad   : > { %v1141_v35 = vpack.c.bf16 %v4050_v28, %v1043_v37  ;;  %v1142_v33 = vpack.c.bf16 %v4059_v32, %v1042_v36 }
 0x3af   : > { %1258 = vmatpush.bf16.msrb.mxu0 %v1141_v35  ;;  %1272 = vmatpush.bf16.msrb.mxu1 %v1142_v33 }
 0x3b2   : > { %3452 = vmatmul.msk.bf16.vlgmr.msrb.gmra.mxu1 %vm1167_vm2, %v4045_v23 }
 0x3b3   : > { %v1165_v28 = vpop.permute.xlu0 %1164 }
 0x3b4   : > { %3451 = vmatmul.msk.bf16.vlgmr.msrb.gmra.mxu0 %vm1167_vm2, %v4045_v23 }
 0x415   : > { %v1218_v39 = vpop.f32.mrf.mxu1 }
 0x416   : > { %v4152_v40 = vadd.f32 %v1218_v39, %v1160_v38 }
 0x418   : > { %v1308_v42 = vmax.f32 %v4152_v40, 0.0 }
 0x41a   : > { %1327 = vrot.lane.b32.xlu0 %v1308_v42, %s3719_s27 }
 0x41d   : > { %v1220_v32 = vpop.f32.mrf.mxu1  ;;  %v1232_v43 = vpop.f32.mrf.mxu2 }
 0x41e   : > { %v4158_v44 = vadd.f32 %v1220_v32, %v1165_v28  ;;  %v1246_v45 = vpop.f32.mrf.mxu3  ;;  %v4183_v60 = vadd.f32 %v1232_v43, %v1160_v38 }
 0x41f   : > { %v4160_v46 = vadd.f32 %v1246_v45, %v1160_v38 }
 0x420   : > { %v1316_v23 = vmax.f32 %v4158_v44, 0.0  ;;  %v1309_v1 = vmax.f32 %v4183_v60, 0.0 }
 0x421   : > { %v1310_v47 = vmax.f32 %v4160_v46, 0.0  ;;  %v1204_v48 = vpop.f32.mrf.mxu0 }
 0x422   : > { %v4164_v49 = vadd.f32 %v1204_v48, %v1160_v38  ;;  %1329 = vrot.lane.b32.xlu1 %v1316_v23, %s3719_s27 }
 0x423   : > { %1335 = vrot.lane.b32.xlu0 %v1310_v47, %s3719_s27 }
 0x424   : > { %v1307_v52 = vmax.f32 %v4164_v49, 0.0 }
 0x425   : > { %v1234_v51 = vpop.f32.mrf.mxu2 }
 0x426   : > { %v4173_v50 = vadd.f32 %v1234_v51, %v1165_v28  ;;  %v1248_v55 = vpop.f32.mrf.mxu3 }
 0x427   : > { %v4192_v2 = vadd.f32 %v1248_v55, %v1165_v28 }
 0x428   : > { %v1317_v53 = vmax.f32 %v4173_v50, 0.0 }
 0x429   : > { %v1206_v56 = vpop.f32.mrf.mxu0  ;;  %v1318_v6 = vmax.f32 %v4192_v2, 0.0 }
 0x42a   : > { %v1207_v57 = vadd.f32 %v1206_v56, %v1165_v28  ;;  %1323 = vrot.lane.b32.xlu1 %v1307_v52, %s3719_s27 }
 0x42b   : > { %1333 = vrot.lane.b32.xlu0 %v1317_v53, %s3719_s27 }
 0x42c   : > { %v1315_v58 = vmax.f32 %v1207_v57, 0.0 }
 0x42d   : > { %v1288_v4 = vpop.f32.mrf.mxu2 }
 0x42e   : > { %1325 = vrot.lane.b32.xlu2 %v1315_v58, %s3719_s27  ;;  %v1302_v0 = vpop.f32.mrf.mxu3  ;;  %v4208_v54 = vadd.f32 %v1288_v4, %v1160_v38 }
 0x42f   : > { %v1274_v59 = vpop.f32.mrf.mxu1  ;;  %v4202_v13 = vadd.f32 %v1302_v0, %v1160_v38 }
 0x430   : > { %v4185_v61 = vadd.f32 %v1274_v59, %v1160_v38  ;;  %v1313_v17 = vmax.f32 %v4208_v54, 0.0  ;;  %v1640_v54 = vld [vmem:[#allocation6 + $0x70] sm:$0xff] }
 0x431   : > { %v1260_v62 = vpop.f32.mrf.mxu0  ;;  %v1314_v14 = vmax.f32 %v4202_v13, 0.0 }
 0x432   : > { %v1312_v63 = vmax.f32 %v4185_v61, 0.0  ;;  %v1261_v3 = vadd.f32 %v1260_v62, %v1160_v38 }
 0x434   : > { %1343 = vrot.lane.b32.xlu1 %v1312_v63, %s3719_s27  ;;  %v1311_v8 = vmax.f32 %v1261_v3, 0.0 }
 0x435   : > { %v1290_v15 = vpop.f32.mrf.mxu2 }
 0x436   : > { %1331 = vrot.lane.b32.xlu2 %v1309_v1, %s3719_s27  ;;  %v1304_v10 = vpop.f32.mrf.mxu3  ;;  %v4218_v11 = vadd.f32 %v1290_v15, %v1165_v28 }
 0x437   : > { %v4210_v12 = vadd.f32 %v1304_v10, %v1165_v28  ;;  %v1276_v19 = vpop.f32.mrf.mxu1 }
 0x438   : > { %v4226_v21 = vadd.f32 %v1276_v19, %v1165_v28  ;;  %v1321_v22 = vmax.f32 %v4218_v11, 0.0 }
 0x439   : > { %v1262_v5 = vpop.f32.mrf.mxu0  ;;  %v1322_v18 = vmax.f32 %v4210_v12, 0.0 }
 0x43a   : > { %v4196_v7 = vadd.f32 %v1262_v5, %v1165_v28  ;;  %v1320_v24 = vmax.f32 %v4226_v21, 0.0  ;;  %v1639_v21 = vld [vmem:[#allocation6 + $0x68] sm:$0xff] }
 0x43c   : > { %v1319_v9 = vmax.f32 %v4196_v7, 0.0  ;;  %1337 = vrot.lane.b32.xlu1 %v1318_v6, %s3719_s27 }
 0x43e   : > { %1341 = vrot.lane.b32.xlu0 %v1319_v9, %s3719_s27  ;;  %1339 = vrot.lane.b32.xlu2 %v1311_v8, %s3719_s27 }
 0x444   : > { %1351 = vrot.lane.b32.xlu1 %v1314_v14, %s3719_s27 }
 0x446   : > { %1347 = vrot.lane.b32.xlu0 %v1313_v17, %s3719_s27  ;;  %1353 = vrot.lane.b32.xlu2 %v1322_v18, %s3719_s27 }
 0x44c   : > { %1349 = vrot.lane.b32.xlu1 %v1321_v22, %s3719_s27 }
 0x44e   : > { %1345 = vrot.lane.b32.xlu2 %v1320_v24, %s3719_s27 }
 0x488   : > { %v1326_v27 = vpop.permute.xlu2 %1325 }
 0x48c   : > { %v1328_v29 = vpop.permute.xlu0 %1327 }
 0x490   : > { %v1332_v30 = vpop.permute.xlu2 %1331 }
 0x491   : > { %v1365_v37 = vsel %vm1088_vm13, %v1328_v29, %v1332_v30 }
 0x492   : > { %v4258_v45 = vadd.f32 %v1365_v37, %v1308_v42 }
 0x494   : > { %v1330_v31 = vpop.permute.xlu1 %1329 }
 0x495   : > { %v1368_v34 = vsel %vm1088_vm13, %v1326_v27, %v1330_v31  ;;  %v1336_v20 = vpop.permute.xlu0 %1335 }
 0x496   : > { %v4238_v36 = vadd.f32 %v1368_v34, %v1315_v58  ;;  %v1363_v40 = vsel %vm1088_vm13, %v1332_v30, %v1336_v20 }
 0x497   : > { %v4272_v49 = vadd.f32 %v1363_v40, %v1309_v1 }
 0x498   : > { %1389 = vrot.lane.b32.xlu1 %v4238_v36, %s3721_s13  ;;  %v1340_v35 = vpop.permute.xlu2 %1339 }
 0x49c   : > { %v1324_v33 = vpop.permute.xlu1 %1323 }
 0x49d   : > { %v1367_v38 = vsel %vm1088_vm13, %v1324_v33, %v1328_v29  ;;  %v1334_v39 = vpop.permute.xlu0 %1333 }
 0x49e   : > { %v1366_v28 = vsel %vm1088_vm13, %v1330_v31, %v1334_v39  ;;  %v4250_v32 = vadd.f32 %v1367_v38, %v1307_v52  ;;  %v1361_v52 = vsel %vm1088_vm13, %v1336_v20, %v1340_v35 }
 0x49f   : > { %v4254_v43 = vadd.f32 %v1366_v28, %v1316_v23  ;;  %v4288_v57 = vadd.f32 %v1361_v52, %v1310_v47 }
 0x4a0   : > { %1387 = vrot.lane.b32.xlu0 %v4250_v32, %s3721_s13  ;;  %1484 = vrot.lane.b32.xlu2 %v4250_v32, %s3722_s14  ;;  %v1621_v48 = vpack.c.bf16 %v4238_v36, %v4250_v32  ;;  %v1354_v42 = vpop.permute.xlu2 %1353 }
 0x4a1   : > { %1488 = vrot.lane.b32.xlu1 %v4258_v45, %s3722_s14  ;;  %v1622_v44 = vpack.c.bf16 %v4254_v43, %v4258_v45  ;;  %v1370_v4 = vsel %vm1088_vm13, %v1354_v42, %v1326_v27 }
 0x4a6   : > { %v1344_v23 = vpop.permute.xlu1 %1343 }
 0x4a7   : > { %v1359_v51 = vsel %vm1088_vm13, %v1340_v35, %v1344_v23 }
 0x4a8   : > { %1486 = vrot.lane.b32.xlu0 %v4238_v36, %s3722_s14  ;;  %1492 = vrot.lane.b32.xlu2 %v4272_v49, %s3722_s14  ;;  %v4284_v55 = vadd.f32 %v1359_v51, %v1311_v8  ;;  %v1346_v59 = vpop.permute.xlu2 %1345 }
 0x4a9   : > { %1395 = vrot.lane.b32.xlu1 %v4272_v49, %s3721_s13 }
 0x4ae   : > { %v1338_v56 = vpop.permute.xlu1 %1337 }
 0x4af   : > { %v1364_v58 = vsel %vm1088_vm13, %v1334_v39, %v1338_v56 }
 0x4b0   : > { %v4294_v60 = vadd.f32 %v1364_v58, %v1317_v53  ;;  %1500 = vrot.lane.b32.xlu0 %v4284_v55, %s3722_s14  ;;  %1490 = vrot.lane.b32.xlu2 %v4254_v43, %s3722_s14  ;;  %v1342_v62 = vpop.permute.xlu0 %1341 }
 0x4b1   : > { %1496 = vrot.lane.b32.xlu1 %v4288_v57, %s3722_s14  ;;  %v1360_v46 = vsel %vm1088_vm13, %v1342_v62, %v1346_v59  ;;  %v1362_v47 = vsel %vm1088_vm13, %v1338_v56, %v1342_v62 }
 0x4b2   : > { %v4308_v50 = vadd.f32 %v1362_v47, %v1318_v6  ;;  %v4312_v53 = vadd.f32 %v1360_v46, %v1319_v9  ;;  %v1623_v0 = vpack.c.bf16 %v4294_v60, %v4272_v49  ;;  %v4326_v6 = vadd.f32 %v1370_v4, %v1322_v18 }
 0x4b4   : > { %v1624_v1 = vpack.c.bf16 %v4308_v50, %v4288_v57  ;;  %v1625_v3 = vpack.c.bf16 %v4312_v53, %v4284_v55 }
 0x4b6   : > { %v1352_v5 = vpop.permute.xlu1 %1351 }
 0x4b7   : > { %v1369_v2 = vsel %vm1088_vm13, %v1352_v5, %v1324_v33 }
 0x4b8   : > { %v4330_v7 = vadd.f32 %v1369_v2, %v1314_v14  ;;  %1494 = vrot.lane.b32.xlu0 %v4294_v60, %s3722_s14  ;;  %1498 = vrot.lane.b32.xlu2 %v4308_v50, %s3722_s14  ;;  %v1348_v8 = vpop.permute.xlu0 %1347 }
 0x4b9   : > { %1502 = vrot.lane.b32.xlu1 %v4312_v53, %s3722_s14  ;;  %v1357_v10 = vsel %vm1088_vm13, %v1344_v23, %v1348_v8  ;;  %v1355_v13 = vsel %vm1088_vm13, %v1348_v8, %v1352_v5 }
 0x4ba   : > { %v1628_v9 = vpack.c.bf16 %v4326_v6, %v4330_v7  ;;  %v4346_v14 = vadd.f32 %v1357_v10, %v1312_v63  ;;  %v4354_v19 = vadd.f32 %v1355_v13, %v1313_v17  ;;  %v1641_v17 = vld [vmem:[#allocation6 + $0x78] sm:$0xff] }
 0x4bb   : > { %v4386_v11 = vpack.c.bf16 %v1641_v17, %v1640_v54 }
 0x4be   : > { %v1350_v12 = vpop.permute.xlu1 %1349 }
 0x4bf   : > { %v1356_v15 = vsel %vm1088_vm13, %v1350_v12, %v1354_v42  ;;  %v1358_v18 = vsel %vm1088_vm13, %v1346_v59, %v1350_v12  ;;  %vm292_vm13 = vmand %vm276_vm9, %vm284_vm10 }
 0x4c0   : > { %v4358_v27 = vadd.f32 %v1358_v18, %v1320_v24  ;;  %v4362_v29 = vadd.f32 %v1356_v15, %v1321_v22  ;;  %1417 = vrot.lane.b32.xlu0 %v4326_v6, %s3721_s13  ;;  %1415 = vrot.lane.b32.xlu2 %v4330_v7, %s3721_s13  ;;  %v1638_v22 = vld [vmem:[#allocation6 + $0x60] sm:$0xff] }
 0x4c1   : > { %1401 = vrot.lane.b32.xlu1 %v4308_v50, %s3721_s13  ;;  %v4394_v24 = vpack.c.bf16 %v1639_v21, %v1638_v22 }
 0x4c2   : > { %v1626_v61 = vpack.c.bf16 %v4358_v27, %v4346_v14  ;;  %v1627_v63 = vpack.c.bf16 %v4362_v29, %v4354_v19 }
 0x4c8   : > { %1399 = vrot.lane.b32.xlu0 %v4288_v57, %s3721_s13  ;;  %1397 = vrot.lane.b32.xlu2 %v4294_v60, %s3721_s13 }
 0x4c9   : > { %1504 = vrot.lane.b32.xlu1 %v4346_v14, %s3722_s14 }
 0x4d0   : > { %1393 = vrot.lane.b32.xlu0 %v4254_v43, %s3721_s13  ;;  %1391 = vrot.lane.b32.xlu2 %v4258_v45, %s3721_s13 }
 0x4d1   : > { %1514 = vrot.lane.b32.xlu1 %v4326_v6, %s3722_s14 }
 0x4d8   : > { %1512 = vrot.lane.b32.xlu0 %v4330_v7, %s3722_s14  ;;  %1506 = vrot.lane.b32.xlu2 %v4358_v27, %s3722_s14 }
 0x4d9   : > { %1508 = vrot.lane.b32.xlu1 %v4354_v19, %s3722_s14 }
 0x4e0   : > { %1403 = vrot.lane.b32.xlu2 %v4284_v55, %s3721_s13  ;;  %1405 = vrot.lane.b32.xlu0 %v4312_v53, %s3721_s13 }
 0x4e1   : > { %1413 = vrot.lane.b32.xlu1 %v4362_v29, %s3721_s13 }
 0x4e8   : > { %1510 = vrot.lane.b32.xlu2 %v4362_v29, %s3722_s14  ;;  %1411 = vrot.lane.b32.xlu0 %v4354_v19, %s3721_s13 }
 0x4e9   : > { %1656 = vperm.xlu1 %3572, %v1640_v54  }
 0x4f0   : > { %1407 = vrot.lane.b32.xlu2 %v4346_v14, %s3721_s13  ;;  %1409 = vrot.lane.b32.xlu0 %v4358_v27, %s3721_s13 }
 0x4f1   : > { %1651 = vperm.xlu1 %3572, %v1639_v21  }
 0x4f8   : > { %1661 = vperm.xlu2 %3574, %v1641_v17   ;;  %1646 = vperm.xlu0 %3573, %v1638_v22  }
 0x4fa   : > { %v4410_v30 = vpop.permute.xlu2 %1484 }
 0x502   : > { %v1493_v31 = vpop.permute.xlu2 %1492 }
 0x50a   : > { %v4412_v34 = vpop.permute.xlu1 %1389  ;;  %v1491_v20 = vpop.permute.xlu2 %1490 }
 0x512   : > { %v1499_v37 = vpop.permute.xlu2 %1498  ;;  %v1388_v35 = vpop.permute.xlu0 %1387 }
 0x513   : > { %v1489_v33 = vpop.permute.xlu1 %1488 }
 0x514   : > { %v1529_v28 = vsel %vm1516_vm5, %v4410_v30, %v1489_v33  ;;  %v1527_v62 = vsel %vm1516_vm5, %v1489_v33, %v1493_v31 }
 0x51a   : > { %v4415_v38 = vpop.permute.xlu2 %1415  ;;  %v4417_v39 = vpop.permute.xlu0 %1486 }
 0x51b   : > { %v1396_v40 = vpop.permute.xlu1 %1395  ;;  %v1530_v42 = vsel %vm1516_vm5, %v4417_v39, %v1491_v20  ;;  %v1434_v10 = vsel %vm1419_vm6, %v4415_v38, %v1388_v35 }
 0x51c   : > { %v1629_v23 = vpack.c.bf16 %v1530_v42, %v1529_v28  ;;  %v1436_v18 = vmul.f32 %v1434_v10, %v3878_v26 }
 0x51e   : > { %1676 = vmatpush.bf16.msra.mxu0 %v1629_v23 }
 0x522   : > { %v1398_v51 = vpop.permute.xlu2 %1397  ;;  %v1501_v52 = vpop.permute.xlu0 %1500  ;;  %1677 = vmatpush.bf16.msra.mxu0 %v1621_v48 }
 0x523   : > { %v1497_v56 = vpop.permute.xlu1 %1496 }
 0x524   : > { %v1525_v46 = vsel %vm1516_vm5, %v1493_v31, %v1497_v56  ;;  %v1523_v36 = vsel %vm1516_vm5, %v1497_v56, %v1501_v52 }
 0x52a   : > { %v1392_v58 = vpop.permute.xlu2 %1391  ;;  %v1495_v59 = vpop.permute.xlu0 %1494 }
 0x52b   : > { %v1503_v47 = vpop.permute.xlu1 %1502  ;;  %v1526_v4 = vsel %vm1516_vm5, %v1495_v59, %v1499_v37  ;;  %v1528_v5 = vsel %vm1516_vm5, %v1491_v20, %v1495_v59  ;;  %v1430_v31 = vsel %vm1419_vm6, %v1392_v58, %v1396_v40  ;;  %v1432_v20 = vsel %vm1419_vm6, %v1388_v35, %v1392_v58 }
 0x52c   : > { %v1524_v32 = vsel %vm1516_vm5, %v1499_v37, %v1503_v47  ;;  %v1630_v48 = vpack.c.bf16 %v1528_v5, %v1527_v62  ;;  %v1631_v2 = vpack.c.bf16 %v1526_v4, %v1525_v46  ;;  %v4488_v35 = vsel %vm292_vm13, 0.0, %v5552_v25 }
 0x52d   : > { %v1632_v8 = vpack.c.bf16 %v1524_v32, %v1523_v36 }
 0x52e   : > { %1695 = vmatpush.bf16.msra.mxu1 %v1630_v48  ;;  %1714 = vmatpush.bf16.msra.mxu2 %v1631_v2 }
 0x52f   : > { %1733 = vmatpush.bf16.msra.mxu3 %v1632_v8 }
 0x532   : > { %v4444_v13 = vpop.permute.xlu0 %1417  ;;  %1696 = vmatpush.bf16.msra.mxu1 %v1622_v44  ;;  %1715 = vmatpush.bf16.msra.mxu2 %v1623_v0  ;;  %v1507_v54 = vpop.permute.xlu2 %1506 }
 0x533   : > { %v1402_v12 = vpop.permute.xlu1 %1401  ;;  %v1435_v15 = vsel %vm1419_vm6, %v4444_v13, %v4412_v34  ;;  %1734 = vmatpush.bf16.msra.mxu3 %v1624_v1  ;;  %v1522_v57 = vsel %vm1516_vm5, %v1503_v47, %v1507_v54 }
 0x534   : > { %v1444_v43 = vmul.f32 %v1435_v15, %v3878_v26  ;;  %v1429_v49 = vsel %vm1419_vm6, %v1398_v51, %v1402_v12 }
 0x536   : > { %v1613_v45 = vpack.c.bf16 %v1444_v43, %v1436_v18 }
 0x538   : > { %1678 = vmatpush.bf16.msra.mxu0 %v1613_v45 }
 0x53a   : > { %v1400_v44 = vpop.permute.xlu0 %1399  ;;  %v1404_v21 = vpop.permute.xlu2 %1403 }
 0x53b   : > { %v1505_v60 = vpop.permute.xlu1 %1504  ;;  %v1428_v0 = vsel %vm1419_vm6, %v1396_v40, %v1400_v44  ;;  %3455 = vmatmul.msk.bf16.vlgmr.msra.gmra.mxu0 %vm1664_vm8, %v4394_v24  ;;  %v1426_v4 = vsel %vm1419_vm6, %v1400_v44, %v1404_v21 }
 0x53c   : > { %v1521_v50 = vsel %vm1516_vm5, %v1501_v52, %v1505_v60  ;;  %v1616_v1 = vpack.c.bf16 %v1429_v49, %v1428_v0 }
 0x53d   : > { %v1633_v17 = vpack.c.bf16 %v1522_v57, %v1521_v50 }
 0x53e   : > { %1735 = vmatpush.bf16.msra.mxu3 %v1616_v1 }
 0x53f   : > { %1752 = vmatpush.bf16.msrb.mxu0 %v1633_v17 }
 0x541   : > { %3461 = vmatmul.msk.bf16.vlgmr.msra.gmra.mxu3 %vm1664_vm8, %v4394_v24 }
 0x542   : > { %v1394_v22 = vpop.permute.xlu0 %1393  ;;  %v1511_v40 = vpop.permute.xlu2 %1510 }
 0x543   : > { %v1515_v37 = vpop.permute.xlu1 %1514  ;;  %v1431_v33 = vsel %vm1419_vm6, %v1394_v22, %v1398_v51  ;;  %v1433_v28 = vsel %vm1419_vm6, %v4412_v34, %v1394_v22  ;;  %1753 = vmatpush.bf16.msrb.mxu0 %v1625_v3  ;;  %v1520_v53 = vsel %vm1516_vm5, %v1507_v54, %v1511_v40 }
 0x544   : > { %v1614_v42 = vpack.c.bf16 %v1433_v28, %v1432_v20  ;;  %v1615_v23 = vpack.c.bf16 %v1431_v33, %v1430_v31  ;;  %v1532_v51 = vsel %vm1516_vm5, %v1515_v37, %v4417_v39  ;;  %v1518_v3 = vsel %vm1516_vm5, %v1511_v40, %v1515_v37 }
 0x545   : > { %v1548_v39 = vmul.f32 %v1532_v51, %v4488_v35 }
 0x546   : > { %1697 = vmatpush.bf16.msra.mxu1 %v1614_v42  ;;  %1716 = vmatpush.bf16.msra.mxu2 %v1615_v23 }
 0x549   : > { %3457 = vmatmul.msk.bf16.vlgmr.msra.gmra.mxu1 %vm1664_vm8, %v4394_v24  ;;  %3459 = vmatmul.msk.bf16.vlgmr.msra.gmra.mxu2 %vm1664_vm8, %v4394_v24 }
 0x54a   : > { %v1513_v55 = vpop.permute.xlu0 %1512  ;;  %v1408_v7 = vpop.permute.xlu2 %1407 }
 0x54b   : > { %v1509_v34 = vpop.permute.xlu1 %1508  ;;  %v1531_v52 = vsel %vm1516_vm5, %v1513_v55, %v4410_v30  ;;  %3456 = vmatmul.msk.bf16.gmra.mxu0 %vm1664_vm8, %v4386_v11  ;;  %v1424_v27 = vsel %vm1419_vm6, %v1404_v21, %v1408_v7 }
 0x54c   : > { %v1519_v56 = vsel %vm1516_vm5, %v1505_v60, %v1509_v34  ;;  %v1517_v58 = vsel %vm1516_vm5, %v1509_v34, %v1513_v55  ;;  %v1540_v59 = vmul.f32 %v1531_v52, %v4488_v35 }
 0x54d   : > { %v1634_v62 = vpack.c.bf16 %v1520_v53, %v1519_v56  ;;  %v1635_v46 = vpack.c.bf16 %v1518_v3, %v1517_v58 }
 0x54e   : > { %v1636_v47 = vpack.c.bf16 %v1548_v39, %v1540_v59 }
 0x54f   : > { %1771 = vmatpush.bf16.msrb.mxu1 %v1634_v62  ;;  %1790 = vmatpush.bf16.msrb.mxu2 %v1635_v46 }
 0x550   : > { %1809 = vmatpush.bf16.msrb.mxu3 %v1636_v47 }
 0x551   : > { %3462 = vmatmul.msk.bf16.gmra.mxu3 %vm1664_vm8, %v4386_v11 }
 0x552   : > { %v1406_v30 = vpop.permute.xlu0 %1405  ;;  %v4595_v23 = vpop.permute.xlu2 %1661 }
 0x553   : > { %v1427_v5 = vsel %vm1419_vm6, %v1402_v12, %v1406_v30  ;;  %1772 = vmatpush.bf16.msrb.mxu1 %v1626_v61  ;;  %1791 = vmatpush.bf16.msrb.mxu2 %v1627_v63  ;;  %v1414_v32 = vpop.permute.xlu1 %1413 }
 0x554   : > { %1810 = vmatpush.bf16.msrb.mxu3 %v1628_v9  ;;  %v1617_v36 = vpack.c.bf16 %v1427_v5, %v1426_v4  ;;  %v1421_v14 = vsel %vm1419_vm6, %v1414_v32, %v4444_v13 }
 0x556   : > { %1754 = vmatpush.bf16.msrb.mxu0 %v1617_v36 }
 0x559   : > { %3458 = vmatmul.msk.bf16.gmra.mxu1 %vm1664_vm8, %v4386_v11  ;;  %3460 = vmatmul.msk.bf16.gmra.mxu2 %vm1664_vm8, %v4386_v11 }
 0x55a   : > { %v1412_v48 = vpop.permute.xlu0 %1411 }
 0x55b   : > { %v1420_v19 = vsel %vm1419_vm6, %v1412_v48, %v4415_v38  ;;  %3463 = vmatmul.msk.bf16.vlgmr.msrb.gmra.mxu0 %vm1664_vm8, %v4394_v24  ;;  %v1422_v29 = vsel %vm1419_vm6, %v1408_v7, %v1412_v48  ;;  %v4561_v8 = vpop.permute.xlu1 %1656 }
 0x55c   : > { %v1620_v6 = vpack.c.bf16 %v1421_v14, %v1420_v19 }
 0x55e   : > { %1811 = vmatpush.bf16.msrb.mxu3 %v1620_v6 }
 0x561   : > { %3469 = vmatmul.msk.bf16.vlgmr.msrb.gmra.mxu3 %vm1664_vm8, %v4394_v24 }
 0x562   : > { %v1410_v9 = vpop.permute.xlu0 %1409 }
 0x563   : > { %v1423_v61 = vsel %vm1419_vm6, %v1410_v9, %v1414_v32  ;;  %v1425_v63 = vsel %vm1419_vm6, %v1406_v30, %v1410_v9  ;;  %v4570_v15 = vpop.permute.xlu1 %1651 }
 0x564   : > { %v1618_v38 = vpack.c.bf16 %v1425_v63, %v1424_v27  ;;  %v1619_v2 = vpack.c.bf16 %v1423_v61, %v1422_v29 }
 0x566   : > { %1773 = vmatpush.bf16.msrb.mxu1 %v1618_v38  ;;  %1792 = vmatpush.bf16.msrb.mxu2 %v1619_v2 }
 0x569   : > { %3465 = vmatmul.msk.bf16.vlgmr.msrb.gmra.mxu1 %vm1664_vm8, %v4394_v24  ;;  %3467 = vmatmul.msk.bf16.vlgmr.msrb.gmra.mxu2 %vm1664_vm8, %v4394_v24 }
 0x56a   : > { %v4563_v10 = vpop.permute.xlu0 %1646 }
 0x56b   : > { %3464 = vmatmul.msk.bf16.gmra.mxu0 %vm1664_vm8, %v4386_v11 }
 0x571   : > { %3470 = vmatmul.msk.bf16.gmra.mxu3 %vm1664_vm8, %v4386_v11 }
 0x579   : > { %3466 = vmatmul.msk.bf16.gmra.mxu1 %vm1664_vm8, %v4386_v11  ;;  %3468 = vmatmul.msk.bf16.gmra.mxu2 %vm1664_vm8, %v4386_v11 }
 0x5b8   : > { %v1680_v13 = vpop.f32.mrf.mxu0 }
 0x5b9   : > { %v1681_v12 = vadd.f32 %v1680_v13, %v4563_v10 }
 0x5bb   : > { %v4566_v24 = vmax.f32 %v1681_v12, 0.0 }
 0x5bd   : > { %1855 = vrot.lane.b32.xlu2 %v4566_v24, %s3721_s13 }
 0x5c0   : > { %v1682_v18 = vpop.f32.mrf.mxu0 }
 0x5c1   : > { %v1683_v54 = vadd.f32 %v1682_v18, %v4570_v15 }
 0x5c3   : > { %v4573_v43 = vmax.f32 %v1683_v54, 0.0 }
 0x5c4   : > { %v1737_v11 = vpop.f32.mrf.mxu3 }
 0x5c5   : > { %v1738_v50 = vadd.f32 %v1737_v11, %v4563_v10 }
 0x5c6   : > { %v1699_v44 = vpop.f32.mrf.mxu1 }
 0x5c7   : > { %v1700_v49 = vadd.f32 %v1699_v44, %v4563_v10  ;;  %v4588_v37 = vmax.f32 %v1738_v50, 0.0 }
 0x5c8   : > { %v1685_v60 = vpop.f32.mrf.mxu0 }
 0x5c9   : > { %v4578_v0 = vmax.f32 %v1700_v49, 0.0  ;;  %v1686_v57 = vadd.f32 %v1685_v60, %v4561_v8 }
 0x5cb   : > { %v4582_v1 = vmax.f32 %v1686_v57, 0.0  ;;  %2055 = vrot.lane.b32.xlu0 %v4578_v0, %s3722_s14 }
 0x5cc   : > { %v1718_v17 = vpop.f32.mrf.mxu2  ;;  %v1739_v21 = vpop.f32.mrf.mxu3 }
 0x5cd   : > { %v1719_v22 = vadd.f32 %v1718_v17, %v4563_v10  ;;  %v1740_v31 = vadd.f32 %v1739_v21, %v4570_v15 }
 0x5ce   : > { %v1701_v20 = vpop.f32.mrf.mxu1 }
 0x5cf   : > { %v4590_v33 = vmax.f32 %v1719_v22, 0.0  ;;  %v4592_v28 = vmax.f32 %v1740_v31, 0.0  ;;  %v1702_v42 = vadd.f32 %v1701_v20, %v4570_v15 }
 0x5d0   : > { %v1687_v40 = vpop.f32.mrf.mxu0 }
 0x5d1   : > { %v4597_v51 = vmax.f32 %v1702_v42, 0.0  ;;  %v1688_v55 = vadd.f32 %v1687_v40, %v4595_v23  ;;  %2063 = vrot.lane.b32.xlu2 %v4590_v33, %s3722_s14 }
 0x5d3   : > { %v4604_v3 = vmax.f32 %v1688_v55, 0.0  ;;  %2057 = vrot.lane.b32.xlu1 %v4597_v51, %s3722_s14  ;;  %1863 = vrot.lane.b32.xlu0 %v4578_v0, %s3721_s13 }
 0x5d4   : > { %v1720_v52 = vpop.f32.mrf.mxu2  ;;  %v1742_v39 = vpop.f32.mrf.mxu3 }
 0x5d5   : > { %v1721_v56 = vadd.f32 %v1720_v52, %v4570_v15  ;;  %v1743_v58 = vadd.f32 %v1742_v39, %v4561_v8 }
 0x5d6   : > { %v1704_v59 = vpop.f32.mrf.mxu1 }
 0x5d7   : > { %v4614_v62 = vmax.f32 %v1721_v56, 0.0  ;;  %v4616_v46 = vmax.f32 %v1743_v58, 0.0  ;;  %v1705_v47 = vadd.f32 %v1704_v59, %v4561_v8 }
 0x5d8   : > { %v4619_v30 = vpop.f32.mrf.mxu0 }
 0x5d9   : > { %v4621_v4 = vmax.f32 %v1705_v47, 0.0 }
 0x5db   : > { %1865 = vrot.lane.b32.xlu1 %v4597_v51, %s3721_s13  ;;  %2071 = vrot.lane.b32.xlu0 %v4588_v37, %s3722_s14 }
 0x5dc   : > { %2059 = vrot.lane.b32.xlu2 %v4621_v4, %s3722_s14  ;;  %v1723_v36 = vpop.f32.mrf.mxu2  ;;  %v1744_v32 = vpop.f32.mrf.mxu3 }
 0x5dd   : > { %v1724_v48 = vadd.f32 %v1723_v36, %v4561_v8  ;;  %v1745_v14 = vadd.f32 %v1744_v32, %v4595_v23 }
 0x5de   : > { %v1706_v19 = vpop.f32.mrf.mxu1 }
 0x5df   : > { %v4633_v6 = vmax.f32 %v1724_v48, 0.0  ;;  %v4635_v7 = vmax.f32 %v1745_v14, 0.0  ;;  %v1707_v9 = vadd.f32 %v1706_v19, %v4595_v23 }
 0x5e0   : > { %v4638_v27 = vpop.f32.mrf.mxu0 }
 0x5e1   : > { %v4640_v29 = vmax.f32 %v1707_v9, 0.0 }
 0x5e3   : > { %1879 = vrot.lane.b32.xlu0 %v4588_v37, %s3721_s13  ;;  %2047 = vrot.lane.b32.xlu1 %v4566_v24, %s3722_s14 }
 0x5e4   : > { %2049 = vrot.lane.b32.xlu2 %v4573_v43, %s3722_s14  ;;  %v1725_v38 = vpop.f32.mrf.mxu2  ;;  %v4652_v2 = vpop.f32.mrf.mxu3 }
 0x5e5   : > { %v1726_v13 = vadd.f32 %v1725_v38, %v4595_v23 }
 0x5e6   : > { %v1775_v12 = vpop.f32.mrf.mxu1 }
 0x5e7   : > { %v4655_v18 = vmax.f32 %v1726_v13, 0.0  ;;  %v1776_v38 = vadd.f32 %v1775_v12, %v4563_v10  ;;  %v1757_v12 = vadd.f32 %v4619_v30, %v4563_v10  ;;  %v1759_v30 = vadd.f32 %v4638_v27, %v4570_v15 }
 0x5e8   : > { %v1761_v54 = vpop.f32.mrf.mxu0 }
 0x5e9   : > { %v1762_v11 = vadd.f32 %v1761_v54, %v4561_v8  ;;  %v4708_v54 = vmax.f32 %v1776_v38, 0.0 }
 0x5eb   : > { %v4660_v49 = vmax.f32 %v1762_v11, 0.0  ;;  %1857 = vrot.lane.b32.xlu0 %v4573_v43, %s3721_s13  ;;  %1871 = vrot.lane.b32.xlu1 %v4590_v33, %s3721_s13  ;;  %5590 = vst [vmem:[#allocation21_spill] sm:$0xff] %v4708_v54 }
 0x5ec   : > { %1873 = vrot.lane.b32.xlu2 %v4614_v62, %s3721_s13  ;;  %v1794_v60 = vpop.f32.mrf.mxu2  ;;  %v1815_v57 = vpop.f32.mrf.mxu3 }
 0x5ed   : > { %5582 = vst [vmem:[#allocation13_spill] sm:$0xff] %v4660_v49 }
 0x5ee   : > { %v1777_v50 = vpop.f32.mrf.mxu1 }
 0x5f0   : > { %v1763_v17 = vpop.f32.mrf.mxu0 }
 0x5f1   : > { %v1764_v21 = vadd.f32 %v1763_v17, %v4595_v23  ;;  %v4733_v17 = vmax.f32 %v1757_v12, 0.0 }
 0x5f3   : > { %v4669_v22 = vmax.f32 %v1764_v21, 0.0  ;;  %2065 = vrot.lane.b32.xlu0 %v4614_v62, %s3722_s14  ;;  %1867 = vrot.lane.b32.xlu1 %v4621_v4, %s3721_s13  ;;  %5592 = vst [vmem:[#allocation23_spill] sm:$0xff] %v4733_v17  ;;  %v1814_v21 = vadd.f32 %v4652_v2, %v4563_v10  ;;  %v1816_v2 = vadd.f32 %v1815_v57, %v4570_v15 }
 0x5f4   : > { %1869 = vrot.lane.b32.xlu2 %v4640_v29, %s3721_s13  ;;  %v1796_v31 = vpop.f32.mrf.mxu2  ;;  %v1818_v20 = vpop.f32.mrf.mxu3 }
 0x5f5   : > { %5583 = vst [vmem:[#allocation14_spill] sm:$0xff] %v4669_v22  ;;  %v1819_v42 = vadd.f32 %v1818_v20, %v4561_v8  ;;  %v4745_v20 = vmax.f32 %v1814_v21, 0.0 }
 0x5f6   : > { %v1780_v40 = vpop.f32.mrf.mxu1 }
 0x5f7   : > { %v4678_v55 = vmax.f32 %v1819_v42, 0.0  ;;  %v1781_v52 = vadd.f32 %v1780_v40, %v4561_v8  ;;  %5593 = vst [vmem:[#allocation24_spill] sm:$0xff] %v4745_v20  ;;  %v1795_v42 = vadd.f32 %v1794_v60, %v4563_v10  ;;  %v1797_v10 = vadd.f32 %v1796_v31, %v4570_v15 }
 0x5f9   : > { %5584 = vst [vmem:[#allocation15_spill] sm:$0xff] %v4678_v55  ;;  %v4681_v39 = vmax.f32 %v1781_v52, 0.0  ;;  %v4757_v52 = vmax.f32 %v1759_v30, 0.0  ;;  %v4772_v60 = vmax.f32 %v1797_v10, 0.0 }
 0x5fb   : > { %5585 = vst [vmem:[#allocation16_spill] sm:$0xff] %v4681_v39  ;;  %2061 = vrot.lane.b32.xlu0 %v4640_v29, %s3722_s14  ;;  %2073 = vrot.lane.b32.xlu1 %v4592_v28, %s3722_s14 }
 0x5fc   : > { %2075 = vrot.lane.b32.xlu2 %v4616_v46, %s3722_s14  ;;  %v1799_v56 = vpop.f32.mrf.mxu2  ;;  %v1820_v58 = vpop.f32.mrf.mxu3  ;;  %5594 = vst [vmem:[#allocation25_spill] sm:$0xff] %v4757_v52 }
 0x5fd   : > { %v1800_v59 = vadd.f32 %v1799_v56, %v4561_v8  ;;  %v1821_v47 = vadd.f32 %v1820_v58, %v4595_v23  ;;  %v4759_v56 = vmax.f32 %v1795_v42, 0.0  ;;  %v4761_v58 = vmax.f32 %v1816_v2, 0.0  ;;  %5597 = vst [vmem:[#allocation28_spill] sm:$0xff] %v4772_v60 }
 0x5fe   : > { %v1782_v36 = vpop.f32.mrf.mxu1 }
 0x5ff   : > { %v4691_v32 = vmax.f32 %v1800_v59, 0.0  ;;  %v4693_v48 = vmax.f32 %v1821_v47, 0.0  ;;  %v1783_v14 = vadd.f32 %v1782_v36, %v4595_v23  ;;  %5595 = vst [vmem:[#allocation26_spill] sm:$0xff] %v4759_v56 }
 0x600   : > { %5596 = vst [vmem:[#allocation27_spill] sm:$0xff] %v4761_v58 }
 0x601   : > { %5586 = vst [vmem:[#allocation17_spill] sm:$0xff] %v4691_v32  ;;  %v4696_v19 = vmax.f32 %v1783_v14, 0.0 }
 0x602   : > { %5587 = vst [vmem:[#allocation18_spill] sm:$0xff] %v4693_v48 }
 0x603   : > { %5588 = vst [vmem:[#allocation19_spill] sm:$0xff] %v4696_v19  ;;  %2051 = vrot.lane.b32.xlu0 %v4582_v1, %s3722_s14  ;;  %1881 = vrot.lane.b32.xlu1 %v4592_v28, %s3721_s13 }
 0x604   : > { %1883 = vrot.lane.b32.xlu2 %v4616_v46, %s3721_s13  ;;  %v1801_v8 = vpop.f32.mrf.mxu2 }
 0x605   : > { %v1802_v9 = vadd.f32 %v1801_v8, %v4595_v23  ;;  %v1778_v23 = vadd.f32 %v1777_v50, %v4570_v15 }
 0x607   : > { %v4706_v13 = vmax.f32 %v1802_v9, 0.0  ;;  %v4731_v11 = vmax.f32 %v1778_v23, 0.0 }
 0x609   : > { %5589 = vst [vmem:[#allocation20_spill] sm:$0xff] %v4706_v13 }
 0x60a   : > { %5591 = vst [vmem:[#allocation22_spill] sm:$0xff] %v4731_v11 }
 0x60b   : > { %1875 = vrot.lane.b32.xlu0 %v4633_v6, %s3721_s13  ;;  %1859 = vrot.lane.b32.xlu1 %v4582_v1, %s3721_s13 }
 0x60c   : > { %2087 = vrot.lane.b32.xlu2 %v4708_v54, %s3722_s14 }
 0x613   : > { %2077 = vrot.lane.b32.xlu0 %v4635_v7, %s3722_s14  ;;  %2067 = vrot.lane.b32.xlu1 %v4633_v6, %s3722_s14 }
 0x614   : > { %1861 = vrot.lane.b32.xlu2 %v4604_v3, %s3721_s13 }
 0x617   : > { %v4743_v50 = vpop.permute.xlu2 %1855 }
 0x61b   : > { %1885 = vrot.lane.b32.xlu0 %v4635_v7, %s3721_s13  ;;  %2053 = vrot.lane.b32.xlu1 %v4604_v3, %s3722_s14 }
 0x61c   : > { %2069 = vrot.lane.b32.xlu2 %v4655_v18, %s3722_s14 }
 0x623   : > { %2089 = vrot.lane.b32.xlu0 %v4731_v11, %s3722_s14  ;;  %1877 = vrot.lane.b32.xlu1 %v4655_v18, %s3721_s13 }
 0x624   : > { %2079 = vrot.lane.b32.xlu2 %v4733_v17, %s3722_s14 }
 0x62b   : > { %2091 = vrot.lane.b32.xlu0 %v4681_v39, %s3722_s14  ;;  %1911 = vrot.lane.b32.xlu1 %v4745_v20, %s3721_s13  ;;  %v2064_v40 = vpop.permute.xlu2 %2063 }
 0x62c   : > { %2103 = vrot.lane.b32.xlu2 %v4745_v20, %s3722_s14 }
 0x633   : > { %2081 = vrot.lane.b32.xlu0 %v4757_v52, %s3722_s14  ;;  %2095 = vrot.lane.b32.xlu1 %v4759_v56, %s3722_s14 }
 0x634   : > { %1913 = vrot.lane.b32.xlu2 %v4761_v58, %s3721_s13 }
 0x636   : > { %v4770_v27 = vpop.permute.xlu2 %2059 }
 0x63b   : > { %2105 = vrot.lane.b32.xlu0 %v4761_v58, %s3722_s14  ;;  %2093 = vrot.lane.b32.xlu1 %v4696_v19, %s3722_s14 }
 0x63c   : > { %2097 = vrot.lane.b32.xlu2 %v4772_v60, %s3722_s14 }
 0x63d   : > { %v2056_v57 = vpop.permute.xlu0 %2055 }
 0x63e   : > { %v4782_v59 = vsel %vm1516_vm5, %v2056_v57, %v2064_v40  ;;  %v4784_v47 = vpop.permute.xlu2 %2049 }
 0x643   : > { %1915 = vrot.lane.b32.xlu0 %v4678_v55, %s3721_s13  ;;  %2083 = vrot.lane.b32.xlu1 %v4660_v49, %s3722_s14 }
 0x644   : > { %2099 = vrot.lane.b32.xlu2 %v4691_v32, %s3722_s14 }
 0x645   : > { %v2058_v15 = vpop.permute.xlu1 %2057  ;;  %v1864_v31 = vpop.permute.xlu0 %1863 }
 0x646   : > { %v4795_v36 = vsel %vm1516_vm5, %v4784_v47, %v2058_v15  ;;  %v1874_v14 = vpop.permute.xlu2 %1873  ;;  %v4838_v25 = vsel %vm1419_vm6, %v4743_v50, %v1864_v31 }
 0x64b   : > { %1907 = vrot.lane.b32.xlu0 %v4691_v32, %s3721_s13  ;;  %2107 = vrot.lane.b32.xlu1 %v4678_v55, %s3722_s14  ;;  %v2353_v55 = vld [vmem:[#allocation6 + $0x88] sm:$0xff] }
 0x64c   : > { %2085 = vrot.lane.b32.xlu2 %v4669_v22, %s3722_s14 }
 0x64d   : > { %v1866_v8 = vpop.permute.xlu1 %1865  ;;  %v2072_v9 = vpop.permute.xlu0 %2071 }
 0x64e   : > { %v4805_v38 = vsel %vm1419_vm6, %v1866_v8, %v1874_v14  ;;  %v4809_v23 = vsel %vm1516_vm5, %v2064_v40, %v2072_v9  ;;  %v4811_v12 = vpop.permute.xlu2 %1869 }
 0x653   : > { %2101 = vrot.lane.b32.xlu0 %v4706_v13, %s3722_s14  ;;  %1917 = vrot.lane.b32.xlu1 %v4693_v48, %s3721_s13 }
 0x654   : > { %2109 = vrot.lane.b32.xlu2 %v4693_v48, %s3722_s14 }
 0x655   : > { %v4819_v21 = vpop.permute.xlu0 %1879  ;;  %v2048_v30 = vpop.permute.xlu1 %2047 }
 0x656   : > { %5598 = vst [vmem:[#allocation29_spill] sm:$0xff] %v4819_v21  ;;  %v4821_v42 = vpop.permute.xlu2 %2075  ;;  %v4825_v2 = vsel %vm1516_vm5, %v2048_v30, %v2056_v57 }
 0x65b   : > { %1893 = vrot.lane.b32.xlu0 %v4669_v22, %s3721_s13  ;;  %1899 = vrot.lane.b32.xlu1 %v4681_v39, %s3721_s13 }
 0x65c   : > { %1891 = vrot.lane.b32.xlu2 %v4660_v49, %s3721_s13 }
 0x65d   : > { %v4833_v40 = vpop.permute.xlu0 %1857  ;;  %v1872_v10 = vpop.permute.xlu1 %1871 }
 0x65e   : > { %v4843_v57 = vsel %vm1419_vm6, %v4833_v40, %v1866_v8  ;;  %v4845_v53 = vpop.permute.xlu2 %1883  ;;  %v4849_v61 = vsel %vm1419_vm6, %v1864_v31, %v1872_v10  ;;  %v4889_v58 = vsel %vm1419_vm6, %v1872_v10, %v4819_v21 }
 0x65f   : > { %5600 = vst [vmem:[#allocation31_spill] sm:$0xff] %v4889_v58 }
 0x663   : > { %1903 = vrot.lane.b32.xlu0 %v4759_v56, %s3721_s13  ;;  %1905 = vrot.lane.b32.xlu1 %v4772_v60, %s3721_s13 }
 0x664   : > { %1901 = vrot.lane.b32.xlu2 %v4696_v19, %s3721_s13 }
 0x665   : > { %v2066_v8 = vpop.permute.xlu0 %2065  ;;  %v1868_v34 = vpop.permute.xlu1 %1867 }
 0x666   : > { %v2132_v31 = vsel %vm1516_vm5, %v2058_v15, %v2066_v8  ;;  %v4863_v44 = vpop.permute.xlu2 %2087 }
 0x66b   : > { %1889 = vrot.lane.b32.xlu0 %v4757_v52, %s3721_s13  ;;  %1909 = vrot.lane.b32.xlu1 %v4706_v13, %s3721_s13 }
 0x66c   : > { %1887 = vrot.lane.b32.xlu2 %v4733_v17, %s3721_s13 }
 0x66d   : > { %v2062_v5 = vpop.permute.xlu0 %2061  ;;  %v4871_v45 = vpop.permute.xlu1 %2073 }
 0x66e   : > { %v4873_v63 = vpop.permute.xlu2 %1861  ;;  %v2128_v15 = vsel %vm1516_vm5, %v2066_v8, %v4871_v45 }
 0x66f   : > { %v2337_v39 = vpack.c.bf16 %v2128_v15, %v4809_v23 }
 0x673   : > { %2357 = vperm.xlu0 %3573, %v2352_v41   ;;  %1895 = vrot.lane.b32.xlu1 %v4708_v54, %s3721_s13 }
 0x674   : > { %1897 = vrot.lane.b32.xlu2 %v4731_v11, %s3721_s13 }
 0x675   : > { %v4882_v52 = vpop.permute.xlu0 %2051  ;;  %v4884_v17 = vpop.permute.xlu1 %1881 }
 0x676   : > { %5599 = vst [vmem:[#allocation30_spill] sm:$0xff] %v4884_v17  ;;  %v2137_v8 = vsel %vm1516_vm5, %v4882_v52, %v4770_v27  ;;  %v2070_v20 = vpop.permute.xlu2 %2069  ;;  %v4898_v22 = vsel %vm1419_vm6, %v1874_v14, %v4884_v17 }
 0x677   : > { %5601 = vst [vmem:[#allocation32_spill] sm:$0xff] %v4898_v22  ;;  %v2134_v49 = vsel %vm1516_vm5, %v2062_v5, %v2070_v20 }
 0x67b   : > { %2362 = vperm.xlu1 %3572, %v2353_v55  }
 0x67d   : > { %v4904_v10 = vpop.permute.xlu0 %1875  ;;  %v4906_v21 = vpop.permute.xlu1 %1859 }
 0x67e   : > { %v2080_v60 = vpop.permute.xlu2 %2079 }
 0x67f   : > { %v4911_v56 = vsel %vm1516_vm5, %v2080_v60, %v4863_v44  ;;  %v4915_v14 = vsel %vm1516_vm5, %v2072_v9, %v2080_v60 }
 0x680   : > { %5602 = vst [vmem:[#allocation33_spill] sm:$0xff] %v4911_v56 }
 0x685   : > { %v2078_v17 = vpop.permute.xlu0 %2077  ;;  %v2068_v11 = vpop.permute.xlu1 %2067 }
 0x686   : > { %v2130_v48 = vsel %vm1516_vm5, %v2070_v20, %v2078_v17  ;;  %v2104_v54 = vpop.permute.xlu2 %2103  ;;  %v2129_v13 = vsel %vm1516_vm5, %v2068_v11, %v4821_v42  ;;  %v2133_v32 = vsel %vm1516_vm5, %v4770_v27, %v2068_v11  ;;  %v2336_v20 = vpack.c.bf16 %v2132_v31, %v4782_v59 }
 0x687   : > { %v2139_v56 = vsel %vm1516_vm5, %v2104_v54, %v2048_v30  ;;  %v2344_v19 = vpack.c.bf16 %v2134_v49, %v2133_v32  ;;  %v2345_v60 = vpack.c.bf16 %v2130_v48, %v2129_v13  ;;  %v5603_v48 = vpack.c.bf16 %v4640_v29, %v4621_v4 }
 0x688   : > { %v4928_v9 = vmul.f32 %v2139_v56, %v4488_v35  ;;  %v2335_v13 = vpack.c.bf16 %v4795_v36, %v4825_v2  ;;  %v1946_v4 = vsel %vm1419_vm6, %v4873_v63, %v4811_v12  ;;  %v5606_v59 = vpack.c.bf16 %v4614_v62, %v4590_v33 }
 0x689   : > { %2385 = vmatpush.bf16.msra.mxu1 %v2344_v19  ;;  %2399 = vmatpush.bf16.msra.mxu2 %v2345_v60  ;;  %v5604_v19 = vpack.c.bf16 %v4655_v18, %v4633_v6  ;;  %v1941_v6 = vsel %vm1419_vm6, %v1868_v34, %v4904_v10  ;;  %v5607_v33 = vpack.c.bf16 %v4843_v57, %v4838_v25 }
 0x68a   : > { %v5608_v62 = vpack.c.bf16 %v4573_v43, %v4566_v24 }
 0x68d   : > { %v4932_v58 = vpop.permute.xlu0 %1885  ;;  %v2054_v22 = vpop.permute.xlu1 %2053  ;;  %2386 = vmatpush.bf16.msra.mxu1 %v2336_v20  ;;  %2400 = vmatpush.bf16.msra.mxu2 %v2337_v39  ;;  %v1945_v39 = vsel %vm1419_vm6, %v4906_v21, %v1868_v34  ;;  %v4971_v34 = vpack.c.bf16 %v2353_v55, %v2352_v41 }
 0x68e   : > { %v4934_v11 = vpop.permute.xlu2 %1913  ;;  %v2138_v49 = vsel %vm1516_vm5, %v2054_v22, %v2062_v5  ;;  %v5605_v5 = vpack.c.bf16 %v4597_v51, %v4578_v0  ;;  %v2327_v51 = vpack.c.bf16 %v4604_v3, %v4582_v1  ;;  %v2312_v36 = vpack.c.bf16 %v1946_v4, %v1945_v39 }
 0x68f   : > { %v2343_v32 = vpack.c.bf16 %v2138_v49, %v2137_v8  ;;  %v5609_v3 = vpack.c.bf16 %v4805_v38, %v4849_v61 }
 0x691   : > { %2371 = vmatpush.bf16.msra.mxu0 %v2343_v32  ;;  %2387 = vmatpush.bf16.msra.mxu1 %v5603_v48 }
 0x692   : > { %2401 = vmatpush.bf16.msra.mxu2 %v5604_v19 }
 0x695   : > { %v2090_v56 = vpop.permute.xlu0 %2089  ;;  %v1878_v27 = vpop.permute.xlu1 %1877  ;;  %2372 = vmatpush.bf16.msra.mxu0 %v2335_v13  ;;  %2388 = vmatpush.bf16.msra.mxu1 %v5605_v5 }
 0x696   : > { %v2098_v29 = vpop.permute.xlu2 %2097  ;;  %v1942_v18 = vsel %vm1419_vm6, %v4811_v12, %v1878_v27  ;;  %2402 = vmatpush.bf16.msra.mxu2 %v5606_v59 }
 0x697   : > { %v4967_v0 = vsel %vm1516_vm5, %v2090_v56, %v2098_v29  ;;  %v2313_v23 = vpack.c.bf16 %v1942_v18, %v1941_v6  ;;  %v1937_v6 = vsel %vm1419_vm6, %v4904_v10, %v4845_v53 }
 0x699   : > { %2373 = vmatpush.bf16.msra.mxu0 %v2327_v51  ;;  %2389 = vmatpush.bf16.msra.mxu1 %v2312_v36 }
 0x69a   : > { %2403 = vmatpush.bf16.msra.mxu2 %v2313_v23 }
 0x69d   : > { %v2092_v30 = vpop.permute.xlu0 %2091  ;;  %v4973_v12 = vpop.permute.xlu1 %1911  ;;  %2390 = vmatpush.bf16.msra.mxu1 %v5607_v33  ;;  %2374 = vmatpush.bf16.msra.mxu0 %v5608_v62 }
 0x69e   : > { %v2100_v1 = vpop.permute.xlu2 %2099  ;;  %2404 = vmatpush.bf16.msra.mxu2 %v5609_v3 }
 0x69f   : > { %v2117_v41 = vsel %vm1516_vm5, %v2092_v30, %v2100_v1 }
 0x6a0   : > { %3472 = vmatmul.msk.bf16.vlgmr.msra.gmra.mxu1 %vm2365_vm14, %v4971_v34 }
 0x6a1   : > { %3473 = vmatmul.msk.bf16.vlgmr.msra.gmra.mxu2 %vm2365_vm14, %v4971_v34 }
 0x6a5   : > { %v2082_v25 = vpop.permute.xlu0 %2081  ;;  %v2096_v55 = vpop.permute.xlu1 %2095 }
 0x6a6   : > { %v4992_v24 = vsel %vm1516_vm5, %v2082_v25, %v2090_v56  ;;  %v2124_v43 = vsel %vm1516_vm5, %v4871_v45, %v2082_v25  ;;  %v2086_v61 = vpop.permute.xlu2 %2085  ;;  %v2115_v2 = vsel %vm1516_vm5, %v4863_v44, %v2096_v55  ;;  %v2111_v57 = vsel %vm1516_vm5, %v2096_v55, %v2104_v54  ;;  %v5613_v25 = vld [vmem:[#allocation31_spill] sm:$0xff] }
 0x6a7   : > { %v2126_v38 = vsel %vm1516_vm5, %v2078_v17, %v2086_v61  ;;  %v2338_v13 = vpack.c.bf16 %v2124_v43, %v4915_v14  ;;  %v1938_v14 = vsel %vm1419_vm6, %v1878_v27, %v4932_v58  ;;  %v1947_v27 = vsel %vm1419_vm6, %v4973_v12, %v4743_v50 }
 0x6a8   : > { %v1948_v50 = vsel %vm1419_vm6, %v4934_v11, %v4833_v40  ;;  %v1951_v23 = vmul.f32 %v1947_v27, %v3878_v26  ;;  %v2340_v33 = vpack.c.bf16 %v4967_v0, %v2115_v2  ;;  %v5617_v0 = vld [vmem:[#allocation17_spill] sm:$0xff]  ;;  %v5618_v2 = vld [vmem:[#allocation20_spill] sm:$0xff] }
 0x6a9   : > { %v5631_v27 = vld [vmem:[#allocation25_spill] sm:$0xff] }
 0x6ad   : > { %v2106_v31 = vpop.permute.xlu0 %2105  ;;  %v2094_v15 = vpop.permute.xlu1 %2093 }
 0x6ae   : > { %v2112_v8 = vsel %vm1516_vm5, %v2098_v29, %v2106_v31  ;;  %v2140_v45 = vsel %vm1516_vm5, %v2106_v31, %v4784_v47  ;;  %v2110_v60 = vpop.permute.xlu2 %2109  ;;  %v2122_v17 = vsel %vm1516_vm5, %v2086_v61, %v2094_v15  ;;  %v5616_v31 = vld [vmem:[#allocation19_spill] sm:$0xff] }
 0x6af   : > { %v5012_v20 = vmul.f32 %v2140_v45, %v4488_v35  ;;  %v2142_v44 = vsel %vm1516_vm5, %v2110_v60, %v2054_v22  ;;  %v2341_v62 = vpack.c.bf16 %v2112_v8, %v2111_v57  ;;  %v2333_v57 = vpack.c.bf16 %v5618_v2, %v5617_v0 }
 0x6b0   : > { %v2174_v54 = vmul.f32 %v2142_v44, %v4488_v35  ;;  %v5620_v44 = vld [vmem:[#allocation21_spill] sm:$0xff] }
 0x6b1   : > { %v2342_v45 = vpack.c.bf16 %v5012_v20, %v4928_v9  ;;  %v5623_v9 = vld [vmem:[#allocation28_spill] sm:$0xff] }
 0x6b5   : > { %v5017_v49 = vpop.permute.xlu0 %1915  ;;  %v2084_v32 = vpop.permute.xlu1 %2083 }
 0x6b6   : > { %v2121_v48 = vsel %vm1516_vm5, %v2084_v32, %v2092_v30  ;;  %v2125_v47 = vsel %vm1516_vm5, %v4821_v42, %v2084_v32  ;;  %v5610_v42 = vpack.c.bf16 %v4635_v7, %v4616_v46  ;;  %v5611_v46 = vpack.c.bf16 %v4592_v28, %v4588_v37  ;;  %v1892_v28 = vpop.permute.xlu2 %1891 }
 0x6b7   : > { %v2346_v19 = vpack.c.bf16 %v2126_v38, %v2125_v47  ;;  %v2314_v7 = vpack.c.bf16 %v1938_v14, %v1937_v6  ;;  %v2347_v61 = vpack.c.bf16 %v2122_v17, %v2121_v48  ;;  %v5615_v38 = vld [vmem:[#allocation16_spill] sm:$0xff] }
 0x6b9   : > { %2413 = vmatpush.bf16.msra.mxu3 %v2346_v19  ;;  %v5622_v19 = vld [vmem:[#allocation26_spill] sm:$0xff] }
 0x6ba   : > { %v2325_v20 = vpack.c.bf16 %v5623_v9, %v5622_v19 }
 0x6bd   : > { %v5025_v39 = vpop.permute.xlu0 %1907  ;;  %v2108_v56 = vpop.permute.xlu1 %2107  ;;  %2414 = vmatpush.bf16.msra.mxu3 %v2338_v13 }
 0x6be   : > { %v2113_v22 = vsel %vm1516_vm5, %v2100_v1, %v2108_v56  ;;  %v2141_v5 = vsel %vm1516_vm5, %v2108_v56, %v4882_v52  ;;  %v1949_v52 = vsel %vm1419_vm6, %v5017_v49, %v4906_v21  ;;  %v1902_v8 = vpop.permute.xlu2 %1901 }
 0x6bf   : > { %v2166_v4 = vmul.f32 %v2141_v5, %v4488_v35  ;;  %v1967_v37 = vmul.f32 %v1949_v52, %v3878_v26  ;;  %v5625_v5 = vld [vmem:[#allocation18_spill] sm:$0xff]  ;;  %v5628_v52 = vld [vmem:[#allocation24_spill] sm:$0xff] }
 0x6c1   : > { %2415 = vmatpush.bf16.msra.mxu3 %v5610_v42  ;;  %v2350_v40 = vpack.c.bf16 %v2174_v54, %v2166_v4  ;;  %v5621_v54 = vld [vmem:[#allocation22_spill] sm:$0xff]  ;;  %v5626_v4 = vld [vmem:[#allocation13_spill] sm:$0xff] }
 0x6c2   : > { %v2324_v32 = vpack.c.bf16 %v5621_v54, %v5620_v44  ;;  %v5627_v42 = vld [vmem:[#allocation14_spill] sm:$0xff] }
 0x6c3   : > { %v2331_v14 = vpack.c.bf16 %v5627_v42, %v5626_v4 }
 0x6c5   : > { %v2102_v29 = vpop.permute.xlu0 %2101  ;;  %v5047_v35 = vpop.permute.xlu1 %1917  ;;  %2416 = vmatpush.bf16.msra.mxu3 %v5611_v46 }
 0x6c6   : > { %v2114_v10 = vsel %vm1516_vm5, %v2102_v29, %v2110_v60  ;;  %v2118_v18 = vsel %vm1516_vm5, %v2094_v15, %v2102_v29  ;;  %v1950_v21 = vsel %vm1419_vm6, %v5047_v35, %v4873_v63  ;;  %v1959_v63 = vmul.f32 %v1948_v50, %v3878_v26  ;;  %v5619_v60 = vld [vmem:[#allocation33_spill] sm:$0xff]  ;;  %v5629_v29 = vld [vmem:[#allocation27_spill] sm:$0xff] }
 0x6c7   : > { %v1975_v59 = vmul.f32 %v1950_v21, %v3878_v26  ;;  %v2348_v51 = vpack.c.bf16 %v2118_v18, %v2117_v41  ;;  %v2349_v36 = vpack.c.bf16 %v2114_v10, %v2113_v22  ;;  %v5612_v41 = vld [vmem:[#allocation32_spill] sm:$0xff]  ;;  %v2332_v15 = vpack.c.bf16 %v5616_v31, %v5615_v38  ;;  %v5624_v22 = vld [vmem:[#allocation15_spill] sm:$0xff]  ;;  %v1888_v18 = vpop.permute.xlu2 %1887 }
 0x6c8   : > { %v5614_v55 = vpack.c.bf16 %v5612_v41, %v5613_v25  ;;  %v2303_v43 = vpack.c.bf16 %v1959_v63, %v1951_v23  ;;  %v2339_v17 = vpack.c.bf16 %v4992_v24, %v5619_v60  ;;  %v2334_v24 = vpack.c.bf16 %v5625_v5, %v5624_v22 }
 0x6c9   : > { %2417 = vmatpush.bf16.msra.mxu3 %v2314_v7  ;;  %2441 = vmatpush.bf16.msrb.mxu1 %v2348_v51  ;;  %v2311_v30 = vpack.c.bf16 %v1975_v59, %v1967_v37  ;;  %v2326_v46 = vpack.c.bf16 %v5629_v29, %v5628_v52  ;;  %v5630_v7 = vld [vmem:[#allocation23_spill] sm:$0xff]  ;;  %v1933_v37 = vsel %vm1419_vm6, %v4845_v53, %v1892_v28  ;;  %v5632_v53 = vld [vmem:[#allocation30_spill] sm:$0xff] }
 0x6ca   : > { %2455 = vmatpush.bf16.msrb.mxu2 %v2349_v36  ;;  %v2323_v10 = vpack.c.bf16 %v5631_v27, %v5630_v7  ;;  %v1921_v59 = vsel %vm1419_vm6, %v5025_v39, %v5017_v49 }
 0x6cb   : > { %2375 = vmatpush.bf16.msra.mxu0 %v2311_v30 }
 0x6cd   : > { %v1894_v1 = vpop.permute.xlu0 %1893  ;;  %v1900_v3 = vpop.permute.xlu1 %1899  ;;  %2418 = vmatpush.bf16.msra.mxu3 %v5614_v55  ;;  %2442 = vmatpush.bf16.msrb.mxu1 %v2340_v33 }
 0x6ce   : > { %2456 = vmatpush.bf16.msrb.mxu2 %v2341_v62  ;;  %v1930_v48 = vsel %vm1419_vm6, %v1894_v1, %v1902_v8  ;;  %v1929_v47 = vsel %vm1419_vm6, %v1892_v28, %v1900_v3  ;;  %v1934_v21 = vsel %vm1419_vm6, %v4932_v58, %v1894_v1  ;;  %v1925_v50 = vsel %vm1419_vm6, %v1900_v3, %v5025_v39 }
 0x6cf   : > { %2376 = vmatpush.bf16.msra.mxu0 %v2303_v43  ;;  %v2316_v6 = vpack.c.bf16 %v1930_v48, %v1929_v47  ;;  %v2315_v30 = vpack.c.bf16 %v1934_v21, %v1933_v37  ;;  %v1898_v41 = vpop.permute.xlu2 %1897 }
 0x6d0   : > { %3474 = vmatmul.msk.bf16.vlgmr.msra.gmra.mxu3 %vm2365_vm14, %v4971_v34 }
 0x6d1   : > { %2469 = vmatpush.bf16.msrb.mxu3 %v2350_v40  ;;  %2443 = vmatpush.bf16.msrb.mxu1 %v2332_v15 }
 0x6d2   : > { %2457 = vmatpush.bf16.msrb.mxu2 %v2333_v57  ;;  %3471 = vmatmul.msk.bf16.vlgmr.msra.gmra.mxu0 %vm2365_vm14, %v4971_v34 }
 0x6d3   : > { %2427 = vmatpush.bf16.msrb.mxu0 %v2347_v61 }
 0x6d5   : > { %2470 = vmatpush.bf16.msrb.mxu3 %v2342_v45  ;;  %v1904_v13 = vpop.permute.xlu0 %1903  ;;  %v1906_v56 = vpop.permute.xlu1 %1905  ;;  %2444 = vmatpush.bf16.msrb.mxu1 %v2324_v32 }
 0x6d6   : > { %2458 = vmatpush.bf16.msrb.mxu2 %v2325_v20  ;;  %v1919_v33 = vsel %vm1419_vm6, %v1904_v13, %v4973_v12  ;;  %v1920_v39 = vsel %vm1419_vm6, %v1906_v56, %v4934_v11  ;;  %v1924_v12 = vsel %vm1419_vm6, %v1898_v41, %v1906_v56 }
 0x6d7   : > { %2428 = vmatpush.bf16.msrb.mxu0 %v2339_v17  ;;  %v2310_v3 = vpack.c.bf16 %v1920_v39, %v1919_v33 }
 0x6d9   : > { %2471 = vmatpush.bf16.msrb.mxu3 %v2334_v24  ;;  %2445 = vmatpush.bf16.msrb.mxu1 %v2316_v6 }
 0x6db   : > { %2429 = vmatpush.bf16.msrb.mxu0 %v2331_v14 }
 0x6dd   : > { %2472 = vmatpush.bf16.msrb.mxu3 %v2326_v46  ;;  %v1890_v51 = vpop.permute.xlu0 %1889  ;;  %v1910_v36 = vpop.permute.xlu1 %1909 }
 0x6de   : > { %v1922_v58 = vsel %vm1419_vm6, %v1910_v36, %v5047_v35  ;;  %v1926_v23 = vsel %vm1419_vm6, %v1902_v8, %v1910_v36  ;;  %v1932_v28 = vsel %vm1419_vm6, %v5632_v53, %v1890_v51  ;;  %v5633_v35 = vld [vmem:[#allocation29_spill] sm:$0xff]  ;;  %v1928_v55 = vsel %vm1419_vm6, %v1890_v51, %v1898_v41 }
 0x6df   : > { %2430 = vmatpush.bf16.msrb.mxu0 %v2323_v10  ;;  %v2317_v63 = vpack.c.bf16 %v1926_v23, %v1925_v50  ;;  %v2318_v49 = vpack.c.bf16 %v1922_v58, %v1921_v59  ;;  %v1931_v62 = vsel %vm1419_vm6, %v5633_v35, %v1888_v18 }
 0x6e0   : > { %v2307_v1 = vpack.c.bf16 %v1932_v28, %v1931_v62 }
 0x6e1   : > { %2459 = vmatpush.bf16.msrb.mxu2 %v2317_v63  ;;  %2473 = vmatpush.bf16.msrb.mxu3 %v2318_v49 }
 0x6e3   : > { %2431 = vmatpush.bf16.msrb.mxu0 %v2315_v30 }
 0x6e5   : > { %v1896_v25 = vpop.permute.xlu1 %1895  ;;  %2474 = vmatpush.bf16.msrb.mxu3 %v2310_v3  ;;  %v2358_v38 = vpop.permute.xlu0 %2357 }
 0x6e6   : > { %v1923_v11 = vsel %vm1419_vm6, %v1896_v25, %v1904_v13  ;;  %v1927_v40 = vsel %vm1419_vm6, %v1888_v18, %v1896_v25 }
 0x6e7   : > { %2432 = vmatpush.bf16.msrb.mxu0 %v2307_v1  ;;  %v2308_v43 = vpack.c.bf16 %v1928_v55, %v1927_v40  ;;  %v2309_v61 = vpack.c.bf16 %v1924_v12, %v1923_v11 }
 0x6e8   : > { %3478 = vmatmul.msk.bf16.vlgmr.msrb.gmra.mxu3 %vm2365_vm14, %v4971_v34 }
 0x6e9   : > { %2446 = vmatpush.bf16.msrb.mxu1 %v2308_v43  ;;  %2460 = vmatpush.bf16.msrb.mxu2 %v2309_v61 }
 0x6ea   : > { %3475 = vmatmul.msk.bf16.vlgmr.msrb.gmra.mxu0 %vm2365_vm14, %v4971_v34 }
 0x6ec   : > { %3476 = vmatmul.msk.bf16.vlgmr.msrb.gmra.mxu1 %vm2365_vm14, %v4971_v34  ;;  %3477 = vmatmul.msk.bf16.vlgmr.msrb.gmra.mxu2 %vm2365_vm14, %v4971_v34 }
 0x6ed   : > { %v2363_v57 = vpop.permute.xlu1 %2362 }
 0x71d   : > { %v2392_v31 = vpop.f32.mrf.mxu1 }
 0x71e   : > { %v5150_v15 = vadd.f32 %v2392_v31, %v2358_v38 }
 0x720   : > { %v2482_v0 = vmax.f32 %v5150_v15, 0.0 }
 0x722   : > { %2501 = vrot.lane.b32.xlu1 %v2482_v0, %s3722_s14 }
 0x724   : > { %v2406_v2 = vpop.f32.mrf.mxu2 }
 0x725   : > { %v5156_v8 = vadd.f32 %v2406_v2, %v2358_v38  ;;  %v2394_v45 = vpop.f32.mrf.mxu1 }
 0x726   : > { %v5158_v60 = vadd.f32 %v2394_v45, %v2363_v57 }
 0x727   : > { %v2483_v17 = vmax.f32 %v5156_v8, 0.0 }
 0x728   : > { %v2490_v34 = vmax.f32 %v5158_v60, 0.0 }
 0x729   : > { %2505 = vrot.lane.b32.xlu0 %v2483_v17, %s3722_s14 }
 0x72a   : > { %2503 = vrot.lane.b32.xlu2 %v2490_v34, %s3722_s14 }
 0x72c   : > { %v2408_v44 = vpop.f32.mrf.mxu2 }
 0x72d   : > { %v5168_v54 = vadd.f32 %v2408_v44, %v2363_v57 }
 0x72f   : > { %v2491_v32 = vmax.f32 %v5168_v54, 0.0 }
 0x731   : > { %2507 = vrot.lane.b32.xlu1 %v2491_v32, %s3722_s14 }
 0x74f   : > { %v2378_v48 = vpop.f32.mrf.mxu0 }
 0x750   : > { %v2379_v47 = vadd.f32 %v2378_v48, %v2358_v38 }
 0x752   : > { %v2481_v19 = vmax.f32 %v2379_v47, 0.0 }
 0x753   : > { %v2420_v9 = vpop.f32.mrf.mxu3 }
 0x754   : > { %2497 = vrot.lane.b32.xlu2 %v2481_v19, %s3722_s14  ;;  %v5175_v20 = vadd.f32 %v2420_v9, %v2358_v38 }
 0x756   : > { %v2484_v22 = vmax.f32 %v5175_v20, 0.0 }
 0x757   : > { %v2380_v13 = vpop.f32.mrf.mxu0 }
 0x758   : > { %v2381_v56 = vadd.f32 %v2380_v13, %v2363_v57 }
 0x75a   : > { %v2489_v5 = vmax.f32 %v2381_v56, 0.0 }
 0x75b   : > { %v2422_v24 = vpop.f32.mrf.mxu3 }
 0x75c   : > { %2499 = vrot.lane.b32.xlu0 %v2489_v5, %s3722_s14  ;;  %2509 = vrot.lane.b32.xlu2 %v2484_v22, %s3722_s14  ;;  %v5197_v21 = vadd.f32 %v2422_v24, %v2363_v57 }
 0x75e   : > { %v2492_v36 = vmax.f32 %v5197_v21, 0.0 }
 0x767   : > { %v2434_v4 = vpop.f32.mrf.mxu0 }
 0x768   : > { %v5182_v42 = vadd.f32 %v2434_v4, %v2358_v38 }
 0x769   : > { %v2448_v6 = vpop.f32.mrf.mxu1 }
 0x76a   : > { %v2485_v14 = vmax.f32 %v5182_v42, 0.0  ;;  %v5188_v52 = vadd.f32 %v2448_v6, %v2358_v38 }
 0x76b   : > { %v2476_v29 = vpop.f32.mrf.mxu3 }
 0x76c   : > { %2513 = vrot.lane.b32.xlu1 %v2485_v14, %s3722_s14  ;;  %v2486_v46 = vmax.f32 %v5188_v52, 0.0  ;;  %v5202_v51 = vadd.f32 %v2476_v29, %v2358_v38 }
 0x76e   : > { %2517 = vrot.lane.b32.xlu0 %v2486_v46, %s3722_s14  ;;  %v2488_v23 = vmax.f32 %v5202_v51, 0.0 }
 0x76f   : > { %v2436_v7 = vpop.f32.mrf.mxu0  ;;  %v2462_v18 = vpop.f32.mrf.mxu2 }
 0x770   : > { %v5191_v27 = vadd.f32 %v2436_v7, %v2363_v57  ;;  %v5208_v30 = vadd.f32 %v2462_v18, %v2358_v38 }
 0x771   : > { %v2450_v37 = vpop.f32.mrf.mxu1 }
 0x772   : > { %v2493_v10 = vmax.f32 %v5191_v27, 0.0  ;;  %v2451_v59 = vadd.f32 %v2450_v37, %v2363_v57  ;;  %v2487_v49 = vmax.f32 %v5208_v30, 0.0 }
 0x773   : > { %v2478_v58 = vpop.f32.mrf.mxu3 }
 0x774   : > { %2515 = vrot.lane.b32.xlu2 %v2493_v10, %s3722_s14  ;;  %v2494_v50 = vmax.f32 %v2451_v59, 0.0  ;;  %v5210_v53 = vadd.f32 %v2478_v58, %v2363_v57 }
 0x776   : > { %2519 = vrot.lane.b32.xlu1 %v2494_v50, %s3722_s14  ;;  %2511 = vrot.lane.b32.xlu0 %v2492_v36, %s3722_s14  ;;  %v2496_v33 = vmax.f32 %v5210_v53, 0.0  ;;  %v2763_v53 = vld [vmem:[#allocation6 + $0xa0] sm:$0xff] }
 0x777   : > { %v2464_v28 = vpop.f32.mrf.mxu2 }
 0x778   : > { %v5215_v63 = vadd.f32 %v2464_v28, %v2363_v57  ;;  %v5361_v28 = vld [vmem:[#allocation6 + $0xe0] sm:$0xff] }
 0x77a   : > { %v2495_v39 = vmax.f32 %v5215_v63, 0.0  ;;  %v5363_v63 = vld [vmem:[#allocation6 + $0xc0] sm:$0xff] }
 0x77c   : > { %2525 = vrot.lane.b32.xlu2 %v2488_v23, %s3722_s14 }
 0x77e   : > { %2521 = vrot.lane.b32.xlu1 %v2487_v49, %s3722_s14  ;;  %2527 = vrot.lane.b32.xlu0 %v2496_v33, %s3722_s14 }
 0x784   : > { %2523 = vrot.lane.b32.xlu2 %v2495_v39, %s3722_s14  ;;  %v2504_v41 = vpop.permute.xlu2 %2503 }
 0x794   : > { %v2502_v35 = vpop.permute.xlu1 %2501 }
 0x79b   : > { %v2506_v62 = vpop.permute.xlu0 %2505 }
 0x79c   : > { %v2539_v1 = vsel %vm1516_vm5, %v2502_v35, %v2506_v62 }
 0x79d   : > { %v5231_v3 = vadd.f32 %v2539_v1, %v2482_v0 }
 0x79f   : > { %2565 = vrot.lane.b32.xlu2 %v5231_v3, %s3723_s15 }
 0x7a3   : > { %v2508_v25 = vpop.permute.xlu1 %2507 }
 0x7a4   : > { %v2540_v12 = vsel %vm1516_vm5, %v2504_v41, %v2508_v25 }
 0x7a5   : > { %v5239_v55 = vadd.f32 %v2540_v12, %v2490_v34  ;;  %v5634_v12 = vld [vmem:[#allocation12_spill] sm:$0xff] }
 0x7a6   : > { %vm308_vm0 = vcmp.ge.s32.totalorder %v5634_v12, 960  ;;  %vm316_vm1 = vcmp.lt.s32.totalorder %v5634_v12, 968  ;;  %vm348_vm6 = vcmp.lt.s32.totalorder %v5634_v12, 904 }
 0x7a7   : > { %2567 = vrot.lane.b32.xlu0 %v5239_v55, %s3723_s15  ;;  %v2747_v11 = vpack.c.bf16 %v5239_v55, %v5231_v3 }
 0x7ae   : > { %v2498_v40 = vpop.permute.xlu2 %2497 }
 0x7af   : > { %v2541_v43 = vsel %vm1516_vm5, %v2498_v40, %v2502_v35 }
 0x7b0   : > { %v5247_v61 = vadd.f32 %v2541_v43, %v2481_v19 }
 0x7b2   : > { %2561 = vrot.lane.b32.xlu0 %v5247_v61, %s3723_s15 }
 0x7b6   : > { %v2510_v38 = vpop.permute.xlu2 %2509 }
 0x7b7   : > { %v2537_v9 = vsel %vm1516_vm5, %v2506_v62, %v2510_v38 }
 0x7b8   : > { %v5279_v13 = vadd.f32 %v2537_v9, %v2483_v17 }
 0x7ce   : > { %v2500_v31 = vpop.permute.xlu0 %2499  ;;  %v2516_v57 = vpop.permute.xlu2 %2515 }
 0x7cf   : > { %v2542_v15 = vsel %vm1516_vm5, %v2500_v31, %v2504_v41 }
 0x7d0   : > { %v5253_v0 = vadd.f32 %v2542_v15, %v2489_v5 }
 0x7d2   : > { %2563 = vrot.lane.b32.xlu1 %v5253_v0, %s3723_s15  ;;  %v2746_v2 = vpack.c.bf16 %v5253_v0, %v5247_v61 }
 0x7d6   : > { %v2526_v34 = vpop.permute.xlu2 %2525 }
 0x7d7   : > { %v2543_v54 = vsel %vm1516_vm5, %v2526_v34, %v2498_v40  ;;  %v5635_v40 = vmov 1.0  }
 0x7de   : > { %v2514_v45 = vpop.permute.xlu1 %2513  ;;  %v2524_v20 = vpop.permute.xlu2 %2523 }
 0x7df   : > { %v2535_v60 = vsel %vm1516_vm5, %v2510_v38, %v2514_v45 }
 0x7e0   : > { %v5263_v44 = vadd.f32 %v2535_v60, %v2484_v22  ;;  %v2518_v48 = vpop.permute.xlu0 %2517 }
 0x7e1   : > { %v2533_v47 = vsel %vm1516_vm5, %v2514_v45, %v2518_v48 }
 0x7e2   : > { %2573 = vrot.lane.b32.xlu1 %v5263_v44, %s3723_s15  ;;  %v5271_v19 = vadd.f32 %v2533_v47, %v2485_v14 }
 0x7e4   : > { %2577 = vrot.lane.b32.xlu0 %v5271_v19, %s3723_s15 }
 0x7e8   : > { %v2520_v56 = vpop.permute.xlu1 %2519  ;;  %v2512_v22 = vpop.permute.xlu0 %2511 }
 0x7e9   : > { %v2532_v5 = vsel %vm1516_vm5, %v2520_v56, %v2524_v20  ;;  %v2534_v24 = vsel %vm1516_vm5, %v2516_v57, %v2520_v56  ;;  %v2536_v4 = vsel %vm1516_vm5, %v2512_v22, %v2516_v57  ;;  %v2538_v42 = vsel %vm1516_vm5, %v2508_v25, %v2512_v22 }
 0x7ea   : > { %v5291_v14 = vadd.f32 %v2534_v24, %v2493_v10  ;;  %v5293_v8 = vadd.f32 %v2532_v5, %v2494_v50  ;;  %v5297_v17 = vadd.f32 %v2538_v42, %v2491_v32  ;;  %v5299_v6 = vadd.f32 %v2536_v4, %v2492_v36 }
 0x7eb   : > { %v5315_v32 = vadd.f32 %v2543_v54, %v2488_v23 }
 0x7ec   : > { %2575 = vrot.lane.b32.xlu2 %v5299_v6, %s3723_s15  ;;  %2579 = vrot.lane.b32.xlu1 %v5291_v14, %s3723_s15  ;;  %v2749_v29 = vpack.c.bf16 %v5299_v6, %v5263_v44  ;;  %v2748_v7 = vpack.c.bf16 %v5297_v17, %v5279_v13  ;;  %v2750_v27 = vpack.c.bf16 %v5291_v14, %v5271_v19 }
 0x7f0   : > { %v2522_v10 = vpop.permute.xlu1 %2521  ;;  %v2528_v18 = vpop.permute.xlu0 %2527 }
 0x7f1   : > { %v2529_v21 = vsel %vm1516_vm5, %v2522_v10, %v2526_v34  ;;  %v2531_v37 = vsel %vm1516_vm5, %v2518_v48, %v2522_v10  ;;  %v2530_v59 = vsel %vm1516_vm5, %v2524_v20, %v2528_v18  ;;  %v2544_v36 = vsel %vm1516_vm5, %v2528_v18, %v2500_v31  ;;  %vm324_vm5 = vmand %vm308_vm0, %vm316_vm1 }
 0x7f2   : > { %v5327_v50 = vadd.f32 %v2531_v37, %v2486_v46  ;;  %v5331_v51 = vadd.f32 %v2529_v21, %v2487_v49  ;;  %v5333_v58 = vadd.f32 %v2530_v59, %v2495_v39  ;;  %v5337_v23 = vadd.f32 %v2544_v36, %v2496_v33 }
 0x7f3   : > { %v332_v43 = vsel %vm324_vm5, 0.0, %v5635_v40  ;;  %v2764_v37 = vpack.c.bf16 %v2763_v53, %v2763_v53 }
 0x7f4   : > { %2591 = vrot.lane.b32.xlu0 %v5337_v23, %s3723_s15  ;;  %2569 = vrot.lane.b32.xlu1 %v5279_v13, %s3723_s15  ;;  %v2753_v52 = vpack.c.bf16 %v5337_v23, %v5315_v32  ;;  %v2751_v46 = vpack.c.bf16 %v5293_v8, %v5327_v50  ;;  %v2752_v30 = vpack.c.bf16 %v5333_v58, %v5331_v51 }
 0x7f5   : > { %2589 = vrot.lane.b32.xlu2 %v5315_v32, %s3723_s15 }
 0x7f9   : > { %v2566_v33 = vpop.permute.xlu2 %2565 }
 0x7fc   : > { %2581 = vrot.lane.b32.xlu0 %v5327_v50, %s3723_s15  ;;  %2583 = vrot.lane.b32.xlu1 %v5293_v8, %s3723_s15 }
 0x7fd   : > { %2571 = vrot.lane.b32.xlu2 %v5297_v17, %s3723_s15 }
 0x804   : > { %2767 = vperm.xlu1 %3572, %v2763_v53   ;;  %2587 = vrot.lane.b32.xlu0 %v5333_v58, %s3723_s15 }
 0x805   : > { %2585 = vrot.lane.b32.xlu2 %v5331_v51, %s3723_s15 }
 0x80c   : > { %3201 = vperm.xlu0 %3573, %v5361_v28  }
 0x80d   : > { %2970 = vperm.xlu2 %3574, %v5363_v63  }
 0x819   : > { %v2568_v49 = vpop.permute.xlu0 %2567 }
 0x824   : > { %v2562_v39 = vpop.permute.xlu0 %2561 }
 0x825   : > { %v2606_v35 = vsel %vm2593_vm15, %v2562_v39, %v2566_v33 }
 0x844   : > { %v2564_v62 = vpop.permute.xlu1 %2563 }
 0x845   : > { %v2607_v1 = vsel %vm2593_vm15, %v2564_v62, %v2568_v49 }
 0x846   : > { %v2576_v41 = vpop.permute.xlu2 %2575  ;;  %v2754_v25 = vpack.c.bf16 %v2607_v1, %v2606_v35 }
 0x848   : > { %2778 = vmatpush.bf16.msra.mxu0 %v2754_v25 }
 0x84c   : > { %2779 = vmatpush.bf16.msra.mxu0 %v2746_v2 }
 0x84f   : > { %v2590_v38 = vpop.permute.xlu2 %2589 }
 0x850   : > { %v2608_v31 = vsel %vm2593_vm15, %v2590_v38, %v2562_v39 }
 0x851   : > { %v2665_v15 = vmul.f32 %v2608_v31, %v332_v43  ;;  %v2610_v5 = vmul.f32 %v2608_v31, %v3878_v26 }
 0x854   : > { %v2574_v57 = vpop.permute.xlu1 %2573 }
 0x856   : > { %v2578_v45 = vpop.permute.xlu0 %2577 }
 0x857   : > { %v2600_v60 = vsel %vm2593_vm15, %v2574_v57, %v2578_v45  ;;  %v2572_v34 = vpop.permute.xlu2 %2571 }
 0x858   : > { %v2603_v48 = vsel %vm2593_vm15, %v2572_v34, %v2576_v41  ;;  %v2605_v61 = vsel %vm2593_vm15, %v2568_v49, %v2572_v34 }
 0x85e   : > { %v2580_v0 = vpop.permute.xlu1 %2579 }
 0x85f   : > { %v2601_v2 = vsel %vm2593_vm15, %v2576_v41, %v2580_v0  ;;  %v2586_v47 = vpop.permute.xlu2 %2585 }
 0x860   : > { %v2594_v9 = vsel %vm2593_vm15, %v2586_v47, %v2590_v38  ;;  %v2757_v20 = vpack.c.bf16 %v2601_v2, %v2600_v60  ;;  %v5463_v60 = vpack.c.bf16 %v5363_v63, %v5363_v63 }
 0x862   : > { %2817 = vmatpush.bf16.msra.mxu3 %v2757_v20 }
 0x866   : > { %v2592_v56 = vpop.permute.xlu0 %2591  ;;  %v2570_v22 = vpop.permute.xlu1 %2569  ;;  %2818 = vmatpush.bf16.msra.mxu3 %v2749_v29 }
 0x867   : > { %v2609_v24 = vsel %vm2593_vm15, %v2592_v56, %v2564_v62  ;;  %v2602_v4 = vsel %vm2593_vm15, %v2570_v22, %v2574_v57  ;;  %v2604_v42 = vsel %vm2593_vm15, %v2566_v33, %v2570_v22 }
 0x868   : > { %v2618_v54 = vmul.f32 %v2609_v24, %v3878_v26  ;;  %v2673_v10 = vmul.f32 %v2609_v24, %v332_v43  ;;  %v2755_v18 = vpack.c.bf16 %v2605_v61, %v2604_v42  ;;  %v2756_v21 = vpack.c.bf16 %v2603_v48, %v2602_v4 }
 0x86a   : > { %2791 = vmatpush.bf16.msra.mxu1 %v2755_v18  ;;  %2804 = vmatpush.bf16.msra.mxu2 %v2756_v21  ;;  %v2738_v44 = vpack.c.bf16 %v2618_v54, %v2610_v5  ;;  %v2761_v6 = vpack.c.bf16 %v2673_v10, %v2665_v15 }
 0x86b   : > { %2819 = vmatpush.bf16.msra.mxu3 %v2756_v21 }
 0x86c   : > { %2780 = vmatpush.bf16.msra.mxu0 %v2738_v44 }
 0x86e   : > { %v2582_v29 = vpop.permute.xlu0 %2581  ;;  %v2584_v59 = vpop.permute.xlu1 %2583  ;;  %3482 = vmatmul.msk.bf16.vlgmr.msra.gmra.mxu3 %vm1664_vm8, %v2764_v37  ;;  %2792 = vmatpush.bf16.msra.mxu1 %v2747_v11 }
 0x86f   : > { %2869 = vmatpush.bf16.msrb.mxu3 %v2761_v6  ;;  %v2596_v36 = vsel %vm2593_vm15, %v2582_v29, %v2586_v47  ;;  %v2598_v53 = vsel %vm2593_vm15, %v2578_v45, %v2582_v29  ;;  %v2599_v49 = vsel %vm2593_vm15, %v2580_v0, %v2584_v59  ;;  %2805 = vmatpush.bf16.msra.mxu2 %v2748_v7 }
 0x870   : > { %3479 = vmatmul.msk.bf16.vlgmr.msra.gmra.mxu0 %vm1664_vm8, %v2764_v37  ;;  %v2758_v3 = vpack.c.bf16 %v2599_v49, %v2598_v53 }
 0x872   : > { %2793 = vmatpush.bf16.msra.mxu1 %v2754_v25  ;;  %2830 = vmatpush.bf16.msrb.mxu0 %v2758_v3 }
 0x873   : > { %2870 = vmatpush.bf16.msrb.mxu3 %v2753_v52  ;;  %2806 = vmatpush.bf16.msra.mxu2 %v2755_v18 }
 0x875   : > { %3480 = vmatmul.msk.bf16.vlgmr.msra.gmra.mxu1 %vm1664_vm8, %v2764_v37 }
 0x876   : > { %v2588_v55 = vpop.permute.xlu0 %2587  ;;  %3481 = vmatmul.msk.bf16.vlgmr.msra.gmra.mxu2 %vm1664_vm8, %v2764_v37  ;;  %2831 = vmatpush.bf16.msrb.mxu0 %v2750_v27  ;;  %v5438_v19 = vpop.permute.xlu1 %2767  ;;  %v364_v27 = vsel %vm348_vm6, 0.0, %v5635_v40 }
 0x877   : > { %v2595_v11 = vsel %vm2593_vm15, %v2588_v55, %v2592_v56  ;;  %v2597_v13 = vsel %vm2593_vm15, %v2584_v59, %v2588_v55 }
 0x878   : > { %v2759_v17 = vpack.c.bf16 %v2597_v13, %v2596_v36  ;;  %v2760_v7 = vpack.c.bf16 %v2595_v11, %v2594_v9 }
 0x87a   : > { %2832 = vmatpush.bf16.msrb.mxu0 %v2757_v20  ;;  %2843 = vmatpush.bf16.msrb.mxu1 %v2759_v17 }
 0x87b   : > { %2856 = vmatpush.bf16.msrb.mxu2 %v2760_v7  ;;  %2871 = vmatpush.bf16.msrb.mxu3 %v2760_v7 }
 0x87e   : > { %3486 = vmatmul.msk.bf16.vlgmr.msrb.gmra.mxu3 %vm1664_vm8, %v2764_v37  ;;  %2844 = vmatpush.bf16.msrb.mxu1 %v2751_v46 }
 0x87f   : > { %2857 = vmatpush.bf16.msrb.mxu2 %v2752_v30 }
 0x880   : > { %3483 = vmatmul.msk.bf16.vlgmr.msrb.gmra.mxu0 %vm1664_vm8, %v2764_v37 }
 0x882   : > { %2845 = vmatpush.bf16.msrb.mxu1 %v2758_v3 }
 0x883   : > { %2858 = vmatpush.bf16.msrb.mxu2 %v2759_v17 }
 0x885   : > { %3484 = vmatmul.msk.bf16.vlgmr.msrb.gmra.mxu1 %vm1664_vm8, %v2764_v37 }
 0x886   : > { %3485 = vmatmul.msk.bf16.vlgmr.msrb.gmra.mxu2 %vm1664_vm8, %v2764_v37 }
 0x8ed   : > { %v2782_v14 = vpop.f32.mrf.mxu0 }
 0x8ee   : > { %v2783_v8 = vadd.f32 %v2782_v14, %v5438_v19  ;;  %v2971_v14 = vpop.permute.xlu2 %2970 }
 0x8f0   : > { %v5442_v32 = vmax.f32 %v2783_v8, 0.0 }
 0x8f1   : > { %v2821_v51 = vpop.f32.mrf.mxu3 }
 0x8f2   : > { %2894 = vst [vmem:[#allocation2 + $0x8] sm:$0xff] %v5442_v32  ;;  %v5446_v50 = vmul.f32 %v5442_v32, %v364_v27  ;;  %v2822_v58 = vadd.f32 %v2821_v51, %v5438_v19  ;;  %v2795_v23 = vpop.f32.mrf.mxu1  ;;  %v187_v51 = vadd.s32 768, %v3862_v16 }
 0x8f3   : > { %2901 = vst [vmem:[#allocation2 + $0x40] sm:$0xff] %v5442_v32  ;;  %v2796_v52 = vadd.f32 %v2795_v23, %v5438_v19 }
 0x8f4   : > { %v5451_v46 = vmax.f32 %v2822_v58, 0.0  ;;  %v2964_v24 = vpack.c.bf16 %v5446_v50, %v5446_v50 }
 0x8f5   : > { %v2784_v30 = vpop.f32.mrf.mxu0  ;;  %v2878_v33 = vmax.f32 %v2796_v52, 0.0 }
 0x8f6   : > { %2897 = vst [vmem:[#allocation2 + $0x20] sm:$0xff] %v5451_v46  ;;  %v2959_v39 = vpack.c.bf16 %v5451_v46, %v5451_v46  ;;  %v2998_v44 = vsel %vm474_vm7, %v2964_v24, 0 }
 0x8f7   : > { %2904 = vst [vmem:[#allocation2 + $0x58] sm:$0xff] %v5451_v46  ;;  %v2957_v35 = vpack.c.bf16 %v2878_v33, %v2878_v33  ;;  %v2950_v63 = vpack.c.bf16 %v2878_v33, %v5442_v32 }
 0x8f8   : > { %v2983_v62 = vsel %vm474_vm7, %v2959_v39, 0  ;;  %2895 = vst [vmem:[#allocation2 + $0x10] sm:$0xff] %v2878_v33 }
 0x8f9   : > { %v2808_v1 = vpop.f32.mrf.mxu2  ;;  %v2823_v41 = vpop.f32.mrf.mxu3  ;;  %3032 = vmatpush.bf16.msra.mxu2 %v2983_v62  ;;  %v2977_v25 = vsel %vm474_vm7, %v2957_v35, 0  ;;  %2902 = vst [vmem:[#allocation2 + $0x48] sm:$0xff] %v2878_v33 }
 0x8fa   : > { %v2809_v12 = vadd.f32 %v2808_v1, %v5438_v19  ;;  %v2797_v43 = vpop.f32.mrf.mxu1  ;;  %3006 = vmatpush.bf16.msra.mxu0 %v2977_v25 }
 0x8fc   : > { %v2879_v38 = vmax.f32 %v2809_v12, 0.0 }
 0x8fd   : > { %v2834_v31 = vpop.f32.mrf.mxu0 }
 0x8fe   : > { %v2835_v15 = vadd.f32 %v2834_v31, %v5438_v19  ;;  %2896 = vst [vmem:[#allocation2 + $0x18] sm:$0xff] %v2879_v38  ;;  %v2951_v57 = vpack.c.bf16 %v2879_v38, %v2878_v33  ;;  %v2958_v45 = vpack.c.bf16 %v2879_v38, %v2879_v38  ;;  %v2952_v54 = vpack.c.bf16 %v5451_v46, %v2879_v38 }
 0x8ff   : > { %2903 = vst [vmem:[#allocation2 + $0x50] sm:$0xff] %v2879_v38 }
 0x900   : > { %v2881_v34 = vmax.f32 %v2835_v15, 0.0  ;;  %3033 = vmatpush.bf16.msra.mxu2 %v2951_v57  ;;  %v2980_v48 = vsel %vm474_vm7, %v2958_v45, 0 }
 0x901   : > { %v2810_v61 = vpop.f32.mrf.mxu2  ;;  %v2873_v0 = vpop.f32.mrf.mxu3  ;;  %3019 = vmatpush.bf16.msra.mxu1 %v2980_v48 }
 0x902   : > { %2898 = vst [vmem:[#allocation2 + $0x28] sm:$0xff] %v2881_v34  ;;  %v2960_v2 = vpack.c.bf16 %v2881_v34, %v2881_v34  ;;  %v2874_v47 = vadd.f32 %v2873_v0, %v5438_v19  ;;  %v2847_v9 = vpop.f32.mrf.mxu1  ;;  %v2953_v3 = vpack.c.bf16 %v2881_v34, %v5451_v46 }
 0x903   : > { %2905 = vst [vmem:[#allocation2 + $0x60] sm:$0xff] %v2881_v34  ;;  %v2848_v20 = vadd.f32 %v2847_v9, %v5438_v19  ;;  %3489 = vmatmul.msk.bf16.vlgmr.msra.gmra.mxu2 %vm1167_vm2, %v5463_v60 }
 0x904   : > { %v2986_v56 = vsel %vm474_vm7, %v2960_v2, 0  ;;  %v2884_v22 = vmax.f32 %v2874_v47, 0.0 }
 0x905   : > { %v2836_v5 = vpop.f32.mrf.mxu0  ;;  %3045 = vmatpush.bf16.msra.mxu3 %v2986_v56  ;;  %v2882_v4 = vmax.f32 %v2848_v20, 0.0  ;;  %3020 = vmatpush.bf16.msra.mxu1 %v2950_v63 }
 0x906   : > { %v2885_v42 = vmul.f32 %v2884_v22, %v3878_v26  ;;  %2908 = vst [vmem:[#allocation2 + $0x78] sm:$0xff] %v2884_v22  ;;  %v2963_v10 = vpack.c.bf16 %v2884_v22, %v2884_v22 }
 0x907   : > { %v2961_v18 = vpack.c.bf16 %v2882_v4, %v2882_v4  ;;  %2899 = vst [vmem:[#allocation2 + $0x30] sm:$0xff] %v2882_v4 }
 0x908   : > { %2893 = vst [vmem:[#allocation2] sm:$0xff] %v2885_v42  ;;  %3488 = vmatmul.msk.bf16.vlgmr.msra.gmra.mxu1 %vm1167_vm2, %v5463_v60  ;;  %v2995_v21 = vsel %vm474_vm7, %v2963_v10, 0  ;;  %v2949_v37 = vpack.c.bf16 %v5442_v32, %v2885_v42 }
 0x909   : > { %3046 = vmatpush.bf16.msra.mxu3 %v2952_v54  ;;  %v2860_v6 = vpop.f32.mrf.mxu2  ;;  %v2875_v29 = vpop.f32.mrf.mxu3  ;;  %3084 = vmatpush.bf16.msrb.mxu2 %v2995_v21  ;;  %v2989_v59 = vsel %vm474_vm7, %v2961_v18, 0  ;;  %2906 = vst [vmem:[#allocation2 + $0x68] sm:$0xff] %v2882_v4 }
 0x90a   : > { %v2861_v36 = vadd.f32 %v2860_v6, %v5438_v19  ;;  %v2849_v53 = vpop.f32.mrf.mxu1  ;;  %3007 = vmatpush.bf16.msra.mxu0 %v2949_v37  ;;  %v2954_v19 = vpack.c.bf16 %v2882_v4, %v2881_v34 }
 0x90c   : > { %3490 = vmatmul.msk.bf16.vlgmr.msra.gmra.mxu3 %vm1167_vm2, %v5463_v60  ;;  %v2883_v49 = vmax.f32 %v2861_v36, 0.0 }
 0x90d   : > { %3097 = vmatpush.bf16.msrb.mxu3 %v2998_v44  ;;  %3487 = vmatmul.msk.bf16.vlgmr.msra.gmra.mxu0 %vm1167_vm2, %v5463_v60 }
 0x90e   : > { %3058 = vmatpush.bf16.msrb.mxu0 %v2989_v59  ;;  %2900 = vst [vmem:[#allocation2 + $0x38] sm:$0xff] %v2883_v49  ;;  %v2955_v55 = vpack.c.bf16 %v2883_v49, %v2882_v4  ;;  %v2956_v11 = vpack.c.bf16 %v2884_v22, %v2883_v49  ;;  %v2962_v13 = vpack.c.bf16 %v2883_v49, %v2883_v49 }
 0x90f   : > { %2907 = vst [vmem:[#allocation2 + $0x70] sm:$0xff] %v2883_v49 }
 0x910   : > { %3085 = vmatpush.bf16.msrb.mxu2 %v2955_v55  ;;  %v2992_v17 = vsel %vm474_vm7, %v2962_v13, 0  ;;  %vm379_vm7 = vcmp.lt.s32.totalorder %v187_v51, 776 }
 0x911   : > { %3098 = vmatpush.bf16.msrb.mxu3 %v2956_v11  ;;  %v2862_v7 = vpop.f32.mrf.mxu2  ;;  %3071 = vmatpush.bf16.msrb.mxu1 %v2992_v17  ;;  %v395_v62 = vsel %vm379_vm7, 0.0, %v5635_v40  ;;  %v3198_v17 = vpack.c.bf16 %v5361_v28, %v5361_v28 }
 0x912   : > { %3059 = vmatpush.bf16.msrb.mxu0 %v2953_v3 }
 0x913   : > { %3493 = vmatmul.msk.bf16.vlgmr.msrb.gmra.mxu2 %vm1167_vm2, %v5463_v60 }
 0x915   : > { %3072 = vmatpush.bf16.msrb.mxu1 %v2954_v19 }
 0x918   : > { %3492 = vmatmul.msk.bf16.vlgmr.msrb.gmra.mxu1 %vm1167_vm2, %v5463_v60 }
 0x91c   : > { %3494 = vmatmul.msk.bf16.vlgmr.msrb.gmra.mxu3 %vm1167_vm2, %v5463_v60 }
 0x91d   : > { %3491 = vmatmul.msk.bf16.vlgmr.msrb.gmra.mxu0 %vm1167_vm2, %v5463_v60 }
 0x985   : > { %v3022_v8 = vpop.f32.mrf.mxu1 }
 0x986   : > { %v3023_v27 = vadd.f32 %v3022_v8, %v2971_v14  ;;  %v3035_v32 = vpop.f32.mrf.mxu2 }
 0x987   : > { %v3036_v50 = vadd.f32 %v3035_v32, %v2971_v14 }
 0x988   : > { %v3105_v58 = vmax.f32 %v3023_v27, 0.0 }
 0x989   : > { %v3106_v23 = vmax.f32 %v3036_v50, 0.0 }
 0x98a   : > { %v3009_v52 = vpop.f32.mrf.mxu0 }
 0x98b   : > { %v3113_v46 = vadd.f32 %v3106_v23, %v3105_v58  ;;  %v3010_v30 = vadd.f32 %v3009_v52, %v2971_v14  ;;  %v3202_v52 = vpop.permute.xlu0 %3201 }
 0x98d   : > { %3131 = vst [vmem:[#allocation2 + $0x18] sm:$0xf] %v3113_v46  ;;  %v3145_v33 = vrot.slane %v3113_v46, 4  ;;  %v3104_v39 = vmax.f32 %v3010_v30, 0.0  ;;  %v3024_v35 = vpop.f32.mrf.mxu1 }
 0x98e   : > { %3183 = vst [vmem:[#allocation2 + $0x78] sm:$0xf] %v3113_v46  ;;  %v3037_v1 = vpop.f32.mrf.mxu2 }
 0x98f   : > { %v3048_v41 = vpop.f32.mrf.mxu3  ;;  %3161 = vst [vmem:[#allocation2 + $0x8] sm:$0xf0] %v3145_v33  ;;  %v3112_v25 = vadd.f32 %v3105_v58, %v3104_v39 }
 0x990   : > { %v3049_v12 = vadd.f32 %v3048_v41, %v2971_v14 }
 0x991   : > { %3130 = vst [vmem:[#allocation2 + $0x10] sm:$0xf] %v3112_v25  ;;  %v3144_v16 = vrot.slane %v3112_v25, 4  ;;  %v3174_v43 = vmul.f32 %v3112_v25, %v395_v62 }
 0x992   : > { %v3107_v38 = vmax.f32 %v3049_v12, 0.0  ;;  %v3011_v31 = vpop.f32.mrf.mxu0 }
 0x993   : > { %3160 = vst [vmem:[#allocation2] sm:$0xf0] %v3144_v16 }
 0x994   : > { %v3114_v15 = vadd.f32 %v3107_v38, %v3106_v23  ;;  %3182 = vst [vmem:[#allocation2 + $0x70] sm:$0xf] %v3174_v43 }
 0x995   : > { %v3074_v45 = vpop.f32.mrf.mxu1 }
 0x996   : > { %3132 = vst [vmem:[#allocation2 + $0x20] sm:$0xf] %v3114_v15  ;;  %v3146_v57 = vrot.slane %v3114_v15, 4  ;;  %v3075_v60 = vadd.f32 %v3074_v45, %v2971_v14  ;;  %v3087_v34 = vpop.f32.mrf.mxu2 }
 0x997   : > { %3176 = vst [vmem:[#allocation2 + $0x40] sm:$0xf] %v3114_v15  ;;  %v3050_v40 = vpop.f32.mrf.mxu3  ;;  %v3088_v48 = vadd.f32 %v3087_v34, %v2971_v14 }
 0x998   : > { %3162 = vst [vmem:[#allocation2 + $0x10] sm:$0xf0] %v3146_v57  ;;  %v3109_v61 = vmax.f32 %v3075_v60, 0.0 }
 0x999   : > { %v3110_v0 = vmax.f32 %v3088_v48, 0.0 }
 0x99a   : > { %v3061_v2 = vpop.f32.mrf.mxu0 }
 0x99b   : > { %v3117_v47 = vadd.f32 %v3110_v0, %v3109_v61  ;;  %v3062_v9 = vadd.f32 %v3061_v2, %v2971_v14  ;;  %v3191_v19 = vld [vmem:[#allocation2 + $0x70] sm:$0xf] }
 0x99d   : > { %3135 = vst [vmem:[#allocation2 + $0x38] sm:$0xf] %v3117_v47  ;;  %v3149_v20 = vrot.slane %v3117_v47, 4  ;;  %v3108_v63 = vmax.f32 %v3062_v9, 0.0  ;;  %v3076_v56 = vpop.f32.mrf.mxu1 }
 0x99e   : > { %3179 = vst [vmem:[#allocation2 + $0x58] sm:$0xf] %v3117_v47  ;;  %v3089_v22 = vpop.f32.mrf.mxu2  ;;  %v3188_v11 = vld [vmem:[#allocation2 + $0x40] sm:$0xf] }
 0x99f   : > { %v3100_v5 = vpop.f32.mrf.mxu3  ;;  %3165 = vst [vmem:[#allocation2 + $0x28] sm:$0xf0] %v3149_v20  ;;  %v3115_v24 = vadd.f32 %v3108_v63, %v3107_v38  ;;  %v3116_v4 = vadd.f32 %v3109_v61, %v3108_v63  ;;  %v3185_v53 = vld [vmem:[#allocation2 + $0x10] sm:$0xff] }
 0x9a0   : > { %v3101_v42 = vadd.f32 %v3100_v5, %v2971_v14 }
 0x9a1   : > { %3133 = vst [vmem:[#allocation2 + $0x28] sm:$0xf] %v3115_v24  ;;  %v3147_v54 = vrot.slane %v3115_v24, 4  ;;  %v3148_v10 = vrot.slane %v3116_v4, 4 }
 0x9a2   : > { %v3111_v18 = vmax.f32 %v3101_v42, 0.0  ;;  %3134 = vst [vmem:[#allocation2 + $0x30] sm:$0xf] %v3116_v4  ;;  %v3063_v21 = vpop.f32.mrf.mxu0 }
 0x9a3   : > { %3163 = vst [vmem:[#allocation2 + $0x18] sm:$0xf0] %v3147_v54 }
 0x9a4   : > { %v3118_v37 = vadd.f32 %v3111_v18, %v3110_v0  ;;  %v3119_v44 = vadd.f32 %v3111_v18, %v3104_v39  ;;  %3164 = vst [vmem:[#allocation2 + $0x20] sm:$0xf0] %v3148_v10 }
 0x9a5   : > { %3177 = vst [vmem:[#allocation2 + $0x48] sm:$0xf] %v3115_v24 }
 0x9a6   : > { %v3120_v6 = vmul.f32 %v3118_v37, %v3878_v26  ;;  %v3150_v29 = vrot.slane %v3118_v37, 4  ;;  %3178 = vst [vmem:[#allocation2 + $0x50] sm:$0xf] %v3116_v4  ;;  %v3151_v59 = vrot.slane %v3119_v44, 4 }
 0x9a7   : > { %v3102_v36 = vpop.f32.mrf.mxu3  ;;  %3129 = vst [vmem:[#allocation2 + $0x8] sm:$0xf] %v3119_v44 }
 0x9a8   : > { %3128 = vst [vmem:[#allocation2] sm:$0xf] %v3120_v6 }
 0x9a9   : > { %3166 = vst [vmem:[#allocation2 + $0x30] sm:$0xf0] %v3150_v29 }
 0x9aa   : > { %3167 = vst [vmem:[#allocation2 + $0x38] sm:$0xf0] %v3151_v59 }
 0x9ab   : > { %3180 = vst [vmem:[#allocation2 + $0x60] sm:$0xf] %v3118_v37  ;;  %v3186_v27 = vld [vmem:[#allocation2 + $0x20] sm:$0xff] }
 0x9ac   : > { %3181 = vst [vmem:[#allocation2 + $0x68] sm:$0xf] %v3119_v44 }
 0x9ad   : > { %v3189_v49 = vld [vmem:[#allocation2 + $0x50] sm:$0xf] }
 0x9ae   : > { %v3193_v3 = vpack.c.bf16 %v3189_v49, %v3185_v53 }
 0x9af   : > { %v3184_v55 = vld [vmem:[#allocation2] sm:$0xff] }
 0x9b0   : > { %v3192_v13 = vpack.c.bf16 %v3188_v11, %v3184_v55  ;;  %v3211_v26 = vsel %vm854_vm11, %v3193_v3, 0  ;;  %v3187_v7 = vld [vmem:[#allocation2 + $0x30] sm:$0xff] }
 0x9b1   : > { %3239 = vmatpush.bf16.msra.mxu1 %v3211_v26  ;;  %v3195_v8 = vpack.c.bf16 %v3191_v19, %v3187_v7 }
 0x9b2   : > { %v3208_v14 = vsel %vm854_vm11, %v3192_v13, 0  ;;  %v3190_v32 = vld [vmem:[#allocation2 + $0x60] sm:$0xf] }
 0x9b3   : > { %3226 = vmatpush.bf16.msra.mxu0 %v3208_v14  ;;  %v3194_v50 = vpack.c.bf16 %v3190_v32, %v3186_v27  ;;  %v3217_v51 = vsel %vm854_vm11, %v3195_v8, 0 }
 0x9b4   : > { %3496 = vmatmul.msk.bf16.vlgmr.msra.gmra.mxu1 %vm850_vm12, %v3198_v17  ;;  %3265 = vmatpush.bf16.msra.mxu3 %v3217_v51 }
 0x9b5   : > { %v3214_v58 = vsel %vm854_vm11, %v3194_v50, 0  ;;  %vm3289_vm11 = vcmask 1042432  }
 0x9b6   : > { %3495 = vmatmul.msk.bf16.vlgmr.msra.gmra.mxu0 %vm850_vm12, %v3198_v17  ;;  %3252 = vmatpush.bf16.msra.mxu2 %v3214_v58 }
 0x9b7   : > { %3498 = vmatmul.msk.bf16.vlgmr.msra.gmra.mxu3 %vm850_vm12, %v3198_v17 }
 0x9b9   : > { %3497 = vmatmul.msk.bf16.vlgmr.msra.gmra.mxu2 %vm850_vm12, %v3198_v17  ;;  %vm3291_vm12 = vcmask 60416  }
 0xa31   : > { %v3241_v28 = vpop.f32.mrf.mxu1 }
 0xa32   : > { %v3242_v30 = vadd.f32 %v3241_v28, %v3202_v52 }
 0xa33   : > { %v3228_v23 = vpop.f32.mrf.mxu0 }
 0xa34   : > { %v3229_v46 = vadd.f32 %v3228_v23, %v3202_v52  ;;  %v3272_v41 = vmax.f32 %v3242_v30, 0.0 }
 0xa36   : > { %v3271_v39 = vmax.f32 %v3229_v46, 0.0 }
 0xa38   : > { %v3275_v43 = vadd.f32 %v3272_v41, %v3271_v39 }
 0xa39   : > { %v3243_v33 = vpop.f32.mrf.mxu1 }
 0xa3a   : > { %v3267_v35 = vpop.f32.mrf.mxu3  ;;  %v3277_v15 = vmul.f32 0.5, %v3275_v43 }
 0xa3b   : > { %v3230_v62 = vpop.f32.mrf.mxu0  ;;  %v3268_v1 = vadd.f32 %v3267_v35, %v3202_v52 }
 0xa3c   : > { %v3254_v25 = vpop.f32.mrf.mxu2  ;;  %v3283_v40 = vrot.slane %v3277_v15, 7 }
 0xa3d   : > { %v3255_v12 = vadd.f32 %v3254_v25, %v3202_v52  ;;  %v3274_v16 = vmax.f32 %v3268_v1, 0.0 }
 0xa3f   : > { %v3273_v38 = vmax.f32 %v3255_v12, 0.0 }
 0xa41   : > { %v3276_v31 = vadd.f32 %v3274_v16, %v3273_v38 }
 0xa42   : > { %v3269_v57 = vpop.f32.mrf.mxu3 }
 0xa43   : > { %v3278_v45 = vmul.f32 0.5, %v3276_v31 }
 0xa44   : > { %v3256_v60 = vpop.f32.mrf.mxu2 }
 0xa45   : > { %v3280_v34 = vrot.slane %v3278_v45, 7  ;;  %v3285_v48 = vrot.slane %v3278_v45, 6 }
 0xa47   : > { %v3287_v61 = vsel %vm462_vm3, %v3277_v15, %v3280_v34 }
 0xa48   : > { %v3288_v0 = vsel %vm466_vm4, %v3287_v61, %v3283_v40 }
 0xa49   : > { %v3290_v2 = vsel %vm3289_vm11, %v3288_v0, %v3285_v48 }
 0xa4a   : > { %v3292_v47 = vsel %vm3291_vm12, %v3290_v2, -inf }
 0xa4b   : > { %v3293_v9 = vrot.slane %v3292_v47, 4 }
 0xa4d   : > { %v3294_v20 = vmax.f32 %v3292_v47, %v3293_v9 }
 0xa4f   : > { %v3295_v63 = vrot.slane %v3294_v20, 2 }
 0xa51   : > { %v3296_v56 = vmax.f32 %v3294_v20, %v3295_v63 }
 0xa53   : > { %v3297_v22 = vrot.slane %v3296_v56, 1 }
 0xa55   : > { %v3298_v5 = vmax.f32 %v3296_v56, %v3297_v22 }
 0xa57   : > { %v3299_v24 = vsub.f32 %v3290_v2, %v3298_v5 }
 0xa59   : > { %v3300_v4 = vmul.f32 1.442695, %v3299_v24 }
 0xa5b   : > { %3575 = vpow2.f32 %v3300_v4 }
 0xa61   : > { %v3576_v42 = vpop.eup %3575 }
 0xa62   : > { %v3302_v54 = vsel %vm3291_vm12, %v3576_v42, 0.0 }
 0xa63   : > { %v3303_v10 = vrot.slane %v3302_v54, 4 }
 0xa65   : > { %v3304_v18 = vadd.f32 %v3303_v10, %v3302_v54 }
 0xa67   : > { %v3305_v21 = vrot.slane %v3304_v18, 2 }
 0xa69   : > { %v3306_v37 = vadd.f32 %v3305_v21, %v3304_v18 }
 0xa6b   : > { %v3307_v44 = vrot.slane %v3306_v37, 1 }
 0xa6d   : > { %v3308_v6 = vadd.f32 %v3307_v44, %v3306_v37 }
 0xa6f   : > { %3577 = vrcp.f32 %v3308_v6  ;;  %v3320_v53 = vand.u32 2147483648, %v3308_v6  ;;  %v3318_v3 = vand.u32 2147483647, %v3308_v6  ;;  %vm3314_vm4 = vweird.f32 %v3308_v6 }
 0xa71   : > { %v3321_v11 = vor.u32 1.1754944e-38, %v3320_v53  ;;  %vm3319_vm8 = vcmp.eq.f32.partialorder %v3318_v3, 8.507059e+37 }
 0xa75   : > { %v3578_v29 = vpop.eup %3577 }
 0xa76   : > { %v3310_v59 = vmul.f32 %v3578_v29, %v3308_v6  ;;  %vm3315_vm3 = vweird.f32 %v3578_v29 }
 0xa77   : > { %vm3316_vm2 = vmor %vm3314_vm4, %vm3315_vm3 }
 0xa78   : > { %v3311_v36 = vsub.f32 1.0, %v3310_v59 }
 0xa7a   : > { %v3312_v49 = vmul.f32 %v3578_v29, %v3311_v36 }
 0xa7c   : > { %v3313_v55 = vadd.f32 %v3578_v29, %v3312_v49 }
 0xa7e   : > { %v3317_v13 = vsel %vm3316_vm2, %v3578_v29, %v3313_v55 }
 0xa7f   : > { %v3322_v17 = vsel %vm3319_vm8, %v3321_v11, %v3317_v13 }
 0xa80   : > { %v3323_v26 = vmul.f32 %v3576_v42, %v3322_v17 }
 0xa82   : > { %3324 = vst.msk [vmem:[%s177_s24] sm:$0xf] %vm3291_vm12, %v3323_v26 }
 0xa83   : > { %3666 = shalt.err (!%p3663_p9)
}
 0xa84   : > { %3509 = dma.vmem_to_hbm [thread:$0]  (%p3799_p13), %s3339_s25, 64, %s3341_s3, %s3326_s16  }
 0xa85 PF: > { %s3352_s29 = sand.u32 1, %s3697_s9   ;;  %p5636_p10 = scmp.ge.s32.totalorder %s3709_s12, 2 }
 0xa86   : > { %s3353_s13 = scalar_lea.sflag [#allocation5], %s3352_s29 }
 0xa87   : > { %p3520_p11 = pnand %p5636_p10, %p3804_p4 }
 0xa89   : > { %p3521_p0 = pneg %p3520_p11 }
 0xa8b   : > { %3692 = dma.done.wait (%p3521_p0), %s3353_s13, 64  }
 0xa8c   : > { %3694 = vsyncadd (%p3521_p0), %s3353_s13, 4294967232  ;;  %p16_p2 = scmp.ge.s32.totalorder %s3779_s23, 4   ;;  %s5637_s9 = smov %s3701_s10 }
 0xa8d   : > { %s5638_s10 = smov %s3705_s11  ;;  %s5639_s11 = smov %s3791_s26 }
 0xa8e   : > { %s5640_s12 = smov %s3779_s23  ;;  %18 = sbr.rel (!%p16_p2) target bundleno = 6 (0x6), region = 86 }
 0xa93   :  { %3359 = vsyncpa [#allocation4], 1 }
 0xa94   :  { %3361 = vsyncpa [#allocation4 + $0x1], 1 }
 0xa95   :  { %3362 = vsyncpa [#allocation7], 1 }
 0xa96   :  { %3363 = vsyncpa [#allocation5], 1 }
 0xa97   :  { %3365 = vsyncpa [#allocation5 + $0x1], 1 }

</bundles_post_ra>
